<compile_context>
chip_gen: v5e
topology: v5e:2x2
jax: 0.10.0
libtpu: 0.0.40
codegen_flags: <defaults>
</compile_context>

<pallas_src>
import jax
import jax.numpy as jnp
import numpy as np
from jax.experimental import pallas as pl
from jax.experimental.pallas import tpu as pltpu


def _pick_batch_tile(B, HW, cap=8):
    """Images per grid step: largest divisor of B (<= cap).  Prefer >=2 grid steps
    (v7x has two TensorCores) as long as a step still covers >= 512 rows."""
    tb = 1
    for d in range(min(B, cap), 0, -1):
        if B % d == 0:
            tb = d
            break
    if B // tb < 2:
        for d in range(tb - 1, 0, -1):
            if B % d == 0 and d * HW >= 512:
                tb = d
                break
    return tb


def _make_mobile_corr_kernel(TB, H, W, C, Ctp, Cout, LPAD):
    HW = H * W
    W_SCR = LPAD + W + 1          # scratch columns: [LPAD-1]=0, [LPAD:LPAD+W]=image, [LPAD+W]=0

    def kernel(x_ref, ztaug_ref, wd_ref, wp_ref, b_ref, o_ref, pad_ref):
        f32 = jnp.float32

        # ---- zero the 1-pixel border (every step; megacore-safe, see header) ----
        zrow = jnp.zeros((TB, 1, W_SCR, Ctp), f32)
        pad_ref[:, 0:1, :, :] = zrow
        pad_ref[:, H + 1:H + 2, :, :] = zrow
        zcol = jnp.zeros((TB, H + 2, 1, Ctp), f32)
        pad_ref[:, :, LPAD - 1:LPAD, :] = zcol
        pad_ref[:, :, LPAD + W:LPAD + W + 1, :] = zcol

        # ---- correlation + fused channel concat (+ lane padding) on the MXU ----
        # ztaug = [I_C | z_flat^T | 0]  =>  cat = [x | corr | 0], shape (TB, HW, Ctp)
        x2 = x_ref[...].astype(f32).reshape(TB, HW, C)
        cat = jnp.einsum("bmc,bcn->bmn", x2, ztaug_ref[...],
                         preferred_element_type=f32)

        # ---- interior write: sublane-aligned (column offset LPAD=8), lane-dense ----
        pad_ref[:, 1:H + 1, LPAD:LPAD + W, :] = cat.reshape(TB, H, W, Ctp)

        # ---- depthwise 3x3, stride 1, padding 1 (VPU) ----
        # Hoist the sublane-axis (W) window extraction: 3 window reads (kw=1 aligned),
        # then 9 cheap major-axis (H) slices + multiply-adds.
        wd = wd_ref[...]                                     # (9, Ctp)
        acc = None
        for kw in range(3):
            c0 = LPAD - 1 + kw
            win = pad_ref[:, :, c0:c0 + W, :]                # (TB, H+2, W, Ctp)
            for kh in range(3):
                t = kh * 3 + kw
                term = win[:, kh:kh + H, :, :] * wd[t]
                acc = term if acc is None else acc + term

        # ---- pointwise 1x1 (+ folded dw-bias / pw-bias / BN) + ReLU (MXU) ----
        y = jnp.dot(acc.reshape(TB * HW, Ctp), wp_ref[...],
                    preferred_element_type=f32)
        y = jnp.maximum(y + b_ref[0], 0.0)
        o_ref[...] = y.reshape(TB, HW, Cout).astype(o_ref.dtype)

    return kernel


def mobile_correlation_pallas(z, x, dw_w, dw_b, pw_w, pw_b,
                              gamma, beta, mean, var, eps=1e-5):
    """z: (B, Hz, Wz, C), x: (B, H, W, C) -- NHWC, exactly like the PyTorch forward."""
    B, Hz, Wz, C = z.shape
    Bx, H, W, Cx = x.shape
    assert B == Bx and C == Cx
    Nz = Hz * Wz
    Ct = C + Nz
    Cout = pw_w.shape[0]
    f32 = jnp.float32

    # Pad the concat-channel axis to a multiple of 128 (lane-dense; exact since the
    # extra channels are zero everywhere).
    Ctp = ((Ct + 127) // 128) * 128

    # Fuse the channel concat into the correlation matmul:
    #   [x | corr | 0] = x2d @ [I_C | z_flat^T | 0]
    zt = jnp.transpose(z.reshape(B, Nz, C).astype(f32), (0, 2, 1))       # (B, C, Nz)
    eye = jnp.broadcast_to(jnp.eye(C, dtype=f32), (B, C, C))
    ztaug = jnp.concatenate(
        [eye, zt, jnp.zeros((B, C, Ctp - Ct), f32)], axis=-1)            # (B, C, Ctp)

    # Depthwise weights, tap-major, (padded) channels on the lane axis.
    wd = jnp.transpose(dw_w.reshape(Ct, 9).astype(f32), (1, 0))          # (9, Ct)
    wd = jnp.pad(wd, ((0, 0), (0, Ctp - Ct)))                            # (9, Ctp)

    # Fold depthwise bias + pointwise bias + inference-mode BatchNorm:
    #   relu(((dw + bd) @ Wp^T + bp - mu) * s + beta)
    # = relu( dw @ (Wp^T * s) + ((bd @ Wp^T + bp - mu) * s + beta) )
    scale = (gamma / jnp.sqrt(var + eps)).astype(f32)                    # (Cout,)
    wp_t = jnp.transpose(pw_w.reshape(Cout, Ct).astype(f32), (1, 0))     # (Ct, Cout)
    wp_eff = jnp.pad(wp_t * scale[None, :], ((0, Ctp - Ct), (0, 0)))     # (Ctp, Cout)
    b_eff = ((dw_b.astype(f32) @ wp_t) + pw_b.astype(f32)
             - mean.astype(f32)) * scale + beta.astype(f32)
    b_eff = b_eff.reshape(1, Cout)

    TB = _pick_batch_tile(B, H * W)
    LPAD = 8                       # aligned start column of the image interior
    kernel = _make_mobile_corr_kernel(TB, H, W, C, Ctp, Cout, LPAD)

    out = pl.pallas_call(
        kernel,
        out_shape=jax.ShapeDtypeStruct((B, H * W, Cout), x.dtype),
        grid_spec=pltpu.PrefetchScalarGridSpec(
            num_scalar_prefetch=0,
            grid=(B // TB,),
            in_specs=[
                pl.BlockSpec((TB, H, W, C), lambda g: (g, 0, 0, 0)),     # x (NHWC)
                pl.BlockSpec((TB, C, Ctp), lambda g: (g, 0, 0)),         # [I | z^T | 0]
                pl.BlockSpec((9, Ctp), lambda g: (0, 0)),                # depthwise w
                pl.BlockSpec((Ctp, Cout), lambda g: (0, 0)),             # pointwise w (BN folded)
                pl.BlockSpec((1, Cout), lambda g: (0, 0)),               # folded bias
            ],
            out_specs=pl.BlockSpec((TB, H * W, Cout), lambda g: (g, 0, 0)),
            scratch_shapes=[pltpu.VMEM((TB, H + 2, LPAD + W + 1, Ctp), f32)],
        ),
        compiler_params=pltpu.CompilerParams(
            dimension_semantics=("parallel",)),
    )(x, ztaug, wd, wp_eff, b_eff)

    # (B, H*W, Cout) -> (B, H, W, Cout): contiguous reshape; module output is NHWC,
    # so no HBM transpose is needed anywhere.
    return out.reshape(B, H, W, Cout)


def mobile_correlation_reference(z, x, dw_w, dw_b, pw_w, pw_b,
                                 gamma, beta, mean, var, eps=1e-5):
    """Pure-JAX replica of MobileCorrelation.forward (BatchNorm in eval mode)."""
    hi = jax.lax.Precision.HIGHEST
    xc = jnp.transpose(x, (0, 3, 1, 2))          # (B, C, H, W)
    zc = jnp.transpose(z, (0, 3, 1, 2))          # (B, C, Hz, Wz)
    B, C, H, W = xc.shape
    z2 = zc.reshape(B, C, -1)                    # (B, C, Nz)
    s = jnp.matmul(jnp.transpose(z2, (0, 2, 1)), xc.reshape(B, C, -1), precision=hi)
    s = s.reshape(B, -1, H, W)                   # (B, Nz, H, W)
    s = jnp.concatenate([xc, s], axis=1)         # (B, C+Nz, H, W)
    Ct = s.shape[1]
    y = jax.lax.conv_general_dilated(
        s, dw_w, (1, 1), ((1, 1), (1, 1)),
        dimension_numbers=("NCHW", "OIHW", "NCHW"),
        feature_group_count=Ct, precision=hi)
    y = y + dw_b.reshape(1, Ct, 1, 1)
    y = jax.lax.conv_general_dilated(
        y, pw_w, (1, 1), "VALID",
        dimension_numbers=("NCHW", "OIHW", "NCHW"), precision=hi)
    y = y + pw_b.reshape(1, -1, 1, 1)
    inv = gamma / jnp.sqrt(var + eps)
    y = (y - mean.reshape(1, -1, 1, 1)) * inv.reshape(1, -1, 1, 1) + beta.reshape(1, -1, 1, 1)
    y = jnp.maximum(y, 0.0)
    return jnp.transpose(y, (0, 2, 3, 1))        # NHWC


if __name__ == "__main__":
    B = 2
    C = 8              # num_channels
    Hz = Wz = 8        # template 8x8  -> num_corr_channels = 64
    H = W = 16         # search feature map
    Nz = Hz * Wz
    Ct = C + Nz
    eps = 1e-5

    key = jax.random.PRNGKey(0)
    ks = jax.random.split(key, 10)
    z = jax.random.normal(ks[0], (B, Hz, Wz, C), dtype=jnp.float32)
    x = jax.random.normal(ks[1], (B, H, W, C), dtype=jnp.float32)
    dw_w = jax.random.normal(ks[2], (Ct, 1, 3, 3), dtype=jnp.float32) * 0.2
    dw_b = jax.random.normal(ks[3], (Ct,), dtype=jnp.float32) * 0.1
    pw_w = jax.random.normal(ks[4], (C, Ct, 1, 1), dtype=jnp.float32) * 0.1
    pw_b = jax.random.normal(ks[5], (C,), dtype=jnp.float32) * 0.1
    gamma = 1.0 + 0.1 * jax.random.normal(ks[6], (C,), dtype=jnp.float32)
    beta = 0.1 * jax.random.normal(ks[7], (C,), dtype=jnp.float32)
    mean = 0.1 * jax.random.normal(ks[8], (C,), dtype=jnp.float32)
    var = jax.random.uniform(ks[9], (C,), dtype=jnp.float32, minval=0.5, maxval=1.5)

    out = mobile_correlation_pallas(z, x, dw_w, dw_b, pw_w, pw_b,
                                    gamma, beta, mean, var, eps=eps)
    out = jax.block_until_ready(out)

    ref = mobile_correlation_reference(z, x, dw_w, dw_b, pw_w, pw_b,
                                       gamma, beta, mean, var, eps=eps)
    ref = jax.block_until_ready(ref)

    assert out.shape == (B, H, W, C), out.shape
    np.testing.assert_allclose(np.asarray(out), np.asarray(ref), rtol=1e-3, atol=1e-3)
    print("KERNEL_OK")
</pallas_src>

<mosaic_0001>
module attributes {stable_mosaic.version = 11 : i64} {
  func.func @kernel(%arg0: i32, %arg1: memref<2x16x16x8xf32, #tpu.memory_space<vmem>>, %arg2: memref<2x8x128xf32, #tpu.memory_space<vmem>>, %arg3: memref<9x128xf32, #tpu.memory_space<vmem>>, %arg4: memref<128x8xf32, #tpu.memory_space<vmem>>, %arg5: memref<1x8xf32, #tpu.memory_space<vmem>>, %arg6: memref<2x256x8xf32, #tpu.memory_space<vmem>>, %arg7: memref<2x18x25x128xf32, #tpu.memory_space<vmem>>) attributes {dimension_semantics = [#tpu.dimension_semantics<parallel>], iteration_bounds = array<i64: 1>, scalar_prefetch = 0 : i64, scratch_operands = 1 : i64, tpu.core_type = #tpu.core_type<tc>, window_params = [{transform_indices = @transform_0, window_bounds = array<i64: 2, 16, 16, 8>}, {transform_indices = @transform_1, window_bounds = array<i64: 2, 8, 128>}, {pipeline_mode = #tpu.pipeline_mode<synchronous>, transform_indices = @transform_2, window_bounds = array<i64: 9, 128>}, {pipeline_mode = #tpu.pipeline_mode<synchronous>, transform_indices = @transform_3, window_bounds = array<i64: 128, 8>}, {pipeline_mode = #tpu.pipeline_mode<synchronous>, transform_indices = @transform_4, window_bounds = array<i64: 1, 8>}, {transform_indices = @transform_5, window_bounds = array<i64: 2, 256, 8>}]} {
    %cst = arith.constant 0.000000e+00 : f32
    %0 = vector.broadcast %cst : f32 to vector<2x1x25x128xf32>
    %c0 = arith.constant 0 : index
    %c0_0 = arith.constant 0 : index
    %c0_1 = arith.constant 0 : index
    %c0_2 = arith.constant 0 : index
    %1 = vector.load %arg7[%c0, %c0_0, %c0_1, %c0_2] : memref<2x18x25x128xf32, #tpu.memory_space<vmem>>, vector<2x1x25x128xf32>
    tpu.vector_store %arg7[%c0, %c0_0, %c0_1, %c0_2], %0 {strides = array<i32>} : memref<2x18x25x128xf32, #tpu.memory_space<vmem>>, vector<2x1x25x128xf32>,
    %c0_3 = arith.constant 0 : index
    %c17 = arith.constant 17 : index
    %c0_4 = arith.constant 0 : index
    %c0_5 = arith.constant 0 : index
    %2 = vector.load %arg7[%c0_3, %c17, %c0_4, %c0_5] : memref<2x18x25x128xf32, #tpu.memory_space<vmem>>, vector<2x1x25x128xf32>
    tpu.vector_store %arg7[%c0_3, %c17, %c0_4, %c0_5], %0 {strides = array<i32>} : memref<2x18x25x128xf32, #tpu.memory_space<vmem>>, vector<2x1x25x128xf32>,
    %cst_6 = arith.constant 0.000000e+00 : f32
    %3 = vector.broadcast %cst_6 : f32 to vector<2x18x1x128xf32>
    %c0_7 = arith.constant 0 : index
    %c0_8 = arith.constant 0 : index
    %c7 = arith.constant 7 : index
    %c0_9 = arith.constant 0 : index
    %4 = vector.load %arg7[%c0_7, %c0_8, %c7, %c0_9] : memref<2x18x25x128xf32, #tpu.memory_space<vmem>>, vector<2x18x1x128xf32>
    tpu.vector_store %arg7[%c0_7, %c0_8, %c7, %c0_9], %3 {strides = array<i32>} : memref<2x18x25x128xf32, #tpu.memory_space<vmem>>, vector<2x18x1x128xf32>,
    %c0_10 = arith.constant 0 : index
    %c0_11 = arith.constant 0 : index
    %c24 = arith.constant 24 : index
    %c0_12 = arith.constant 0 : index
    %5 = vector.load %arg7[%c0_10, %c0_11, %c24, %c0_12] : memref<2x18x25x128xf32, #tpu.memory_space<vmem>>, vector<2x18x1x128xf32>
    tpu.vector_store %arg7[%c0_10, %c0_11, %c24, %c0_12], %3 {strides = array<i32>} : memref<2x18x25x128xf32, #tpu.memory_space<vmem>>, vector<2x18x1x128xf32>,
    %c0_13 = arith.constant 0 : index
    %c0_14 = arith.constant 0 : index
    %c0_15 = arith.constant 0 : index
    %c0_16 = arith.constant 0 : index
    %6 = vector.load %arg1[%c0_13, %c0_14, %c0_15, %c0_16] : memref<2x16x16x8xf32, #tpu.memory_space<vmem>>, vector<2x16x16x8xf32>
    %7 = vector.shape_cast %6 : vector<2x16x16x8xf32> to vector<2x256x8xf32>
    %c0_17 = arith.constant 0 : index
    %c0_18 = arith.constant 0 : index
    %c0_19 = arith.constant 0 : index
    %8 = vector.load %arg2[%c0_17, %c0_18, %c0_19] : memref<2x8x128xf32, #tpu.memory_space<vmem>>, vector<2x8x128xf32>
    "tpu.trace_start"() <{level = 10 : i32, message = "bmc,bcn->bmn"}> : () -> ()
    %cst_20 = arith.constant dense<0.000000e+00> : vector<2x256x128xf32>
    %9 = tpu.matmul %7, %8, %cst_20 {dimension_numbers = #tpu.dot_dimension_numbers<[2], [1], [1], [2], [0, 0, 0, 1, 1, 2], [0], [0]>} : vector<2x256x8xf32>, vector<2x8x128xf32>, vector<2x256x128xf32> -> vector<2x256x128xf32>
    "tpu.trace_stop"() : () -> ()
    %10 = vector.shape_cast %9 : vector<2x256x128xf32> to vector<2x16x16x128xf32>
    %c0_21 = arith.constant 0 : index
    %c1 = arith.constant 1 : index
    %c8 = arith.constant 8 : index
    %c0_22 = arith.constant 0 : index
    %11 = vector.load %arg7[%c0_21, %c1, %c8, %c0_22] : memref<2x18x25x128xf32, #tpu.memory_space<vmem>>, vector<2x16x16x128xf32>
    tpu.vector_store %arg7[%c0_21, %c1, %c8, %c0_22], %10 {strides = array<i32>} : memref<2x18x25x128xf32, #tpu.memory_space<vmem>>, vector<2x16x16x128xf32>,
    %c0_23 = arith.constant 0 : index
    %c0_24 = arith.constant 0 : index
    %12 = vector.load %arg3[%c0_23, %c0_24] : memref<9x128xf32, #tpu.memory_space<vmem>>, vector<9x128xf32>
    %c0_25 = arith.constant 0 : index
    %c0_26 = arith.constant 0 : index
    %c7_27 = arith.constant 7 : index
    %c0_28 = arith.constant 0 : index
    %13 = vector.load %arg7[%c0_25, %c0_26, %c7_27, %c0_28] : memref<2x18x25x128xf32, #tpu.memory_space<vmem>>, vector<2x18x16x128xf32>
    %14 = vector.extract_strided_slice %13 {offsets = [0, 0, 0, 0], sizes = [2, 16, 16, 128], strides = [1, 1, 1, 1]} : vector<2x18x16x128xf32> to vector<2x16x16x128xf32>
    %15 = vector.extract_strided_slice %12 {offsets = [0, 0], sizes = [1, 128], strides = [1, 1]} : vector<9x128xf32> to vector<1x128xf32>
    %16 = vector.shape_cast %15 : vector<1x128xf32> to vector<128xf32>
    %17 = vector.shape_cast %16 : vector<128xf32> to vector<1x1x1x128xf32>
    %18 = vector.broadcast %17 : vector<1x1x1x128xf32> to vector<2x16x16x128xf32>
    %19 = arith.mulf %14, %18 : vector<2x16x16x128xf32>
    %20 = vector.extract_strided_slice %13 {offsets = [0, 1, 0, 0], sizes = [2, 16, 16, 128], strides = [1, 1, 1, 1]} : vector<2x18x16x128xf32> to vector<2x16x16x128xf32>
    %21 = vector.extract_strided_slice %12 {offsets = [3, 0], sizes = [1, 128], strides = [1, 1]} : vector<9x128xf32> to vector<1x128xf32>
    %22 = vector.shape_cast %21 : vector<1x128xf32> to vector<128xf32>
    %23 = vector.shape_cast %22 : vector<128xf32> to vector<1x1x1x128xf32>
    %24 = vector.broadcast %23 : vector<1x1x1x128xf32> to vector<2x16x16x128xf32>
    %25 = arith.mulf %20, %24 : vector<2x16x16x128xf32>
    %26 = arith.addf %19, %25 : vector<2x16x16x128xf32>
    %27 = vector.extract_strided_slice %13 {offsets = [0, 2, 0, 0], sizes = [2, 16, 16, 128], strides = [1, 1, 1, 1]} : vector<2x18x16x128xf32> to vector<2x16x16x128xf32>
    %28 = vector.extract_strided_slice %12 {offsets = [6, 0], sizes = [1, 128], strides = [1, 1]} : vector<9x128xf32> to vector<1x128xf32>
    %29 = vector.shape_cast %28 : vector<1x128xf32> to vector<128xf32>
    %30 = vector.shape_cast %29 : vector<128xf32> to vector<1x1x1x128xf32>
    %31 = vector.broadcast %30 : vector<1x1x1x128xf32> to vector<2x16x16x128xf32>
    %32 = arith.mulf %27, %31 : vector<2x16x16x128xf32>
    %33 = arith.addf %26, %32 : vector<2x16x16x128xf32>
    %c0_29 = arith.constant 0 : index
    %c0_30 = arith.constant 0 : index
    %c8_31 = arith.constant 8 : index
    %c0_32 = arith.constant 0 : index
    %34 = vector.load %arg7[%c0_29, %c0_30, %c8_31, %c0_32] : memref<2x18x25x128xf32, #tpu.memory_space<vmem>>, vector<2x18x16x128xf32>
    %35 = vector.extract_strided_slice %34 {offsets = [0, 0, 0, 0], sizes = [2, 16, 16, 128], strides = [1, 1, 1, 1]} : vector<2x18x16x128xf32> to vector<2x16x16x128xf32>
    %36 = vector.extract_strided_slice %12 {offsets = [1, 0], sizes = [1, 128], strides = [1, 1]} : vector<9x128xf32> to vector<1x128xf32>
    %37 = vector.shape_cast %36 : vector<1x128xf32> to vector<128xf32>
    %38 = vector.shape_cast %37 : vector<128xf32> to vector<1x1x1x128xf32>
    %39 = vector.broadcast %38 : vector<1x1x1x128xf32> to vector<2x16x16x128xf32>
    %40 = arith.mulf %35, %39 : vector<2x16x16x128xf32>
    %41 = arith.addf %33, %40 : vector<2x16x16x128xf32>
    %42 = vector.extract_strided_slice %34 {offsets = [0, 1, 0, 0], sizes = [2, 16, 16, 128], strides = [1, 1, 1, 1]} : vector<2x18x16x128xf32> to vector<2x16x16x128xf32>
    %43 = vector.extract_strided_slice %12 {offsets = [4, 0], sizes = [1, 128], strides = [1, 1]} : vector<9x128xf32> to vector<1x128xf32>
    %44 = vector.shape_cast %43 : vector<1x128xf32> to vector<128xf32>
    %45 = vector.shape_cast %44 : vector<128xf32> to vector<1x1x1x128xf32>
    %46 = vector.broadcast %45 : vector<1x1x1x128xf32> to vector<2x16x16x128xf32>
    %47 = arith.mulf %42, %46 : vector<2x16x16x128xf32>
    %48 = arith.addf %41, %47 : vector<2x16x16x128xf32>
    %49 = vector.extract_strided_slice %34 {offsets = [0, 2, 0, 0], sizes = [2, 16, 16, 128], strides = [1, 1, 1, 1]} : vector<2x18x16x128xf32> to vector<2x16x16x128xf32>
    %50 = vector.extract_strided_slice %12 {offsets = [7, 0], sizes = [1, 128], strides = [1, 1]} : vector<9x128xf32> to vector<1x128xf32>
    %51 = vector.shape_cast %50 : vector<1x128xf32> to vector<128xf32>
    %52 = vector.shape_cast %51 : vector<128xf32> to vector<1x1x1x128xf32>
    %53 = vector.broadcast %52 : vector<1x1x1x128xf32> to vector<2x16x16x128xf32>
    %54 = arith.mulf %49, %53 : vector<2x16x16x128xf32>
    %55 = arith.addf %48, %54 : vector<2x16x16x128xf32>
    %c0_33 = arith.constant 0 : index
    %c0_34 = arith.constant 0 : index
    %c9 = arith.constant 9 : index
    %c0_35 = arith.constant 0 : index
    %56 = vector.load %arg7[%c0_33, %c0_34, %c9, %c0_35] : memref<2x18x25x128xf32, #tpu.memory_space<vmem>>, vector<2x18x16x128xf32>
    %57 = vector.extract_strided_slice %56 {offsets = [0, 0, 0, 0], sizes = [2, 16, 16, 128], strides = [1, 1, 1, 1]} : vector<2x18x16x128xf32> to vector<2x16x16x128xf32>
    %58 = vector.extract_strided_slice %12 {offsets = [2, 0], sizes = [1, 128], strides = [1, 1]} : vector<9x128xf32> to vector<1x128xf32>
    %59 = vector.shape_cast %58 : vector<1x128xf32> to vector<128xf32>
    %60 = vector.shape_cast %59 : vector<128xf32> to vector<1x1x1x128xf32>
    %61 = vector.broadcast %60 : vector<1x1x1x128xf32> to vector<2x16x16x128xf32>
    %62 = arith.mulf %57, %61 : vector<2x16x16x128xf32>
    %63 = arith.addf %55, %62 : vector<2x16x16x128xf32>
    %64 = vector.extract_strided_slice %56 {offsets = [0, 1, 0, 0], sizes = [2, 16, 16, 128], strides = [1, 1, 1, 1]} : vector<2x18x16x128xf32> to vector<2x16x16x128xf32>
    %65 = vector.extract_strided_slice %12 {offsets = [5, 0], sizes = [1, 128], strides = [1, 1]} : vector<9x128xf32> to vector<1x128xf32>
    %66 = vector.shape_cast %65 : vector<1x128xf32> to vector<128xf32>
    %67 = vector.shape_cast %66 : vector<128xf32> to vector<1x1x1x128xf32>
    %68 = vector.broadcast %67 : vector<1x1x1x128xf32> to vector<2x16x16x128xf32>
    %69 = arith.mulf %64, %68 : vector<2x16x16x128xf32>
    %70 = arith.addf %63, %69 : vector<2x16x16x128xf32>
    %71 = vector.extract_strided_slice %56 {offsets = [0, 2, 0, 0], sizes = [2, 16, 16, 128], strides = [1, 1, 1, 1]} : vector<2x18x16x128xf32> to vector<2x16x16x128xf32>
    %72 = vector.extract_strided_slice %12 {offsets = [8, 0], sizes = [1, 128], strides = [1, 1]} : vector<9x128xf32> to vector<1x128xf32>
    %73 = vector.shape_cast %72 : vector<1x128xf32> to vector<128xf32>
    %74 = vector.shape_cast %73 : vector<128xf32> to vector<1x1x1x128xf32>
    %75 = vector.broadcast %74 : vector<1x1x1x128xf32> to vector<2x16x16x128xf32>
    %76 = arith.mulf %71, %75 : vector<2x16x16x128xf32>
    %77 = arith.addf %70, %76 : vector<2x16x16x128xf32>
    %78 = vector.shape_cast %77 : vector<2x16x16x128xf32> to vector<512x128xf32>
    %c0_36 = arith.constant 0 : index
    %c0_37 = arith.constant 0 : index
    %79 = vector.load %arg4[%c0_36, %c0_37] : memref<128x8xf32, #tpu.memory_space<vmem>>, vector<128x8xf32>
    %cst_38 = arith.constant dense<0.000000e+00> : vector<512x8xf32>
    %80 = tpu.matmul %78, %79, %cst_38 {dimension_numbers = #tpu.dot_dimension_numbers<[1], [0], [0], [1], [0, 0, 1, 1], [], []>} : vector<512x128xf32>, vector<128x8xf32>, vector<512x8xf32> -> vector<512x8xf32>
    %c0_39 = arith.constant 0 : index
    %c0_40 = arith.constant 0 : index
    %81 = vector.load %arg5[%c0_39, %c0_40] : memref<1x8xf32, #tpu.memory_space<vmem>>, vector<1x8xf32>
    %82 = vector.shape_cast %81 : vector<1x8xf32> to vector<8xf32>
    %83 = vector.shape_cast %82 : vector<8xf32> to vector<1x8xf32>
    %84 = vector.broadcast %83 : vector<1x8xf32> to vector<512x8xf32>
    %85 = arith.addf %80, %84 : vector<512x8xf32>
    %cst_41 = arith.constant 0.000000e+00 : f32
    %86 = vector.broadcast %cst_41 : f32 to vector<512x8xf32>
    %87 = arith.maximumf %85, %86 : vector<512x8xf32>
    %88 = vector.shape_cast %87 : vector<512x8xf32> to vector<2x256x8xf32>
    %c0_42 = arith.constant 0 : index
    %c0_43 = arith.constant 0 : index
    %c0_44 = arith.constant 0 : index
    %89 = vector.load %arg6[%c0_42, %c0_43, %c0_44] : memref<2x256x8xf32, #tpu.memory_space<vmem>>, vector<2x256x8xf32>
    tpu.vector_store %arg6[%c0_42, %c0_43, %c0_44], %88 {strides = array<i32>} : memref<2x256x8xf32, #tpu.memory_space<vmem>>, vector<2x256x8xf32>,
    return
  }
  func.func @transform_0(%arg0: i32) -> (i32, i32, i32, i32) {
    %c0_i32 = arith.constant 0 : i32
    %c0_i32_0 = arith.constant 0 : i32
    %c0_i32_1 = arith.constant 0 : i32
    %c0_i32_2 = arith.constant 0 : i32
    return %arg0, %c0_i32, %c0_i32_0, %c0_i32_1 : i32, i32, i32, i32
  }
  func.func @transform_1(%arg0: i32) -> (i32, i32, i32) {
    %c0_i32 = arith.constant 0 : i32
    %c0_i32_0 = arith.constant 0 : i32
    %c0_i32_1 = arith.constant 0 : i32
    return %arg0, %c0_i32, %c0_i32_0 : i32, i32, i32
  }
  func.func @transform_2(%arg0: i32) -> (i32, i32) {
    %c0_i32 = arith.constant 0 : i32
    %c0_i32_0 = arith.constant 0 : i32
    %c0_i32_1 = arith.constant 0 : i32
    return %c0_i32, %c0_i32_0 : i32, i32
  }
  func.func @transform_3(%arg0: i32) -> (i32, i32) {
    %c0_i32 = arith.constant 0 : i32
    %c0_i32_0 = arith.constant 0 : i32
    %c0_i32_1 = arith.constant 0 : i32
    return %c0_i32, %c0_i32_0 : i32, i32
  }
  func.func @transform_4(%arg0: i32) -> (i32, i32) {
    %c0_i32 = arith.constant 0 : i32
    %c0_i32_0 = arith.constant 0 : i32
    %c0_i32_1 = arith.constant 0 : i32
    return %c0_i32, %c0_i32_0 : i32, i32
  }
  func.func @transform_5(%arg0: i32) -> (i32, i32, i32) {
    %c0_i32 = arith.constant 0 : i32
    %c0_i32_0 = arith.constant 0 : i32
    %c0_i32_1 = arith.constant 0 : i32
    return %arg0, %c0_i32, %c0_i32_0 : i32, i32, i32
  }
}

</mosaic_0001>

<bundles_post_ra>
// kernel: tpu_custom_call.1
= control target key start
LH: loop header
LB: loop body
LE: loop exit
PB: predicated region body
PF: predicated region fallthrough
CT: control target
= control target key end

     0   :  { %vm175_vm0 = vcmask 64512   ;;  %v2454_v28 = vmov 0.0   ;;  %s4944_s1 = inlined_call_operand.vmem [shape: f32[2,8,128], index: 1, kind: input, shape index: {}]   ;;  %s4945_s0 = inlined_call_operand.vmem [shape: f32[2,16,16,8], index: 0, kind: input, shape index: {}]   ;;  %s4946_s2 = inlined_call_operand.vmem [shape: f32[9,128], index: 2, kind: input, shape index: {}]   ;;  %s4947_s3 = inlined_call_operand.vmem [shape: f32[128,8], index: 3, kind: input, shape index: {}]   ;;  %s4948_s4 = inlined_call_operand.vmem [shape: f32[1,8], index: 4, kind: input, shape index: {}]   ;;  %s4949_s5 = inlined_call_operand.vmem [shape: f32[2,256,8], index: 5, kind: output, shape index: {}]  }
   0x1   :  { %v173_v0 = vld [vmem:[%s4944_s1] sm:$0xff]  ;;  %v174_v1 = vld [vmem:[%s4944_s1 + $0x8] sm:$0xff]  ;;  %v111_v6 = vld [vmem:[%s4945_s0 + $0x10] sm:$0xff]  ;;  %25 = vst [vmem:[#allocation2 + $0x248] sm:$0xff] %v2454_v28 }
   0x2   :  { %v109_v2 = vld [vmem:[%s4945_s0] sm:$0xff]  ;;  %287 = vmatpush.msra.mxu0 %v173_v0  ;;  %496 = vmatpush.msra.mxu1 %v174_v1  ;;  %v110_v4 = vld [vmem:[%s4945_s0 + $0x8] sm:$0xff]  ;;  %v143_v7 = vld [vmem:[%s4945_s0 + $0x110] sm:$0xff]  ;;  %26 = vst [vmem:[#allocation2 + $0x250] sm:$0xff] %v2454_v28 }
   0x3   :  { %v141_v3 = vld [vmem:[%s4945_s0 + $0x100] sm:$0xff]  ;;  %2335 = vmatmul.msk.f32.vlgmr.msra.gmra.mxu0 %vm175_vm0, %v109_v2  ;;  %v142_v5 = vld [vmem:[%s4945_s0 + $0x108] sm:$0xff]  ;;  %v112_v8 = vld [vmem:[%s4945_s0 + $0x18] sm:$0xff]  ;;  %27 = vst [vmem:[#allocation2 + $0x258] sm:$0x1] %v2454_v28 }
   0x4   :  { %2367 = vmatmul.msk.f32.vlgmr.msra.gmra.mxu1 %vm175_vm0, %v141_v3  ;;  %v144_v9 = vld [vmem:[%s4945_s0 + $0x118] sm:$0xff]  ;;  %v113_v10 = vld [vmem:[%s4945_s0 + $0x20] sm:$0xff]  ;;  %v114_v12 = vld [vmem:[%s4945_s0 + $0x28] sm:$0xff]  ;;  %91 = vst [vmem:[#allocation2 + $0x258] sm:$0x1] %v2454_v28 }
   0x5   :  { %v145_v11 = vld [vmem:[%s4945_s0 + $0x120] sm:$0xff]  ;;  %v146_v13 = vld [vmem:[%s4945_s0 + $0x128] sm:$0xff]  ;;  %v115_v14 = vld [vmem:[%s4945_s0 + $0x30] sm:$0xff]  ;;  %92 = vst [vmem:[#allocation2 + $0x278] sm:$0x1] %v2454_v28 }
   0x6   :  { %v147_v15 = vld [vmem:[%s4945_s0 + $0x130] sm:$0xff]  ;;  %v116_v16 = vld [vmem:[%s4945_s0 + $0x38] sm:$0xff]  ;;  %v117_v18 = vld [vmem:[%s4945_s0 + $0x40] sm:$0xff]  ;;  %93 = vst [vmem:[#allocation2 + $0x298] sm:$0x1] %v2454_v28 }
   0x7   :  { %v148_v17 = vld [vmem:[%s4945_s0 + $0x138] sm:$0xff]  ;;  %v149_v19 = vld [vmem:[%s4945_s0 + $0x140] sm:$0xff]  ;;  %v118_v20 = vld [vmem:[%s4945_s0 + $0x48] sm:$0xff]  ;;  %20 = vst [vmem:[#allocation2] sm:$0xff] %v2454_v28 }
   0x8   :  { %v150_v21 = vld [vmem:[%s4945_s0 + $0x148] sm:$0xff]  ;;  %v119_v22 = vld [vmem:[%s4945_s0 + $0x50] sm:$0xff]  ;;  %v120_v24 = vld [vmem:[%s4945_s0 + $0x58] sm:$0xff]  ;;  %21 = vst [vmem:[#allocation2 + $0x8] sm:$0xff] %v2454_v28 }
   0x9   :  { %v151_v23 = vld [vmem:[%s4945_s0 + $0x150] sm:$0xff]  ;;  %v152_v25 = vld [vmem:[%s4945_s0 + $0x158] sm:$0xff]  ;;  %v121_v26 = vld [vmem:[%s4945_s0 + $0x60] sm:$0xff]  ;;  %22 = vst [vmem:[#allocation2 + $0x10] sm:$0xff] %v2454_v28 }
   0xa   :  { %v153_v27 = vld [vmem:[%s4945_s0 + $0x160] sm:$0xff]  ;;  %v122_v29 = vld [vmem:[%s4945_s0 + $0x68] sm:$0xff]  ;;  %23 = vst [vmem:[#allocation2 + $0x18] sm:$0x1] %v2454_v28  ;;  %v123_v31 = vld [vmem:[%s4945_s0 + $0x70] sm:$0xff] }
   0xb   :  { %2336 = vmatmul.msk.f32.gmra.mxu0 %vm175_vm0, %v110_v4  ;;  %v154_v30 = vld [vmem:[%s4945_s0 + $0x168] sm:$0xff]  ;;  %24 = vst [vmem:[#allocation2 + $0x240] sm:$0xff] %v2454_v28  ;;  %v155_v32 = vld [vmem:[%s4945_s0 + $0x170] sm:$0xff]  ;;  %v1989_v33 = vld [vmem:[%s4947_s3 + $0x78] sm:$0xff] }
   0xc   :  { %2368 = vmatmul.msk.f32.gmra.mxu1 %vm175_vm0, %v142_v5  ;;  %29 = vst [vmem:[#allocation2 + $0x220] sm:$0xff] %v2454_v28  ;;  %v1988_v34 = vld [vmem:[%s4947_s3 + $0x70] sm:$0xff]  ;;  %2400 = vmatpush.msra.mxu3 %v1989_v33  ;;  %v1987_v35 = vld [vmem:[%s4947_s3 + $0x68] sm:$0xff]  ;;  %v124_v36 = vld [vmem:[%s4945_s0 + $0x78] sm:$0xff] }
   0xd   :  { %30 = vst [vmem:[#allocation2 + $0x228] sm:$0xff] %v2454_v28  ;;  %2399 = vmatpush.msra.mxu2 %v1989_v33  ;;  %1994 = vmatpush.msrb.mxu0 %v1989_v33  ;;  %v156_v37 = vld [vmem:[%s4945_s0 + $0x178] sm:$0xff]  ;;  %v1986_v38 = vld [vmem:[%s4947_s3 + $0x60] sm:$0xff]  ;;  %v1984_v40 = vld [vmem:[%s4947_s3 + $0x50] sm:$0xff] }
   0xe   :  { %31 = vst [vmem:[#allocation2 + $0x230] sm:$0xff] %v2454_v28  ;;  %2402 = vmatpush.msra.mxu3 %v1988_v34  ;;  %v1985_v39 = vld [vmem:[%s4947_s3 + $0x58] sm:$0xff]  ;;  %v1983_v41 = vld [vmem:[%s4947_s3 + $0x48] sm:$0xff]  ;;  %v125_v44 = vld [vmem:[%s4945_s0 + $0x80] sm:$0xff] }
   0xf   :  { %32 = vst [vmem:[#allocation2 + $0x238] sm:$0x1] %v2454_v28  ;;  %2401 = vmatpush.msra.mxu2 %v1988_v34  ;;  %1995 = vmatpush.msrb.mxu0 %v1988_v34  ;;  %v157_v45 = vld [vmem:[%s4945_s0 + $0x180] sm:$0xff]  ;;  %v1981_v47 = vld [vmem:[%s4947_s3 + $0x38] sm:$0xff]  ;;  %v1980_v48 = vld [vmem:[%s4947_s3 + $0x30] sm:$0xff] }
  0x10   :  { %33 = vst [vmem:[#allocation2 + $0x460] sm:$0xff] %v2454_v28  ;;  %2404 = vmatpush.msra.mxu3 %v1987_v35  ;;  %v1982_v46 = vld [vmem:[%s4947_s3 + $0x40] sm:$0xff]  ;;  %v1979_v49 = vld [vmem:[%s4947_s3 + $0x28] sm:$0xff]  ;;  %v1977_v55 = vld [vmem:[%s4947_s3 + $0x18] sm:$0xff] }
  0x11   :  { %34 = vst [vmem:[#allocation2 + $0x468] sm:$0xff] %v2454_v28  ;;  %2403 = vmatpush.msra.mxu2 %v1987_v35  ;;  %1996 = vmatpush.msrb.mxu0 %v1987_v35  ;;  %v126_v52 = vld [vmem:[%s4945_s0 + $0x88] sm:$0xff]  ;;  %v1978_v54 = vld [vmem:[%s4947_s3 + $0x20] sm:$0xff]  ;;  %v1976_v56 = vld [vmem:[%s4947_s3 + $0x10] sm:$0xff] }
  0x12   :  { %35 = vst [vmem:[#allocation2 + $0x470] sm:$0xff] %v2454_v28  ;;  %2406 = vmatpush.msra.mxu3 %v1986_v38  ;;  %v158_v53 = vld [vmem:[%s4945_s0 + $0x188] sm:$0xff]  ;;  %v127_v60 = vld [vmem:[%s4945_s0 + $0x90] sm:$0xff]  ;;  %v1974_v62 = vld [vmem:[%s4947_s3] sm:$0xff] }
  0x13   :  { %2337 = vmatmul.msk.f32.gmra.mxu0 %vm175_vm0, %v111_v6  ;;  %36 = vst [vmem:[#allocation2 + $0x478] sm:$0x1] %v2454_v28  ;;  %2405 = vmatpush.msra.mxu2 %v1986_v38  ;;  %v1975_v57 = vld [vmem:[%s4947_s3 + $0x8] sm:$0xff]  ;;  %v159_v61 = vld [vmem:[%s4945_s0 + $0x190] sm:$0xff]  ;;  %v128_v1 = vld [vmem:[%s4945_s0 + $0x98] sm:$0xff] }
  0x14   :  { %2369 = vmatmul.msk.f32.gmra.mxu1 %vm175_vm0, %v143_v7  ;;  %38 = vst [vmem:[#allocation2 + $0x27] sm:$0x1] %v2454_v28  ;;  %2408 = vmatpush.msra.mxu3 %v1985_v39  ;;  %v160_v2 = vld [vmem:[%s4945_s0 + $0x198] sm:$0xff]  ;;  %v659_v3 = vld [vmem:[%s4946_s2] sm:$0xff]  ;;  %v698_v4 = vld [vmem:[#allocation2 + $0x24f] sm:$0xff] }
  0x15   :  { %39 = vst [vmem:[#allocation2 + $0x47] sm:$0x1] %v2454_v28  ;;  %2407 = vmatpush.msra.mxu2 %v1985_v39  ;;  %1997 = vmatpush.msrb.mxu0 %v1986_v38  ;;  %v2779_v6 = vperm.slane %v659_v3, 0  ;;  %v2781_v7 = vperm.slane %v659_v3, 3  ;;  %v162_v33 = vld [vmem:[%s4945_s0 + $0x1a8] sm:$0xff] }
  0x16   :  { %40 = vst [vmem:[#allocation2 + $0x67] sm:$0x1] %v2454_v28  ;;  %2410 = vmatpush.msra.mxu3 %v1984_v40 }
  0x17   :  { %41 = vst [vmem:[#allocation2 + $0x87] sm:$0x1] %v2454_v28  ;;  %2409 = vmatpush.msra.mxu2 %v1984_v40  ;;  %1998 = vmatpush.msrb.mxu0 %v1985_v39 }
  0x18   :  { %42 = vst [vmem:[#allocation2 + $0xa7] sm:$0x1] %v2454_v28  ;;  %2412 = vmatpush.msra.mxu3 %v1983_v41 }
  0x19   :  { %43 = vst [vmem:[#allocation2 + $0xc7] sm:$0x1] %v2454_v28  ;;  %2411 = vmatpush.msra.mxu2 %v1983_v41  ;;  %1999 = vmatpush.msrb.mxu0 %v1984_v40 }
  0x1a   :  { %44 = vst [vmem:[#allocation2 + $0xe7] sm:$0x1] %v2454_v28  ;;  %2414 = vmatpush.msra.mxu3 %v1982_v46 }
  0x1b   :  { %2338 = vmatmul.msk.f32.gmra.mxu0 %vm175_vm0, %v112_v8  ;;  %45 = vst [vmem:[#allocation2 + $0x107] sm:$0x1] %v2454_v28  ;;  %2413 = vmatpush.msra.mxu2 %v1982_v46  ;;  %v767_v8 = vmul.f32 %v2779_v6, %v698_v4 }
  0x1c   :  { %2370 = vmatmul.msk.f32.gmra.mxu1 %vm175_vm0, %v144_v9  ;;  %46 = vst [vmem:[#allocation2 + $0x127] sm:$0x1] %v2454_v28  ;;  %2416 = vmatpush.msra.mxu3 %v1981_v47 }
  0x1d   :  { %47 = vst [vmem:[#allocation2 + $0x147] sm:$0x1] %v2454_v28  ;;  %2415 = vmatpush.msra.mxu2 %v1981_v47  ;;  %2000 = vmatpush.msrb.mxu0 %v1983_v41 }
  0x1e   :  { %48 = vst [vmem:[#allocation2 + $0x167] sm:$0x1] %v2454_v28  ;;  %2418 = vmatpush.msra.mxu3 %v1980_v48 }
  0x1f   :  { %49 = vst [vmem:[#allocation2 + $0x187] sm:$0x1] %v2454_v28  ;;  %2417 = vmatpush.msra.mxu2 %v1980_v48  ;;  %2001 = vmatpush.msrb.mxu0 %v1982_v46 }
  0x20   :  { %50 = vst [vmem:[#allocation2 + $0x1a7] sm:$0x1] %v2454_v28  ;;  %2420 = vmatpush.msra.mxu3 %v1979_v49 }
  0x21   :  { %51 = vst [vmem:[#allocation2 + $0x1c7] sm:$0x1] %v2454_v28  ;;  %2419 = vmatpush.msra.mxu2 %v1979_v49  ;;  %2002 = vmatpush.msrb.mxu0 %v1981_v47 }
  0x22   :  { %52 = vst [vmem:[#allocation2 + $0x1e7] sm:$0x1] %v2454_v28  ;;  %2422 = vmatpush.msra.mxu3 %v1978_v54 }
  0x23   :  { %2339 = vmatmul.msk.f32.gmra.mxu0 %vm175_vm0, %v113_v10  ;;  %53 = vst [vmem:[#allocation2 + $0x207] sm:$0x1] %v2454_v28  ;;  %2421 = vmatpush.msra.mxu2 %v1978_v54 }
  0x24   :  { %2371 = vmatmul.msk.f32.gmra.mxu1 %vm175_vm0, %v145_v11  ;;  %56 = vst [vmem:[#allocation2 + $0x267] sm:$0x1] %v2454_v28  ;;  %2424 = vmatpush.msra.mxu3 %v1977_v55 }
  0x25   :  { %57 = vst [vmem:[#allocation2 + $0x287] sm:$0x1] %v2454_v28  ;;  %2423 = vmatpush.msra.mxu2 %v1977_v55  ;;  %2003 = vmatpush.msrb.mxu0 %v1980_v48 }
  0x26   :  { %58 = vst [vmem:[#allocation2 + $0x2a7] sm:$0x1] %v2454_v28  ;;  %2426 = vmatpush.msra.mxu3 %v1976_v56 }
  0x27   :  { %59 = vst [vmem:[#allocation2 + $0x2c7] sm:$0x1] %v2454_v28  ;;  %2425 = vmatpush.msra.mxu2 %v1976_v56  ;;  %2004 = vmatpush.msrb.mxu0 %v1979_v49 }
  0x28   :  { %60 = vst [vmem:[#allocation2 + $0x2e7] sm:$0x1] %v2454_v28  ;;  %2428 = vmatpush.msra.mxu3 %v1975_v57 }
  0x29   :  { %61 = vst [vmem:[#allocation2 + $0x307] sm:$0x1] %v2454_v28  ;;  %2427 = vmatpush.msra.mxu2 %v1975_v57  ;;  %2005 = vmatpush.msrb.mxu0 %v1978_v54 }
  0x2a   :  { %62 = vst [vmem:[#allocation2 + $0x327] sm:$0x1] %v2454_v28  ;;  %2430 = vmatpush.msra.mxu3 %v1974_v62 }
  0x2b   :  { %2340 = vmatmul.msk.f32.gmra.mxu0 %vm175_vm0, %v114_v12  ;;  %63 = vst [vmem:[#allocation2 + $0x347] sm:$0x1] %v2454_v28  ;;  %2429 = vmatpush.msra.mxu2 %v1974_v62  ;;  %v129_v12 = vld [vmem:[%s4945_s0 + $0xa0] sm:$0xff] }
  0x2c   :  { %2372 = vmatmul.msk.f32.gmra.mxu1 %vm175_vm0, %v146_v13  ;;  %64 = vst [vmem:[#allocation2 + $0x367] sm:$0x1] %v2454_v28  ;;  %2006 = vmatpush.msrb.mxu0 %v1977_v55  ;;  %v161_v13 = vld [vmem:[%s4945_s0 + $0x1a0] sm:$0xff] }
  0x2d   :  { %65 = vst [vmem:[#allocation2 + $0x387] sm:$0x1] %v2454_v28 }
  0x2e   :  { %66 = vst [vmem:[#allocation2 + $0x3a7] sm:$0x1] %v2454_v28  ;;  %2007 = vmatpush.msrb.mxu0 %v1976_v56 }
  0x2f   :  { %67 = vst [vmem:[#allocation2 + $0x3c7] sm:$0x1] %v2454_v28 }
  0x30   :  { %68 = vst [vmem:[#allocation2 + $0x3e7] sm:$0x1] %v2454_v28  ;;  %2008 = vmatpush.msrb.mxu0 %v1975_v57 }
  0x31   :  { %69 = vst [vmem:[#allocation2 + $0x407] sm:$0x1] %v2454_v28 }
  0x32   :  { %70 = vst [vmem:[#allocation2 + $0x427] sm:$0x1] %v2454_v28  ;;  %2009 = vmatpush.msrb.mxu0 %v1974_v62 }
  0x33   :  { %2341 = vmatmul.msk.f32.gmra.mxu0 %vm175_vm0, %v115_v14  ;;  %71 = vst [vmem:[#allocation2 + $0x447] sm:$0x1] %v2454_v28  ;;  %v2800_v14 = vperm.slane %v659_v3, 6 }
  0x34   :  { %2373 = vmatmul.msk.f32.gmra.mxu1 %vm175_vm0, %v147_v15  ;;  %74 = vst [vmem:[#allocation2 + $0x38] sm:$0x1] %v2454_v28  ;;  %v2802_v15 = vperm.slane %v659_v3, 1 }
  0x35   :  { %75 = vst [vmem:[#allocation2 + $0x58] sm:$0x1] %v2454_v28 }
  0x36   :  { %76 = vst [vmem:[#allocation2 + $0x78] sm:$0x1] %v2454_v28 }
  0x37   :  { %77 = vst [vmem:[#allocation2 + $0x98] sm:$0x1] %v2454_v28 }
  0x38   :  { %78 = vst [vmem:[#allocation2 + $0xb8] sm:$0x1] %v2454_v28 }
  0x39   :  { %79 = vst [vmem:[#allocation2 + $0xd8] sm:$0x1] %v2454_v28 }
  0x3a   :  { %80 = vst [vmem:[#allocation2 + $0xf8] sm:$0x1] %v2454_v28 }
  0x3b   :  { %2342 = vmatmul.msk.f32.gmra.mxu0 %vm175_vm0, %v116_v16  ;;  %81 = vst [vmem:[#allocation2 + $0x118] sm:$0x1] %v2454_v28 }
  0x3c   :  { %2374 = vmatmul.msk.f32.gmra.mxu1 %vm175_vm0, %v148_v17  ;;  %82 = vst [vmem:[#allocation2 + $0x138] sm:$0x1] %v2454_v28 }
  0x3d   :  { %83 = vst [vmem:[#allocation2 + $0x158] sm:$0x1] %v2454_v28 }
  0x3e   :  { %84 = vst [vmem:[#allocation2 + $0x178] sm:$0x1] %v2454_v28 }
  0x3f   :  { %85 = vst [vmem:[#allocation2 + $0x198] sm:$0x1] %v2454_v28 }
  0x40   :  { %86 = vst [vmem:[#allocation2 + $0x1b8] sm:$0x1] %v2454_v28 }
  0x41   :  { %87 = vst [vmem:[#allocation2 + $0x1d8] sm:$0x1] %v2454_v28 }
  0x42   :  { %88 = vst [vmem:[#allocation2 + $0x1f8] sm:$0x1] %v2454_v28 }
  0x43   :  { %2343 = vmatmul.msk.f32.gmra.mxu0 %vm175_vm0, %v117_v18  ;;  %89 = vst [vmem:[#allocation2 + $0x218] sm:$0x1] %v2454_v28 }
  0x44   :  { %2375 = vmatmul.msk.f32.gmra.mxu1 %vm175_vm0, %v149_v19  ;;  %v1162_v19 = vmul.f32 0.0, %v2802_v15  ;;  %94 = vst [vmem:[#allocation2 + $0x2b8] sm:$0x1] %v2454_v28 }
  0x45   :  { %95 = vst [vmem:[#allocation2 + $0x2d8] sm:$0x1] %v2454_v28 }
  0x46   :  { %96 = vst [vmem:[#allocation2 + $0x2f8] sm:$0x1] %v2454_v28 }
  0x47   :  { %97 = vst [vmem:[#allocation2 + $0x318] sm:$0x1] %v2454_v28 }
  0x48   :  { %98 = vst [vmem:[#allocation2 + $0x338] sm:$0x1] %v2454_v28 }
  0x49   :  { %99 = vst [vmem:[#allocation2 + $0x358] sm:$0x1] %v2454_v28 }
  0x4a   :  { %100 = vst [vmem:[#allocation2 + $0x378] sm:$0x1] %v2454_v28 }
  0x4b   :  { %2344 = vmatmul.msk.f32.gmra.mxu0 %vm175_vm0, %v118_v20  ;;  %101 = vst [vmem:[#allocation2 + $0x398] sm:$0x1] %v2454_v28 }
  0x4c   :  { %2376 = vmatmul.msk.f32.gmra.mxu1 %vm175_vm0, %v150_v21  ;;  %v2815_v21 = vperm.slane %v659_v3, 4  ;;  %102 = vst [vmem:[#allocation2 + $0x3b8] sm:$0x1] %v2454_v28 }
  0x4d   :  { %103 = vst [vmem:[#allocation2 + $0x3d8] sm:$0x1] %v2454_v28 }
  0x4e   :  { %104 = vst [vmem:[#allocation2 + $0x3f8] sm:$0x1] %v2454_v28 }
  0x4f   :  { %105 = vst [vmem:[#allocation2 + $0x418] sm:$0x1] %v2454_v28 }
  0x50   :  { %106 = vst [vmem:[#allocation2 + $0x438] sm:$0x1] %v2454_v28 }
  0x51   :  { %107 = vst [vmem:[#allocation2 + $0x458] sm:$0x1] %v2454_v28 }
  0x52   :  { %37 = vst [vmem:[#allocation2 + $0x7] sm:$0x1] %v2454_v28 }
  0x53   :  { %2345 = vmatmul.msk.f32.gmra.mxu0 %vm175_vm0, %v119_v22  ;;  %v1552_v22 = vld [vmem:[#allocation2 + $0x251] sm:$0xff]  ;;  %54 = vst [vmem:[#allocation2 + $0x227] sm:$0x1] %v2454_v28 }
  0x54   :  { %2377 = vmatmul.msk.f32.gmra.mxu1 %vm175_vm0, %v151_v23  ;;  %55 = vst [vmem:[#allocation2 + $0x247] sm:$0x1] %v2454_v28 }
  0x55   :  { %72 = vst [vmem:[#allocation2 + $0x467] sm:$0x1] %v2454_v28 }
  0x56   :  { %73 = vst [vmem:[#allocation2 + $0x18] sm:$0x1] %v2454_v28 }
  0x57   :  { %90 = vst [vmem:[#allocation2 + $0x238] sm:$0x1] %v2454_v28 }
  0x58   :  { %108 = vst [vmem:[#allocation2 + $0x478] sm:$0x1] %v2454_v28 }
  0x5b   :  { %2346 = vmatmul.msk.f32.gmra.mxu0 %vm175_vm0, %v120_v24 }
  0x5c   :  { %2378 = vmatmul.msk.f32.gmra.mxu1 %vm175_vm0, %v152_v25  ;;  %v2821_v25 = vperm.slane %v659_v3, 7 }
  0x63   :  { %2347 = vmatmul.msk.f32.gmra.mxu0 %vm175_vm0, %v121_v26  ;;  %v2823_v26 = vperm.slane %v659_v3, 2 }
  0x64   :  { %2379 = vmatmul.msk.f32.gmra.mxu1 %vm175_vm0, %v153_v27  ;;  %v130_v27 = vld [vmem:[%s4945_s0 + $0xa8] sm:$0xff] }
  0x65   :  { %5018 = vst [vmem:[#allocation3_spill] sm:$0xff] %v2823_v26 }
  0x6b   :  { %2348 = vmatmul.msk.f32.gmra.mxu0 %vm175_vm0, %v122_v29 }
  0x6c   :  { %2380 = vmatmul.msk.f32.gmra.mxu1 %vm175_vm0, %v154_v30 }
  0x73   :  { %2349 = vmatmul.msk.f32.gmra.mxu0 %vm175_vm0, %v123_v31 }
  0x74   :  { %2381 = vmatmul.msk.f32.gmra.mxu1 %vm175_vm0, %v155_v32 }
  0x7b   :  { %2350 = vmatmul.msk.f32.gmra.mxu0 %vm175_vm0, %v124_v36  ;;  %v1621_v36 = vmul.f32 %v2823_v26, %v1552_v22 }
  0x7c   :  { %2382 = vmatmul.msk.f32.gmra.mxu1 %vm175_vm0, %v156_v37  ;;  %v2844_v37 = vperm.slane %v659_v3, 5 }
  0x80   :  { %v2671_v42 = vpop.f32.mrf.mxu0 }
  0x81   :  { %v2673_v43 = vpop.f32.mrf.mxu1  ;;  %595 = vst [vmem:[#allocation2 + $0x28] sm:$0xff] %v2671_v42 }
  0x82   :  { %627 = vst [vmem:[#allocation2 + $0x268] sm:$0xff] %v2673_v43  ;;  %v1163_v22 = vmul.f32 %v2802_v15, %v2673_v43  ;;  %v131_v43 = vld [vmem:[%s4945_s0 + $0xb0] sm:$0xff] }
  0x83   :  { %2351 = vmatmul.msk.f32.gmra.mxu0 %vm175_vm0, %v125_v44 }
  0x84   :  { %2383 = vmatmul.msk.f32.gmra.mxu1 %vm175_vm0, %v157_v45 }
  0x88   :  { %v2703_v50 = vpop.f32.mrf.mxu0  ;;  %v2832_v30 = vld [vmem:[#allocation2 + $0x27] sm:$0xff] }
  0x89   :  { %v2705_v51 = vpop.f32.mrf.mxu1  ;;  %596 = vst [vmem:[#allocation2 + $0x30] sm:$0xff] %v2703_v50  ;;  %v736_v41 = vmul.f32 %v2779_v6, %v2832_v30  ;;  %v699_v46 = vld [vmem:[#allocation2 + $0x267] sm:$0xff] }
  0x8a   :  { %628 = vst [vmem:[#allocation2 + $0x270] sm:$0xff] %v2705_v51  ;;  %v1291_v24 = vmul.f32 %v2815_v21, %v2705_v51 }
  0x8b   :  { %2352 = vmatmul.msk.f32.gmra.mxu0 %vm175_vm0, %v126_v52  ;;  %v2868_v52 = vld [vmem:[%s4946_s2 + $0x8] ss:$0 sm:$0xff] }
  0x8c   :  { %2384 = vmatmul.msk.f32.gmra.mxu1 %vm175_vm0, %v158_v53  ;;  %v1131_v53 = vmul.f32 %v2802_v15, %v2671_v42 }
  0x90   :  { %v2735_v58 = vpop.f32.mrf.mxu0  ;;  %v2877_v56 = vld [vmem:[#allocation2 + $0x29] sm:$0xff] }
  0x91   :  { %v2737_v59 = vpop.f32.mrf.mxu1  ;;  %597 = vst [vmem:[#allocation2 + $0x48] sm:$0xff] %v2735_v58  ;;  %v2776_v5 = vld [vmem:[#allocation2 + $0x26f] sm:$0xff] }
  0x92   :  { %629 = vst [vmem:[#allocation2 + $0x288] sm:$0xff] %v2737_v59  ;;  %v832_v9 = vmul.f32 %v2781_v7, %v2776_v5  ;;  %v2829_v29 = vld [vmem:[#allocation2 + $0x271] sm:$0xff] }
  0x93   :  { %2353 = vmatmul.msk.f32.gmra.mxu0 %vm175_vm0, %v127_v60  ;;  %v1750_v49 = vmul.f32 %v2844_v37, %v2829_v29  ;;  %v768_v60 = vmul.f32 %v2779_v6, %v699_v46 }
  0x94   :  { %2385 = vmatmul.msk.f32.gmra.mxu1 %vm175_vm0, %v159_v61  ;;  %v896_v17 = vadd.f32 %v832_v9, %v767_v8  ;;  %v1260_v9 = vmul.f32 %v2815_v21, %v2735_v58 }
  0x98   :  { %v2758_v63 = vpop.f32.mrf.mxu0  ;;  %v2847_v38 = vld [vmem:[#allocation2 + $0x47] sm:$0xff] }
  0x99   :  { %v2760_v0 = vpop.f32.mrf.mxu1  ;;  %598 = vst [vmem:[#allocation2 + $0x50] sm:$0xff] %v2758_v63  ;;  %v801_v44 = vmul.f32 %v2781_v7, %v2847_v38  ;;  %v2860_v47 = vld [vmem:[#allocation2 + $0x287] sm:$0xff] }
  0x9a   :  { %630 = vst [vmem:[#allocation2 + $0x290] sm:$0xff] %v2760_v0  ;;  %v1420_v35 = vmul.f32 %v2821_v25, %v2760_v0  ;;  %v833_v61 = vmul.f32 %v2781_v7, %v2860_v47 }
  0x9b   :  { %2354 = vmatmul.msk.f32.gmra.mxu0 %vm175_vm0, %v128_v1  ;;  %v865_v55 = vadd.f32 %v801_v44, %v736_v41  ;;  %v163_v44 = vld [vmem:[%s4945_s0 + $0x1b0] sm:$0xff] }
  0x9c   :  { %2386 = vmatmul.msk.f32.gmra.mxu1 %vm175_vm0, %v160_v2  ;;  %v2889_v2 = vmul.f32 %v2815_v21, %v2671_v42 }
  0x9e   :  { %5020 = vst [vmem:[#allocation5_spill] sm:$0xff] %v2889_v2 }
  0xa0   :  { %v2790_v10 = vpop.f32.mrf.mxu0  ;;  %v2879_v57 = vld [vmem:[#allocation2 + $0x49] sm:$0xff] }
  0xa1   :  { %v2792_v11 = vpop.f32.mrf.mxu1  ;;  %599 = vst [vmem:[#allocation2 + $0x68] sm:$0xff] %v2790_v10  ;;  %v2806_v16 = vld [vmem:[#allocation2 + $0x28f] sm:$0xff] }
  0xa2   :  { %631 = vst [vmem:[#allocation2 + $0x2a8] sm:$0xff] %v2792_v11  ;;  %v961_v18 = vmul.f32 %v2800_v14, %v2806_v16  ;;  %v2852_v40 = vld [vmem:[#allocation2 + $0x291] sm:$0xff]  ;;  %v771_v28 = vmul.f32 %v2779_v6, %v2806_v16 }
  0xa3   :  { %2355 = vmatmul.msk.f32.gmra.mxu0 %vm175_vm0, %v129_v12  ;;  %v1879_v1 = vmul.f32 %v2868_v52, %v2852_v40  ;;  %v2893_v4 = vld [vmem:[#allocation2 + $0x4f] sm:$0xff]  ;;  %v1389_v12 = vmul.f32 %v2821_v25, %v2790_v10 }
  0xa4   :  { %2387 = vmatmul.msk.f32.gmra.mxu1 %vm175_vm0, %v161_v13  ;;  %v1025_v20 = vadd.f32 %v961_v18, %v896_v17  ;;  %v897_v13 = vadd.f32 %v833_v61, %v768_v60  ;;  %v1553_v17 = vld [vmem:[#allocation2 + $0x269] sm:$0xff]  ;;  %v1132_v61 = vmul.f32 %v2802_v15, %v2703_v50 }
  0xa5   :  { %v2900_v18 = vld [vmem:[#allocation2 + $0x2f] sm:$0xff]  ;;  %v1622_v46 = vmul.f32 %v2823_v26, %v1553_v17 }
  0xa6   :  { %v1226_v23 = vadd.f32 %v1162_v19, %v1025_v20  ;;  %v1590_v19 = vmul.f32 %v2823_v26, %v2877_v56  ;;  %v1719_v20 = vmul.f32 %v2844_v37, %v2879_v57 }
  0xa8   :  { %v2834_v31 = vpop.f32.mrf.mxu0  ;;  %v1355_v34 = vadd.f32 %v1291_v24, %v1226_v23  ;;  %v2849_v39 = vld [vmem:[#allocation2 + $0x67] sm:$0xff] }
  0xa9   :  { %v2836_v32 = vpop.f32.mrf.mxu1  ;;  %5019 = vst [vmem:[#allocation4_spill] sm:$0xff] %v2849_v39  ;;  %v930_v45 = vmul.f32 %v2800_v14, %v2849_v39  ;;  %v2872_v54 = vld [vmem:[#allocation2 + $0x2a7] sm:$0xff] }
  0xaa   :  { %600 = vst [vmem:[#allocation2 + $0x70] sm:$0xff] %v2834_v31  ;;  %v1484_v48 = vadd.f32 %v1420_v35, %v1355_v34  ;;  %v962_v3 = vmul.f32 %v2800_v14, %v2872_v54  ;;  %v2909_v23 = vld [vmem:[#allocation2 + $0x289] sm:$0xff]  ;;  %v802_v34 = vmul.f32 %v2781_v7, %v2893_v4 }
  0xab   :  { %632 = vst [vmem:[#allocation2 + $0x2b0] sm:$0xff] %v2836_v32  ;;  %2356 = vmatmul.msk.f32.gmra.mxu0 %vm175_vm0, %v130_v27  ;;  %v994_v8 = vadd.f32 %v930_v45, %v865_v55  ;;  %v1421_v45 = vmul.f32 %v2821_v25, %v2792_v11  ;;  %v1751_v60 = vmul.f32 %v2844_v37, %v2909_v23 }
  0xac   :  { %2388 = vmatmul.msk.f32.gmra.mxu1 %vm175_vm0, %v162_v33  ;;  %v1685_v62 = vadd.f32 %v1621_v36, %v1484_v48  ;;  %v1026_v27 = vadd.f32 %v962_v3, %v897_v13  ;;  %v1292_v33 = vmul.f32 %v2815_v21, %v2737_v59  ;;  %v1518_v13 = vld [vmem:[#allocation2 + $0x31] sm:$0xff] }
  0xad   :  { %v1195_v24 = vadd.f32 %v1131_v53, %v994_v8 }
  0xae   :  { %v1814_v42 = vadd.f32 %v1750_v49, %v1685_v62  ;;  %v737_v49 = vmul.f32 %v2779_v6, %v2900_v18  ;;  %v1227_v55 = vadd.f32 %v1163_v22, %v1026_v27  ;;  %v1390_v22 = vmul.f32 %v2821_v25, %v2834_v31 }
  0xaf   :  { %v1324_v53 = vadd.f32 %v1260_v9, %v1195_v24  ;;  %v1261_v9 = vmul.f32 %v2815_v21, %v2758_v63  ;;  %v2955_v24 = vld [vmem:[#allocation2 + $0x51] sm:$0xff] }
  0xb0   :  { %v2916_v35 = vpop.f32.mrf.mxu0  ;;  %v1943_v41 = vadd.f32 %v1879_v1, %v1814_v42  ;;  %v866_v3 = vadd.f32 %v802_v34, %v737_v49  ;;  %v1356_v17 = vadd.f32 %v1292_v33, %v1227_v55 }
  0xb1   :  { %5021 = vst [vmem:[#allocation6_spill] sm:$0xff] %v2916_v35  ;;  %v2918_v36 = vpop.f32.mrf.mxu1  ;;  %v2930_v48 = vld [vmem:[#allocation2 + $0x6f] sm:$0xff]  ;;  %v1453_v50 = vadd.f32 %v1389_v12, %v1324_v53  ;;  %v1591_v53 = vmul.f32 %v2823_v26, %v1518_v13 }
  0xb2   :  { %5022 = vst [vmem:[#allocation7_spill] sm:$0xff] %v2918_v36  ;;  %v2939_v62 = vld [vmem:[#allocation2 + $0x2af] sm:$0xff]  ;;  %2109 = vmatmul.f32.vlgmr.msra.gmra.mxu3 %v1943_v41  ;;  %v931_v8 = vmul.f32 %v2800_v14, %v2930_v48  ;;  %v769_v41 = vmul.f32 %v2779_v6, %v2776_v5  ;;  %v1485_v49 = vadd.f32 %v1421_v45, %v1356_v17 }
  0xb3   :  { %601 = vst [vmem:[#allocation2 + $0x88] sm:$0xff] %v2916_v35  ;;  %v2942_v1 = vld [vmem:[#allocation2 + $0x69] sm:$0xff]  ;;  %2357 = vmatmul.msk.f32.gmra.mxu0 %vm175_vm0, %v131_v43  ;;  %v2958_v34 = vld [vmem:[#allocation2 + $0x71] sm:$0xff]  ;;  %v834_v43 = vmul.f32 %v2781_v7, %v2806_v16  ;;  %v963_v12 = vmul.f32 %v2800_v14, %v2939_v62  ;;  %v1654_v33 = vadd.f32 %v1590_v19, %v1453_v50 }
  0xb4   :  { %633 = vst [vmem:[#allocation2 + $0x2c8] sm:$0xff] %v2918_v36  ;;  %2389 = vmatmul.msk.f32.gmra.mxu1 %vm175_vm0, %v163_v44  ;;  %v2951_v42 = vld [vmem:[#allocation2 + $0x2a9] sm:$0xff]  ;;  %v995_v27 = vadd.f32 %v931_v8, %v866_v3  ;;  %v1848_v44 = vmul.f32 %v2868_v52, %v2942_v1  ;;  %v1720_v3 = vmul.f32 %v2844_v37, %v2955_v24 }
  0xb5   :  { %v1880_v5 = vmul.f32 %v2868_v52, %v2951_v42  ;;  %v898_v8 = vadd.f32 %v834_v43, %v769_v41  ;;  %v1783_v2 = vadd.f32 %v1719_v20, %v1654_v33  ;;  %v1686_v19 = vadd.f32 %v1622_v46, %v1485_v49  ;;  %v164_v49 = vld [vmem:[%s4945_s0 + $0x1b8] sm:$0xff] }
  0xb6   :  { %v1196_v55 = vadd.f32 %v1132_v61, %v995_v27  ;;  %v1849_v50 = vmul.f32 %v2868_v52, %v2958_v34  ;;  %v1164_v45 = vmul.f32 %v2802_v15, %v2705_v51  ;;  %v132_v61 = vld [vmem:[%s4945_s0 + $0xb8] sm:$0xff]  ;;  %v738_v46 = vmul.f32 %v2779_v6, %v2847_v38 }
  0xb7   :  { %v1027_v41 = vadd.f32 %v963_v12, %v898_v8  ;;  %v803_v51 = vmul.f32 %v2781_v7, %v2849_v39  ;;  %v1912_v43 = vadd.f32 %v1848_v44, %v1783_v2  ;;  %v1815_v33 = vadd.f32 %v1751_v60, %v1686_v19 }
  0xb8   :  { %v2981_v13 = vpop.f32.mrf.mxu0  ;;  %v1325_v27 = vadd.f32 %v1261_v9, %v1196_v55  ;;  %v1293_v9 = vmul.f32 %v2815_v21, %v2760_v0  ;;  %v1422_v8 = vmul.f32 %v2821_v25, %v2836_v32  ;;  %v1623_v60 = vmul.f32 %v2823_v26, %v2829_v29 }
  0xb9   :  { %5023 = vst [vmem:[#allocation8_spill] sm:$0xff] %v2981_v13  ;;  %v2983_v17 = vpop.f32.mrf.mxu1  ;;  %v1228_v55 = vadd.f32 %v1164_v45, %v1027_v41  ;;  %v867_v39 = vadd.f32 %v803_v51, %v738_v46  ;;  %2016 = vmatmul.f32.vlgmr.msra.gmra.mxu2 %v1912_v43  ;;  %v1944_v2 = vadd.f32 %v1880_v5, %v1815_v33  ;;  %v3023_v46 = vld [vmem:[#allocation2 + $0x2b1] sm:$0xff] }
  0xba   :  { %v2988_v20 = vld [vmem:[#allocation2 + $0x87] sm:$0xff]  ;;  %v1454_v38 = vadd.f32 %v1390_v22, %v1325_v27  ;;  %v1133_v44 = vmul.f32 %v2802_v15, %v2735_v58  ;;  %v1262_v5 = vmul.f32 %v2815_v21, %v2790_v10  ;;  %v770_v29 = vmul.f32 %v2779_v6, %v2860_v47  ;;  %5026 = vst [vmem:[#allocation11_spill] sm:$0xff] %v3023_v46 }
  0xbb   :  { %5024 = vst [vmem:[#allocation9_spill] sm:$0xff] %v2988_v20  ;;  %v932_v12 = vmul.f32 %v2800_v14, %v2988_v20  ;;  %2358 = vmatmul.msk.f32.gmra.mxu0 %vm175_vm0, %v132_v61  ;;  %v3011_v19 = vld [vmem:[#allocation2 + $0x2c7] sm:$0xff]  ;;  %v1357_v45 = vadd.f32 %v1293_v9, %v1228_v55  ;;  %2112 = vmatmul.f32.gmra.mxu3 %v1944_v2 }
  0xbc   :  { %5025 = vst [vmem:[#allocation10_spill] sm:$0xff] %v3011_v19  ;;  %2390 = vmatmul.msk.f32.gmra.mxu1 %vm175_vm0, %v164_v49  ;;  %v1655_v22 = vadd.f32 %v1591_v53, %v1454_v38  ;;  %v835_v58 = vmul.f32 %v2781_v7, %v2872_v54  ;;  %v3030_v51 = vmul.f32 %v2781_v7, %v2832_v30  ;;  %v133_v30 = vld [vmem:[%s4945_s0 + $0xc0] sm:$0xff] }
  0xbd   :  { %v996_v27 = vadd.f32 %v932_v12, %v867_v39  ;;  %v1486_v41 = vadd.f32 %v1422_v8, %v1357_v45  ;;  %v964_v39 = vmul.f32 %v2800_v14, %v3011_v19  ;;  %v3034_v47 = vmul.f32 %v2844_v37, %v2877_v56  ;;  %602 = vst [vmem:[#allocation2 + $0x90] sm:$0xff] %v2981_v13 }
  0xbe   :  { %v1784_v61 = vadd.f32 %v1720_v3, %v1655_v22  ;;  %5027 = vst [vmem:[#allocation12_spill] sm:$0xff] %v3030_v51  ;;  %v1752_v3 = vmul.f32 %v2844_v37, %v2852_v40  ;;  %v899_v43 = vadd.f32 %v835_v58, %v770_v29  ;;  %v1391_v56 = vmul.f32 %v2821_v25, %v2916_v35 }
  0xbf   :  { %v1197_v53 = vadd.f32 %v1133_v44, %v996_v27  ;;  %5028 = vst [vmem:[#allocation13_spill] sm:$0xff] %v3034_v47  ;;  %v1687_v12 = vadd.f32 %v1623_v60, %v1486_v41  ;;  %v3051_v55 = vmul.f32 %v2781_v7, %v2900_v18  ;;  %v1881_v8 = vmul.f32 %v2868_v52, %v3023_v46 }
  0xc0   :  { %v3039_v33 = vpop.f32.mrf.mxu0  ;;  %v1913_v9 = vadd.f32 %v1849_v50, %v1784_v61  ;;  %v165_v50 = vld [vmem:[%s4945_s0 + $0x1c0] sm:$0xff]  ;;  %v1028_v2 = vadd.f32 %v964_v39, %v899_v43  ;;  %v1165_v60 = vmul.f32 %v2802_v15, %v2737_v59  ;;  %v1592_v45 = vmul.f32 %v2823_v26, %v2879_v57  ;;  %634 = vst [vmem:[#allocation2 + $0x2d0] sm:$0xff] %v2983_v17 }
  0xc1   :  { %5029 = vst [vmem:[#allocation14_spill] sm:$0xff] %v3039_v33  ;;  %v3041_v49 = vpop.f32.mrf.mxu1  ;;  %v1326_v38 = vadd.f32 %v1262_v5, %v1197_v53  ;;  %v1816_v44 = vadd.f32 %v1752_v3, %v1687_v12  ;;  %v1721_v18 = vmul.f32 %v2844_v37, %v2942_v1  ;;  %v1294_v5 = vmul.f32 %v2815_v21, %v2792_v11 }
  0xc2   :  { %5030 = vst [vmem:[#allocation15_spill] sm:$0xff] %v3041_v49  ;;  %2019 = vmatmul.f32.gmra.mxu2 %v1913_v9  ;;  %v1229_v27 = vadd.f32 %v1165_v60, %v1028_v2  ;;  %v804_v59 = vmul.f32 %v2781_v7, %v2930_v48  ;;  %v1423_v58 = vmul.f32 %v2821_v25, %v2918_v36  ;;  %v166_v60 = vld [vmem:[%s4945_s0 + $0x1c8] sm:$0xff] }
  0xc3   :  { %5031 = vst [vmem:[#allocation16_spill] sm:$0xff] %v3051_v55  ;;  %v1455_v22 = vadd.f32 %v1391_v56, %v1326_v38  ;;  %2359 = vmatmul.msk.f32.gmra.mxu0 %vm175_vm0, %v133_v30  ;;  %v1945_v29 = vadd.f32 %v1881_v8, %v1816_v44  ;;  %v1624_v41 = vmul.f32 %v2823_v26, %v2909_v23  ;;  %v134_v56 = vld [vmem:[%s4945_s0 + $0xc8] sm:$0xff] }
  0xc4   :  { %2391 = vmatmul.msk.f32.gmra.mxu1 %vm175_vm0, %v165_v50  ;;  %v1358_v61 = vadd.f32 %v1294_v5, %v1229_v27  ;;  %v739_v53 = vmul.f32 %v2779_v6, %v2893_v4  ;;  %v836_v39 = vmul.f32 %v2781_v7, %v2939_v62  ;;  %v1753_v3 = vmul.f32 %v2844_v37, %v2951_v42  ;;  %v5033_v5 = vld [vmem:[#allocation4_spill] sm:$0xff]  ;;  %v3207_v55 = vld [vmem:[#allocation2 + $0x91] sm:$0xff] }
  0xc5   :  { %v1656_v57 = vadd.f32 %v1592_v45, %v1455_v22  ;;  %2115 = vmatmul.f32.gmra.mxu3 %v1945_v29  ;;  %v3087_v43 = vmul.f32 %v2802_v15, %v2758_v63  ;;  %v3091_v9 = vmul.f32 %v2815_v21, %v2834_v31  ;;  %v3096_v12 = vmul.f32 %v2821_v25, %v2981_v13 }
  0xc6   :  { %v1487_v4 = vadd.f32 %v1423_v58, %v1358_v61  ;;  %v868_v23 = vadd.f32 %v804_v59, %v739_v53  ;;  %v3110_v8 = vmul.f32 %v2823_v26, %v2955_v24  ;;  %v3114_v50 = vmul.f32 %v2844_v37, %v2958_v34  ;;  %603 = vst [vmem:[#allocation2 + $0xa8] sm:$0xff] %v3039_v33 }
  0xc7   :  { %v1785_v38 = vadd.f32 %v1721_v18, %v1656_v57  ;;  %v3118_v16 = vmul.f32 %v2802_v15, %v2760_v0  ;;  %v900_v44 = vadd.f32 %v836_v39, %v771_v28  ;;  %v3126_v24 = vmul.f32 %v2815_v21, %v2836_v32  ;;  %635 = vst [vmem:[#allocation2 + $0x2e8] sm:$0xff] %v3041_v49  ;;  %v3175_v28 = vld [vmem:[#allocation2 + $0x8f] sm:$0xff] }
  0xc8   :  { %v3101_v30 = vpop.f32.mrf.mxu0  ;;  %v1688_v2 = vadd.f32 %v1624_v41, %v1487_v4  ;;  %v805_v22 = vmul.f32 %v2781_v7, %v2988_v20  ;;  %v3133_v0 = vmul.f32 %v2821_v25, %v2983_v17  ;;  %v3137_v45 = vmul.f32 %v2823_v26, %v2852_v40  ;;  %v3173_v4 = vld [vmem:[#allocation2 + $0x89] sm:$0xff] }
  0xc9   :  { %5032 = vst [vmem:[#allocation17_spill] sm:$0xff] %v3101_v30  ;;  %v3103_v63 = vpop.f32.mrf.mxu1  ;;  %v3141_v18 = vmul.f32 %v2844_v37, %v3023_v46  ;;  %v837_v27 = vmul.f32 %v2781_v7, %v3011_v19  ;;  %v740_v59 = vmul.f32 %v2779_v6, %v5033_v5  ;;  %v1135_v29 = vmul.f32 %v2802_v15, %v2790_v10  ;;  %v661_v5 = vld [vmem:[#allocation2 + $0x7] sm:$0xff] }
  0xca   :  { %604 = vst [vmem:[#allocation2 + $0xb0] sm:$0xff] %v3101_v30  ;;  %v3153_v40 = vmul.f32 %v2815_v21, %v2916_v35  ;;  %v3159_v57 = vmul.f32 %v2821_v25, %v3039_v33  ;;  %v3163_v58 = vmul.f32 %v2823_v26, %v2942_v1  ;;  %v772_v61 = vmul.f32 %v2779_v6, %v2872_v54  ;;  %v167_v33 = vld [vmem:[%s4945_s0 + $0x1d0] sm:$0xff] }
  0xcb   :  { %2360 = vmatmul.msk.f32.gmra.mxu0 %vm175_vm0, %v134_v56  ;;  %636 = vst [vmem:[#allocation2 + $0x2f0] sm:$0xff] %v3103_v63  ;;  %v1817_v10 = vadd.f32 %v1753_v3, %v1688_v2  ;;  %v869_v41 = vadd.f32 %v805_v22, %v740_v59  ;;  %v1167_v53 = vmul.f32 %v2802_v15, %v2792_v11  ;;  %v3189_v2 = vld [vmem:[#allocation2 + $0x2c9] sm:$0xff] }
  0xcc   :  { %2392 = vmatmul.msk.f32.gmra.mxu1 %vm175_vm0, %v166_v60  ;;  %v3171_v39 = vmul.f32 %v2815_v21, %v2918_v36  ;;  %v901_v56 = vadd.f32 %v837_v27, %v772_v61  ;;  %v3179_v1 = vmul.f32 %v2821_v25, %v3041_v49  ;;  %v3183_v54 = vmul.f32 %v2823_v26, %v2951_v42  ;;  %v3193_v22 = vld [vmem:[#allocation2 + $0x2cf] sm:$0xff] }
  0xcd   :  { %v741_v11 = vmul.f32 %v2779_v6, %v2930_v48  ;;  %v1850_v3 = vmul.f32 %v2868_v52, %v3173_v4  ;;  %v933_v60 = vmul.f32 %v2800_v14, %v3175_v28  ;;  %v1136_v27 = vmul.f32 %v2802_v15, %v2834_v31  ;;  %v135_v31 = vld [vmem:[%s4945_s0 + $0xd0] sm:$0xff]  ;;  %v3214_v51 = vld [vmem:[#allocation2 + $0xa7] sm:$0xff] }
  0xce   :  { %v3199_v42 = vmul.f32 %v2815_v21, %v2981_v13  ;;  %v1882_v48 = vmul.f32 %v2868_v52, %v3189_v2  ;;  %v965_v47 = vmul.f32 %v2800_v14, %v3193_v22  ;;  %v3218_v13 = vmul.f32 %v2821_v25, %v3101_v30  ;;  %v3230_v46 = vld [vmem:[#allocation2 + $0x2e7] sm:$0xff] }
  0xcf   :  { %v3222_v49 = vmul.f32 %v2823_v26, %v2958_v34  ;;  %v1914_v36 = vadd.f32 %v1850_v3, %v1785_v38  ;;  %v997_v19 = vadd.f32 %v933_v60, %v868_v23  ;;  %v934_v35 = vmul.f32 %v2800_v14, %v3214_v51  ;;  %v3245_v26 = vld [vmem:[#allocation2 + $0x2d1] sm:$0xff] }
  0xd0   :  { %v3203_v59 = vpop.f32.mrf.mxu0  ;;  %v806_v30 = vmul.f32 %v2781_v7, %v3175_v28  ;;  %v1946_v20 = vadd.f32 %v1882_v48, %v1817_v10  ;;  %v1029_v34 = vadd.f32 %v965_v47, %v900_v44  ;;  %v966_v38 = vmul.f32 %v2800_v14, %v3230_v46 }
  0xd1   :  { %5034 = vst [vmem:[#allocation4_spill] sm:$0xff] %v3203_v59  ;;  %v3205_v61 = vpop.f32.mrf.mxu1  ;;  %v3237_v23 = vld [vmem:[#allocation2 + $0xaf] sm:$0xff]  ;;  %v3240_v3 = vmul.f32 %v2779_v6, %v661_v5  ;;  %2022 = vmatmul.f32.gmra.mxu2 %v1914_v36  ;;  %v1198_v60 = vadd.f32 %v3087_v43, %v997_v19  ;;  %v998_v10 = vadd.f32 %v934_v35, %v869_v41 }
  0xd2   :  { %605 = vst [vmem:[#allocation2 + $0xc8] sm:$0xff] %v3203_v59  ;;  %v1851_v59 = vmul.f32 %v2868_v52, %v3207_v55  ;;  %2118 = vmatmul.f32.gmra.mxu3 %v1946_v20  ;;  %v1230_v47 = vadd.f32 %v3118_v16, %v1029_v34  ;;  %v1723_v44 = vmul.f32 %v2844_v37, %v3173_v4  ;;  %v3282_v34 = vld [vmem:[#allocation2 + $0xa9] sm:$0xff] }
  0xd3   :  { %637 = vst [vmem:[#allocation2 + $0x308] sm:$0xff] %v3205_v61  ;;  %2361 = vmatmul.msk.f32.gmra.mxu0 %vm175_vm0, %v135_v31  ;;  %v1030_v5 = vadd.f32 %v966_v38, %v901_v56  ;;  %v1327_v36 = vadd.f32 %v3091_v9, %v1198_v60  ;;  %v1199_v19 = vadd.f32 %v1135_v29, %v998_v10 }
  0xd4   :  { %5035 = vst [vmem:[#allocation18_spill] sm:$0xff] %v3240_v3  ;;  %2393 = vmatmul.msk.f32.gmra.mxu1 %vm175_vm0, %v167_v33  ;;  %v870_v43 = vadd.f32 %v806_v30, %v741_v11  ;;  %v935_v48 = vmul.f32 %v2800_v14, %v3237_v23  ;;  %v3255_v3 = vld [vmem:[#allocation2 + $0x2ef] sm:$0xff]  ;;  %v1359_v35 = vadd.f32 %v3126_v24, %v1230_v47 }
  0xd5   :  { %v1883_v20 = vmul.f32 %v2868_v52, %v3245_v26  ;;  %v1231_v16 = vadd.f32 %v1167_v53, %v1030_v5  ;;  %v773_v33 = vmul.f32 %v2779_v6, %v2939_v62  ;;  %v1456_v41 = vadd.f32 %v3096_v12, %v1327_v36  ;;  %v136_v62 = vld [vmem:[%s4945_s0 + $0xd8] sm:$0xff] }
  0xd6   :  { %v1328_v9 = vadd.f32 %v3153_v40, %v1199_v19  ;;  %v999_v29 = vadd.f32 %v935_v48, %v870_v43  ;;  %v838_v30 = vmul.f32 %v2781_v7, %v3193_v22  ;;  %v1488_v56 = vadd.f32 %v3133_v0, %v1359_v35  ;;  %v3296_v19 = vld [vmem:[#allocation2 + $0x2e9] sm:$0xff] }
  0xd7   :  { %v1360_v31 = vadd.f32 %v3171_v39, %v1231_v16  ;;  %v1755_v53 = vmul.f32 %v2844_v37, %v3189_v2  ;;  %v967_v12 = vmul.f32 %v2800_v14, %v3255_v3  ;;  %v1657_v40 = vadd.f32 %v3110_v8, %v1456_v41  ;;  %v168_v39 = vld [vmem:[%s4945_s0 + $0x1d8] sm:$0xff] }
  0xd8   :  { %v3267_v11 = vpop.f32.mrf.mxu0  ;;  %v1457_v0 = vadd.f32 %v3159_v57, %v1328_v9  ;;  %v1200_v38 = vadd.f32 %v1136_v27, %v999_v29  ;;  %v902_v60 = vadd.f32 %v838_v30, %v773_v33  ;;  %v1689_v10 = vadd.f32 %v3137_v45, %v1488_v56  ;;  %v3308_v16 = vld [vmem:[#allocation2 + $0xb1] sm:$0xff] }
  0xd9   :  { %v3269_v24 = vpop.f32.mrf.mxu1  ;;  %606 = vst [vmem:[#allocation2 + $0xd0] sm:$0xff] %v3267_v11  ;;  %v1489_v47 = vadd.f32 %v3179_v1, %v1360_v31  ;;  %v1724_v8 = vmul.f32 %v2844_v37, %v3207_v55  ;;  %v1168_v57 = vmul.f32 %v2802_v15, %v2836_v32  ;;  %v1786_v5 = vadd.f32 %v3114_v50, %v1657_v40  ;;  %v3310_v33 = vld [vmem:[#allocation2 + $0xc7] sm:$0xff]  ;;  %v3316_v29 = vld [vmem:[#allocation2 + $0x2f1] sm:$0xff] }
  0xda   :  { %638 = vst [vmem:[#allocation2 + $0x310] sm:$0xff] %v3269_v24  ;;  %v1658_v36 = vadd.f32 %v3163_v58, %v1457_v0  ;;  %v1329_v45 = vadd.f32 %v3199_v42, %v1200_v38  ;;  %v1031_v27 = vadd.f32 %v967_v12, %v902_v60  ;;  %v1818_v43 = vadd.f32 %v3141_v18, %v1689_v10  ;;  %v5038_v12 = vld [vmem:[#allocation3_spill] sm:$0xff] }
  0xdb   :  { %2362 = vmatmul.msk.f32.gmra.mxu0 %vm175_vm0, %v136_v62  ;;  %v1852_v1 = vmul.f32 %v2868_v52, %v3282_v34  ;;  %v1690_v48 = vadd.f32 %v3183_v54, %v1489_v47  ;;  %v1297_v32 = vmul.f32 %v2815_v21, %v2983_v17  ;;  %v1915_v50 = vadd.f32 %v1851_v59, %v1786_v5  ;;  %v5037_v62 = vld [vmem:[#allocation11_spill] sm:$0xff] }
  0xdc   :  { %2394 = vmatmul.msk.f32.gmra.mxu1 %vm175_vm0, %v168_v39  ;;  %v1787_v58 = vadd.f32 %v1723_v44, %v1658_v36  ;;  %v1458_v35 = vadd.f32 %v3218_v13, %v1329_v45  ;;  %v1232_v42 = vadd.f32 %v1168_v57, %v1031_v27  ;;  %v1947_v18 = vadd.f32 %v1883_v20, %v1818_v43  ;;  %v5036_v13 = vld [vmem:[#allocation9_spill] sm:$0xff]  ;;  %v137_v0 = vld [vmem:[%s4945_s0 + $0xe0] sm:$0xff]  ;;  %v5039_v27 = vld [vmem:[#allocation6_spill] sm:$0xff] }
  0xdd   :  { %v1819_v41 = vadd.f32 %v1755_v53, %v1690_v48  ;;  %v1884_v9 = vmul.f32 %v2868_v52, %v3296_v19  ;;  %v1426_v54 = vmul.f32 %v2821_v25, %v3103_v63  ;;  %2025 = vmatmul.f32.gmra.mxu2 %v1915_v50  ;;  %v742_v30 = vmul.f32 %v2779_v6, %v5036_v13  ;;  %v169_v47 = vld [vmem:[%s4945_s0 + $0x1e0] sm:$0xff] }
  0xde   :  { %v1659_v59 = vadd.f32 %v3222_v49, %v1458_v35  ;;  %v1361_v44 = vadd.f32 %v1297_v32, %v1232_v42  ;;  %v807_v56 = vmul.f32 %v2781_v7, %v3214_v51  ;;  %2121 = vmatmul.f32.gmra.mxu3 %v1947_v18  ;;  %v1853_v53 = vmul.f32 %v2868_v52, %v3308_v16  ;;  %v3344_v5 = vld [vmem:[#allocation2 + $0x307] sm:$0xff]  ;;  %v5041_v35 = vld [vmem:[#allocation10_spill] sm:$0xff] }
  0xdf   :  { %v1627_v40 = vmul.f32 %v5038_v12, %v5037_v62  ;;  %v1756_v49 = vmul.f32 %v2844_v37, %v3245_v26  ;;  %v936_v39 = vmul.f32 %v2800_v14, %v3310_v33  ;;  %v1916_v38 = vadd.f32 %v1852_v1, %v1787_v58  ;;  %v5040_v1 = vld [vmem:[#allocation14_spill] sm:$0xff] }
  0xe0   :  { %v3323_v20 = vpop.f32.mrf.mxu0  ;;  %v1490_v60 = vadd.f32 %v1426_v54, %v1361_v44  ;;  %v1885_v10 = vmul.f32 %v2868_v52, %v3316_v29  ;;  %v871_v57 = vadd.f32 %v807_v56, %v742_v30  ;;  %v1948_v36 = vadd.f32 %v1884_v9, %v1819_v41  ;;  %v3351_v32 = vld [vmem:[#allocation2 + $0xc9] sm:$0xff] }
  0xe1   :  { %v3325_v31 = vpop.f32.mrf.mxu1  ;;  %607 = vst [vmem:[#allocation2 + $0xe8] sm:$0xff] %v3323_v20  ;;  %v1788_v45 = vadd.f32 %v1724_v8, %v1659_v59  ;;  %v1137_v43 = vmul.f32 %v2802_v15, %v5039_v27  ;;  %v1266_v48 = vmul.f32 %v2815_v21, %v5040_v1  ;;  %v774_v42 = vmul.f32 %v2779_v6, %v5041_v35  ;;  %v5042_v8 = vld [vmem:[#allocation4_spill] sm:$0xff]  ;;  %v5044_v27 = vld [vmem:[#allocation15_spill] sm:$0xff] }
  0xe2   :  { %639 = vst [vmem:[#allocation2 + $0x328] sm:$0xff] %v3325_v31  ;;  %v1691_v50 = vadd.f32 %v1627_v40, %v1490_v60  ;;  %v1000_v58 = vadd.f32 %v936_v39, %v871_v57  ;;  %v839_v18 = vmul.f32 %v2781_v7, %v3230_v46  ;;  %v1395_v41 = vmul.f32 %v2821_v25, %v5042_v8  ;;  %v3367_v44 = vld [vmem:[#allocation2 + $0xcf] sm:$0xff] }
  0xe3   :  { %2363 = vmatmul.msk.f32.gmra.mxu0 %vm175_vm0, %v137_v0  ;;  %v1596_v9 = vmul.f32 %v5038_v12, %v3173_v4  ;;  %v1725_v54 = vmul.f32 %v2844_v37, %v3282_v34  ;;  %v968_v59 = vmul.f32 %v2800_v14, %v3344_v5  ;;  %v3371_v56 = vmul.f32 %v2868_v52, %v3351_v32  ;;  %v5043_v0 = vld [vmem:[#allocation7_spill] sm:$0xff]  ;;  %v3375_v4 = vld [vmem:[#allocation2 + $0x309] sm:$0xff] }
  0xe4   :  { %2395 = vmatmul.msk.f32.gmra.mxu1 %vm175_vm0, %v169_v47  ;;  %v1820_v13 = vadd.f32 %v1756_v49, %v1691_v50  ;;  %v1201_v30 = vadd.f32 %v1137_v43, %v1000_v58  ;;  %v903_v62 = vadd.f32 %v839_v18, %v774_v42  ;;  %v1917_v40 = vadd.f32 %v1853_v53, %v1788_v45  ;;  %v3398_v42 = vld [vmem:[#allocation2 + $0x30f] sm:$0xff] }
  0xe5   :  { %v1169_v39 = vmul.f32 %v2802_v15, %v5043_v0  ;;  %v743_v60 = vmul.f32 %v2779_v6, %v3175_v28  ;;  %v808_v47 = vmul.f32 %v2781_v7, %v3237_v23  ;;  %2028 = vmatmul.f32.gmra.mxu2 %v1916_v38  ;;  %v1298_v43 = vmul.f32 %v2815_v21, %v5044_v27  ;;  %v5046_v0 = vld [vmem:[#allocation8_spill] sm:$0xff] }
  0xe6   :  { %v1330_v49 = vadd.f32 %v1266_v48, %v1201_v30  ;;  %v1032_v57 = vadd.f32 %v968_v59, %v903_v62  ;;  %v937_v53 = vmul.f32 %v2800_v14, %v3367_v44  ;;  %2124 = vmatmul.f32.gmra.mxu3 %v1948_v36  ;;  %v1427_v28 = vmul.f32 %v2821_v25, %v3205_v61  ;;  %v138_v48 = vld [vmem:[%s4945_s0 + $0xe8] sm:$0xff] }
  0xe7   :  { %v1628_v58 = vmul.f32 %v5038_v12, %v3189_v2  ;;  %v1757_v38 = vmul.f32 %v2844_v37, %v3296_v19  ;;  %v872_v35 = vadd.f32 %v808_v47, %v743_v60  ;;  %v1949_v36 = vadd.f32 %v1885_v10, %v1820_v13  ;;  %v170_v2 = vld [vmem:[%s4945_s0 + $0x1e8] sm:$0xff]  ;;  %v3409_v47 = vld [vmem:[#allocation2 + $0xd1] sm:$0xff] }
  0xe8   :  { %v3385_v45 = vpop.f32.mrf.mxu0  ;;  %v1459_v18 = vadd.f32 %v1395_v41, %v1330_v49  ;;  %v1233_v59 = vadd.f32 %v1169_v39, %v1032_v57  ;;  %v1886_v30 = vmul.f32 %v2868_v52, %v3375_v4  ;;  %v1138_v60 = vmul.f32 %v2802_v15, %v5046_v0  ;;  %5047 = vst [vmem:[#allocation11_spill] sm:$0xff] %v3409_v47  ;;  %v5048_v49 = vld [vmem:[#allocation17_spill] sm:$0xff] }
  0xe9   :  { %v3387_v50 = vpop.f32.mrf.mxu1  ;;  %608 = vst [vmem:[#allocation2 + $0xf0] sm:$0xff] %v3385_v45  ;;  %v1001_v62 = vadd.f32 %v937_v53, %v872_v35  ;;  %v775_v10 = vmul.f32 %v2779_v6, %v3193_v22  ;;  %v840_v41 = vmul.f32 %v2781_v7, %v3255_v3  ;;  %v1267_v57 = vmul.f32 %v2815_v21, %v5048_v49 }
  0xea   :  { %5045 = vst [vmem:[#allocation9_spill] sm:$0xff] %v3387_v50  ;;  %v1660_v13 = vadd.f32 %v1596_v9, %v1459_v18  ;;  %v1362_v39 = vadd.f32 %v1298_v43, %v1233_v59  ;;  %v969_v53 = vmul.f32 %v2800_v14, %v3398_v42  ;;  %v1396_v0 = vmul.f32 %v2821_v25, %v3267_v11  ;;  %v3425_v9 = vld [vmem:[#allocation2 + $0xe7] sm:$0xff] }
  0xeb   :  { %640 = vst [vmem:[#allocation2 + $0x330] sm:$0xff] %v3387_v50  ;;  %2364 = vmatmul.msk.f32.gmra.mxu0 %vm175_vm0, %v138_v48  ;;  %v1202_v35 = vadd.f32 %v1138_v60, %v1001_v62  ;;  %v1597_v22 = vmul.f32 %v5038_v12, %v3207_v55  ;;  %v904_v50 = vadd.f32 %v840_v41, %v775_v10  ;;  %v3437_v10 = vld [vmem:[#allocation2 + $0x311] sm:$0xff] }
  0xec   :  { %2396 = vmatmul.msk.f32.gmra.mxu1 %vm175_vm0, %v170_v2  ;;  %5049 = vst [vmem:[#allocation3_spill] sm:$0xff] %v3425_v9  ;;  %v1491_v43 = vadd.f32 %v1427_v28, %v1362_v39  ;;  %v1726_v48 = vmul.f32 %v2844_v37, %v3308_v16  ;;  %v3431_v18 = vmul.f32 %v2868_v52, %v3409_v47 }
  0xed   :  { %v1170_v59 = vmul.f32 %v2802_v15, %v2983_v17  ;;  %v1789_v2 = vadd.f32 %v1725_v54, %v1660_v13  ;;  %v1331_v62 = vadd.f32 %v1267_v57, %v1202_v35  ;;  %v1033_v60 = vadd.f32 %v969_v53, %v904_v50  ;;  %5050 = vst [vmem:[#allocation6_spill] sm:$0xff] %v3437_v10  ;;  %v171_v35 = vld [vmem:[%s4945_s0 + $0x1f0] sm:$0xff] }
  0xee   :  { %v1299_v55 = vmul.f32 %v2815_v21, %v3103_v63  ;;  %2031 = vmatmul.f32.gmra.mxu2 %v1917_v40  ;;  %v1692_v28 = vadd.f32 %v1628_v58, %v1491_v43  ;;  %v744_v41 = vmul.f32 %v2779_v6, %v3214_v51  ;;  %v809_v39 = vmul.f32 %v2781_v7, %v3310_v33  ;;  %v139_v51 = vld [vmem:[%s4945_s0 + $0xf0] sm:$0xff]  ;;  %v3464_v43 = vld [vmem:[#allocation2 + $0x327] sm:$0xff] }
  0xef   :  { %v938_v47 = vmul.f32 %v2800_v14, %v3425_v9  ;;  %2127 = vmatmul.f32.gmra.mxu3 %v1949_v36  ;;  %v1460_v50 = vadd.f32 %v1396_v0, %v1331_v62  ;;  %v1234_v13 = vadd.f32 %v1170_v59, %v1033_v60  ;;  %v1428_v40 = vmul.f32 %v2821_v25, %v3269_v24 }
  0xf0   :  { %v3445_v17 = vpop.f32.mrf.mxu0  ;;  %v1629_v58 = vmul.f32 %v5038_v12, %v3245_v26  ;;  %v1821_v57 = vadd.f32 %v1757_v38, %v1692_v28  ;;  %v1758_v36 = vmul.f32 %v2844_v37, %v3316_v29  ;;  %v1887_v53 = vmul.f32 %v2868_v52, %v3437_v10 }
  0xf1   :  { %5051 = vst [vmem:[#allocation14_spill] sm:$0xff] %v3445_v17  ;;  %v3447_v54 = vpop.f32.mrf.mxu1  ;;  %v873_v0 = vadd.f32 %v809_v39, %v744_v41  ;;  %v1918_v26 = vadd.f32 %v3371_v56, %v1789_v2  ;;  %v1661_v38 = vadd.f32 %v1597_v22, %v1460_v50  ;;  %v1363_v59 = vadd.f32 %v1299_v55, %v1234_v13 }
  0xf2   :  { %609 = vst [vmem:[#allocation2 + $0x108] sm:$0xff] %v3445_v17  ;;  %v1139_v62 = vmul.f32 %v2802_v15, %v5040_v1  ;;  %v1268_v28 = vmul.f32 %v2815_v21, %v5042_v8  ;;  %v3473_v17 = vld [vmem:[#allocation2 + $0xe9] sm:$0xff]  ;;  %v776_v41 = vmul.f32 %v2779_v6, %v3230_v46  ;;  %v841_v56 = vmul.f32 %v2781_v7, %v3344_v5 }
  0xf3   :  { %641 = vst [vmem:[#allocation2 + $0x348] sm:$0xff] %v3447_v54  ;;  %2365 = vmatmul.msk.f32.gmra.mxu0 %vm175_vm0, %v139_v51  ;;  %v1002_v60 = vadd.f32 %v938_v47, %v873_v0  ;;  %v1950_v2 = vadd.f32 %v1886_v30, %v1821_v57  ;;  %v1492_v22 = vadd.f32 %v1428_v40, %v1363_v59  ;;  %v3486_v46 = vld [vmem:[#allocation2 + $0xef] sm:$0xff] }
  0xf4   :  { %2397 = vmatmul.msk.f32.gmra.mxu1 %vm175_vm0, %v171_v35  ;;  %v1397_v1 = vmul.f32 %v2821_v25, %v3323_v20  ;;  %v970_v47 = vmul.f32 %v2800_v14, %v3464_v43  ;;  %v1790_v55 = vadd.f32 %v1726_v48, %v1661_v38  ;;  %v1598_v50 = vmul.f32 %v5038_v12, %v3282_v34 }
  0xf5   :  { %v1203_v39 = vadd.f32 %v1139_v62, %v1002_v60  ;;  %v905_v13 = vadd.f32 %v841_v56, %v776_v41  ;;  %v1693_v51 = vadd.f32 %v1629_v58, %v1492_v22  ;;  %v1727_v30 = vmul.f32 %v2844_v37, %v3351_v32  ;;  %v3500_v58 = vld [vmem:[#allocation2 + $0x329] sm:$0xff]  ;;  %v172_v22 = vld [vmem:[%s4945_s0 + $0x1f8] sm:$0xff] }
  0xf6   :  { %v3492_v40 = vmul.f32 %v2868_v52, %v3473_v17  ;;  %v1171_v57 = vmul.f32 %v2802_v15, %v5044_v27  ;;  %2034 = vmatmul.f32.gmra.mxu2 %v1918_v26  ;;  %v1300_v34 = vmul.f32 %v2815_v21, %v3205_v61  ;;  %v1429_v0 = vmul.f32 %v2821_v25, %v3325_v31  ;;  %v140_v27 = vld [vmem:[%s4945_s0 + $0xf8] sm:$0xff] }
  0xf7   :  { %v1332_v48 = vadd.f32 %v1268_v28, %v1203_v39  ;;  %v1034_v35 = vadd.f32 %v970_v47, %v905_v13  ;;  %2130 = vmatmul.f32.gmra.mxu3 %v1950_v2  ;;  %v1822_v38 = vadd.f32 %v1758_v36, %v1693_v51  ;;  %v745_v26 = vmul.f32 %v2779_v6, %v3237_v23  ;;  %v3522_v23 = vld [vmem:[#allocation2 + $0x32f] sm:$0xff] }
  0xf8   :  { %v3502_v59 = vpop.f32.mrf.mxu0  ;;  %v810_v60 = vmul.f32 %v2781_v7, %v3367_v44  ;;  %v939_v28 = vmul.f32 %v2800_v14, %v3486_v46  ;;  %v1919_v41 = vadd.f32 %v3431_v18, %v1790_v55  ;;  %v1630_v2 = vmul.f32 %v5038_v12, %v3296_v19 }
  0xf9   :  { %v3504_v62 = vpop.f32.mrf.mxu1  ;;  %610 = vst [vmem:[#allocation2 + $0x110] sm:$0xff] %v3502_v59  ;;  %v1461_v36 = vadd.f32 %v1397_v1, %v1332_v48  ;;  %v1235_v56 = vadd.f32 %v1171_v57, %v1034_v35  ;;  %v1759_v47 = vmul.f32 %v2844_v37, %v3375_v4  ;;  %v1888_v18 = vmul.f32 %v2868_v52, %v3500_v58  ;;  %v3534_v57 = vld [vmem:[#allocation2 + $0xf1] sm:$0xff] }
  0xfa   :  { %5052 = vst [vmem:[#allocation10_spill] sm:$0xff] %v3504_v62  ;;  %v874_v55 = vadd.f32 %v810_v60, %v745_v26  ;;  %v1140_v1 = vmul.f32 %v2802_v15, %v5048_v49  ;;  %v1951_v39 = vadd.f32 %v1887_v53, %v1822_v38  ;;  %v1269_v51 = vmul.f32 %v2815_v21, %v3267_v11  ;;  %v5053_v38 = vld [vmem:[#allocation11_spill] sm:$0xff] }
  0xfb   :  { %642 = vst [vmem:[#allocation2 + $0x350] sm:$0xff] %v3504_v62  ;;  %v1662_v19 = vadd.f32 %v1598_v50, %v1461_v36  ;;  %v1364_v13 = vadd.f32 %v1300_v34, %v1235_v56  ;;  %2366 = vmatmul.msk.f32.gmra.mxu0 %vm175_vm0, %v140_v27  ;;  %v777_v35 = vmul.f32 %v2779_v6, %v3255_v3 }
  0xfc   :  { %2398 = vmatmul.msk.f32.gmra.mxu1 %vm175_vm0, %v172_v22  ;;  %v1003_v48 = vadd.f32 %v939_v28, %v874_v55  ;;  %v842_v26 = vmul.f32 %v2781_v7, %v3398_v42  ;;  %v971_v49 = vmul.f32 %v2800_v14, %v3522_v23  ;;  %v1398_v50 = vmul.f32 %v2821_v25, %v3385_v45  ;;  %v5054_v55 = vld [vmem:[#allocation18_spill] sm:$0xff] }
  0xfd   :  { %v1493_v53 = vadd.f32 %v1429_v0, %v1364_v13  ;;  %v1599_v34 = vmul.f32 %v5038_v12, %v3308_v16  ;;  %v1728_v27 = vmul.f32 %v2844_v37, %v5053_v38  ;;  %v1791_v60 = vadd.f32 %v1727_v30, %v1662_v19  ;;  %v5055_v16 = vld [vmem:[#allocation12_spill] sm:$0xff]  ;;  %v3563_v19 = vld [vmem:[#allocation2 + $0x331] sm:$0xff] }
  0xfe   :  { %v1204_v28 = vadd.f32 %v1140_v1, %v1003_v48  ;;  %v3551_v3 = vmul.f32 %v2868_v52, %v3534_v57  ;;  %v906_v36 = vadd.f32 %v842_v26, %v777_v35  ;;  %2037 = vmatmul.f32.gmra.mxu2 %v1919_v41  ;;  %v1172_v0 = vmul.f32 %v2802_v15, %v3103_v63  ;;  %v2434_v41 = vld [vmem:[#allocation2 + $0x47] sm:$0xff] }
  0xff   :  { %v1694_v56 = vadd.f32 %v1630_v2, %v1493_v53  ;;  %v1301_v22 = vmul.f32 %v2815_v21, %v3269_v24  ;;  %v863_v13 = vadd.f32 %v5055_v16, %v5054_v55  ;;  %2133 = vmatmul.f32.gmra.mxu3 %v1951_v39  ;;  %5058 = vst [vmem:[#allocation15_spill] sm:$0xff] %v3563_v19  ;;  %v2435_v48 = vld [vmem:[#allocation2 + $0x248] sm:$0xff]  ;;  %v5060_v39 = vld [vmem:[#allocation9_spill] sm:$0xff] }
 0x100   :  { %v3559_v62 = vpop.f32.mrf.mxu0  ;;  %v1333_v1 = vadd.f32 %v1269_v51, %v1204_v28  ;;  %v1035_v52 = vadd.f32 %v971_v49, %v906_v36  ;;  %v928_v2 = vmul.f32 %v2434_v41, %v2800_v14  ;;  %v3567_v63 = vmul.f32 %v2435_v48, %v2802_v15  ;;  %v3569_v35 = vld [vmem:[#allocation2 + $0x107] sm:$0xff] }
 0x101   :  { %5056 = vst [vmem:[#allocation4_spill] sm:$0xff] %v3559_v62  ;;  %v3561_v30 = vpop.f32.mrf.mxu1  ;;  %v1823_v26 = vadd.f32 %v1759_v47, %v1694_v56  ;;  %v1430_v53 = vmul.f32 %v2821_v25, %v5060_v39  ;;  %v1631_v51 = vmul.f32 %v5038_v12, %v3316_v29  ;;  %v1760_v49 = vmul.f32 %v2844_v37, %v3437_v10  ;;  %v1515_v41 = vld [vmem:[#allocation2 + $0x9] sm:$0xff]  ;;  %v3583_v47 = vld [vmem:[%s4946_s2 + $0x8] ss:$0 sm:$0xff] }
 0x102   :  { %5057 = vst [vmem:[#allocation7_spill] sm:$0xff] %v3561_v30  ;;  %v1920_v28 = vadd.f32 %v3492_v40, %v1791_v60  ;;  %v1462_v36 = vadd.f32 %v1398_v50, %v1333_v1  ;;  %v1236_v55 = vadd.f32 %v1172_v0, %v1035_v52  ;;  %v992_v16 = vadd.f32 %v928_v2, %v863_v13  ;;  %v3594_v52 = vld [vmem:[#allocation2 + $0x347] sm:$0xff] }
 0x103   :  { %5059 = vst [vmem:[#allocation8_spill] sm:$0xff] %v3569_v35  ;;  %v1889_v56 = vmul.f32 %v3583_v47, %v3563_v19  ;;  %v746_v29 = vmul.f32 %v2779_v6, %v3310_v33  ;;  %v811_v40 = vmul.f32 %v2781_v7, %v3425_v9  ;;  %v940_v50 = vmul.f32 %v2800_v14, %v3569_v35  ;;  %v2437_v2 = vld [vmem:[#allocation2 + $0x48] sm:$0xff]  ;;  %v5061_v9 = vld [vmem:[#allocation5_spill] sm:$0xff] }
 0x104   :  { %611 = vst [vmem:[#allocation2 + $0x128] sm:$0xff] %v3559_v62  ;;  %v1952_v60 = vadd.f32 %v1888_v18, %v1823_v26  ;;  %v1663_v0 = vadd.f32 %v1599_v34, %v1462_v36  ;;  %v1365_v13 = vadd.f32 %v1301_v22, %v1236_v55  ;;  %v1193_v1 = vadd.f32 %v3567_v63, %v992_v16  ;;  %v2438_v62 = vld [vmem:[#allocation2 + $0x49] sm:$0xff] }
 0x105   :  { %643 = vst [vmem:[#allocation2 + $0x368] sm:$0xff] %v3561_v30  ;;  %v1387_v48 = vmul.f32 %v2437_v2, %v2821_v25  ;;  %v1588_v30 = vmul.f32 %v5038_v12, %v1515_v41  ;;  %v1846_v33 = vmul.f32 %v2438_v62, %v3583_v47  ;;  %v875_v19 = vadd.f32 %v811_v40, %v746_v29  ;;  %v3602_v22 = vld [vmem:[#allocation2 + $0x109] sm:$0xff] }
 0x106   :  { %v1792_v10 = vadd.f32 %v1728_v27, %v1663_v0  ;;  %v1494_v39 = vadd.f32 %v1430_v53, %v1365_v13  ;;  %v1322_v35 = vadd.f32 %v5061_v9, %v1193_v1  ;;  %v1141_v18 = vmul.f32 %v2802_v15, %v5042_v8  ;;  %2040 = vmatmul.f32.gmra.mxu2 %v1920_v28  ;;  %v3629_v1 = vld [vmem:[#allocation2 + $0x349] sm:$0xff] }
 0x107   :  { %v1004_v34 = vadd.f32 %v940_v50, %v875_v19  ;;  %v778_v26 = vmul.f32 %v2779_v6, %v3344_v5  ;;  %v843_v36 = vmul.f32 %v2781_v7, %v3464_v43  ;;  %v972_v62 = vmul.f32 %v2800_v14, %v3594_v52  ;;  %2136 = vmatmul.f32.gmra.mxu3 %v1952_v60  ;;  %v5062_v19 = vld [vmem:[#allocation14_spill] sm:$0xff]  ;;  %v662_v5 = vld [vmem:[#allocation2 + $0xf] sm:$0xff] }
 0x108   :  { %v1695_v27 = vadd.f32 %v1631_v51, %v1494_v39  ;;  %v1451_v53 = vadd.f32 %v1387_v48, %v1322_v35  ;;  %v3610_v9 = vpop.f32.mrf.mxu0  ;;  %v1270_v8 = vmul.f32 %v2815_v21, %v3323_v20  ;;  %v1399_v28 = vmul.f32 %v2821_v25, %v5062_v19  ;;  %v5063_v48 = vld [vmem:[#allocation13_spill] sm:$0xff] }
 0x109   :  { %v3612_v55 = vpop.f32.mrf.mxu1  ;;  %612 = vst [vmem:[#allocation2 + $0x130] sm:$0xff] %v3610_v9  ;;  %v1205_v16 = vadd.f32 %v1141_v18, %v1004_v34  ;;  %v1600_v41 = vmul.f32 %v5038_v12, %v3351_v32  ;;  %v1729_v35 = vmul.f32 %v2844_v37, %v3473_v17  ;;  %v907_v39 = vadd.f32 %v843_v36, %v778_v26  ;;  %v5064_v36 = vld [vmem:[#allocation16_spill] sm:$0xff] }
 0x10a   :  { %v1921_v51 = vadd.f32 %v3551_v3, %v1792_v10  ;;  %v1824_v29 = vadd.f32 %v1760_v49, %v1695_v27  ;;  %v1652_v40 = vadd.f32 %v1588_v30, %v1451_v53  ;;  %644 = vst [vmem:[#allocation2 + $0x370] sm:$0xff] %v3612_v55  ;;  %v1858_v50 = vmul.f32 %v3583_v47, %v3602_v22  ;;  %v2439_v3 = vld [vmem:[#allocation2 + $0x4f] sm:$0xff] }
 0x10b   :  { %v1334_v60 = vadd.f32 %v1270_v8, %v1205_v16  ;;  %v1036_v0 = vadd.f32 %v972_v62, %v907_v39  ;;  %v1173_v13 = vmul.f32 %v2802_v15, %v3205_v61  ;;  %v735_v32 = vmul.f32 %v2779_v6, %v662_v5  ;;  %v3639_v62 = vld [vmem:[#allocation2 + $0x10f] sm:$0xff] }
 0x10c   :  { %v1953_v2 = vadd.f32 %v1889_v56, %v1824_v29  ;;  %v1781_v18 = vadd.f32 %v5063_v48, %v1652_v40  ;;  %v1302_v10 = vmul.f32 %v2815_v21, %v3325_v31  ;;  %v929_v30 = vmul.f32 %v2439_v3, %v2800_v14  ;;  %v2440_v39 = vld [vmem:[#allocation2 + $0x30] sm:$0xff] }
 0x10d   :  { %v1463_v49 = vadd.f32 %v1399_v28, %v1334_v60  ;;  %v1237_v34 = vadd.f32 %v1173_v13, %v1036_v0  ;;  %v1431_v26 = vmul.f32 %v2821_v25, %v3447_v54  ;;  %v864_v61 = vadd.f32 %v5064_v36, %v735_v32  ;;  %v1516_v40 = vld [vmem:[#allocation2 + $0x11] sm:$0xff] }
 0x10e   :  { %v1910_v27 = vadd.f32 %v1846_v33, %v1781_v18  ;;  %v1632_v56 = vmul.f32 %v5038_v12, %v3375_v4  ;;  %v1761_v53 = vmul.f32 %v2844_v37, %v3500_v58  ;;  %v1890_v8 = vmul.f32 %v3583_v47, %v3629_v1  ;;  %2043 = vmatmul.f32.gmra.mxu2 %v1921_v51  ;;  %v2441_v48 = vld [vmem:[#allocation2 + $0x50] sm:$0xff] }
 0x10f   :  { %v1664_v28 = vadd.f32 %v1600_v41, %v1463_v49  ;;  %v1366_v5 = vadd.f32 %v1302_v10, %v1237_v34  ;;  %v993_v16 = vadd.f32 %v929_v30, %v864_v61  ;;  %v1259_v29 = vmul.f32 %v2440_v39, %v2815_v21  ;;  %2139 = vmatmul.f32.gmra.mxu3 %v1953_v2  ;;  %v3661_v18 = vld [vmem:[#allocation2 + $0x34f] sm:$0xff] }
 0x110   :  { %2010 = vmatmul.f32.vlgmr.msrb.gmra.mxu0 %v1910_v27  ;;  %v3648_v33 = vpop.f32.mrf.mxu0  ;;  %v747_v4 = vmul.f32 %v2779_v6, %v3367_v44  ;;  %v812_v0 = vmul.f32 %v2781_v7, %v3486_v46  ;;  %v941_v41 = vmul.f32 %v2800_v14, %v3639_v62  ;;  %v1388_v2 = vmul.f32 %v2441_v48, %v2821_v25  ;;  %v2442_v44 = vld [vmem:[#allocation2 + $0x31] sm:$0xff] }
 0x111   :  { %v3650_v60 = vpop.f32.mrf.mxu1  ;;  %v1793_v51 = vadd.f32 %v1729_v35, %v1664_v28  ;;  %v1495_v13 = vadd.f32 %v1431_v26, %v1366_v5  ;;  %v1194_v32 = vadd.f32 %v3567_v63, %v993_v16  ;;  %613 = vst [vmem:[#allocation2 + $0x148] sm:$0xff] %v3648_v33  ;;  %v1589_v10 = vmul.f32 %v5038_v12, %v1516_v40  ;;  %v2443_v30 = vld [vmem:[#allocation2 + $0x51] sm:$0xff] }
 0x112   :  { %v1718_v3 = vmul.f32 %v2442_v44, %v2844_v37  ;;  %v1847_v49 = vmul.f32 %v2443_v30, %v3583_v47  ;;  %645 = vst [vmem:[#allocation2 + $0x388] sm:$0xff] %v3650_v60  ;;  %v876_v35 = vadd.f32 %v812_v0, %v747_v4  ;;  %v1142_v36 = vmul.f32 %v2802_v15, %v3267_v11  ;;  %v3669_v27 = vld [vmem:[#allocation2 + $0x111] sm:$0xff]  ;;  %v3685_v0 = vld [vmem:[#allocation2 + $0x127] sm:$0xff] }
 0x113   :  { %v1922_v34 = vadd.f32 %v1858_v50, %v1793_v51  ;;  %v1696_v63 = vadd.f32 %v1632_v56, %v1495_v13  ;;  %v1323_v26 = vadd.f32 %v1259_v29, %v1194_v32  ;;  %v779_v28 = vmul.f32 %v2779_v6, %v3398_v42  ;;  %v5066_v30 = vld [vmem:[#allocation3_spill] sm:$0xff] }
 0x114   :  { %v1005_v61 = vadd.f32 %v941_v41, %v876_v35  ;;  %v844_v5 = vmul.f32 %v2781_v7, %v3522_v23  ;;  %v973_v16 = vmul.f32 %v2800_v14, %v3661_v18  ;;  %v1271_v50 = vmul.f32 %v2815_v21, %v3385_v45 }
 0x115   :  { %v1825_v39 = vadd.f32 %v1761_v53, %v1696_v63  ;;  %v1452_v40 = vadd.f32 %v1388_v2, %v1323_v26  ;;  %v1400_v11 = vmul.f32 %v2821_v25, %v3502_v59  ;;  %v1601_v29 = vmul.f32 %v5038_v12, %v5053_v38  ;;  %v3691_v2 = vld [vmem:[#allocation2 + $0x351] sm:$0xff] }
 0x116   :  { %v1206_v56 = vadd.f32 %v1142_v36, %v1005_v61  ;;  %v1730_v42 = vmul.f32 %v2844_v37, %v3534_v57  ;;  %v908_v4 = vadd.f32 %v844_v5, %v779_v28  ;;  %2046 = vmatmul.f32.gmra.mxu2 %v1922_v34  ;;  %v1859_v51 = vmul.f32 %v3583_v47, %v3669_v27  ;;  %v5067_v34 = vld [vmem:[#allocation8_spill] sm:$0xff]  ;;  %v5068_v63 = vld [vmem:[#allocation9_spill] sm:$0xff]  ;;  %v5069_v28 = vld [vmem:[#allocation10_spill] sm:$0xff] }
 0x117   :  { %v1954_v41 = vadd.f32 %v1890_v8, %v1825_v39  ;;  %v1653_v53 = vadd.f32 %v1589_v10, %v1452_v40  ;;  %v1174_v13 = vmul.f32 %v2802_v15, %v3269_v24  ;;  %v748_v35 = vmul.f32 %v2779_v6, %v5066_v30  ;;  %v3709_v39 = vld [vmem:[#allocation2 + $0x367] sm:$0xff] }
 0x118   :  { %v1335_v32 = vadd.f32 %v1271_v50, %v1206_v56  ;;  %v1037_v48 = vadd.f32 %v973_v16, %v908_v4  ;;  %v3693_v38 = vpop.f32.mrf.mxu0  ;;  %v813_v8 = vmul.f32 %v2781_v7, %v5067_v34  ;;  %v1303_v26 = vmul.f32 %v2815_v21, %v5068_v63  ;;  %v5071_v56 = vld [vmem:[#allocation15_spill] sm:$0xff] }
 0x119   :  { %v3695_v44 = vpop.f32.mrf.mxu1  ;;  %2142 = vmatmul.f32.gmra.mxu3 %v1954_v41  ;;  %v1782_v10 = vadd.f32 %v1718_v3, %v1653_v53  ;;  %614 = vst [vmem:[#allocation2 + $0x150] sm:$0xff] %v3693_v38  ;;  %v942_v24 = vmul.f32 %v2800_v14, %v3685_v0  ;;  %v1432_v5 = vmul.f32 %v2821_v25, %v5069_v28  ;;  %v5070_v3 = vld [vmem:[#allocation6_spill] sm:$0xff] }
 0x11a   :  { %5065 = vst [vmem:[#allocation17_spill] sm:$0xff] %v3695_v44  ;;  %v1464_v36 = vadd.f32 %v1400_v11, %v1335_v32  ;;  %v1238_v61 = vadd.f32 %v1174_v13, %v1037_v48  ;;  %v877_v16 = vadd.f32 %v813_v8, %v748_v35  ;;  %v1633_v50 = vmul.f32 %v5038_v12, %v5070_v3  ;;  %v3719_v48 = vld [vmem:[#allocation2 + $0x129] sm:$0xff] }
 0x11b   :  { %646 = vst [vmem:[#allocation2 + $0x390] sm:$0xff] %v3695_v44  ;;  %v1911_v40 = vadd.f32 %v1847_v49, %v1782_v10  ;;  %v1762_v4 = vmul.f32 %v2844_v37, %v5071_v56  ;;  %v1891_v41 = vmul.f32 %v3583_v47, %v3691_v2  ;;  %v1143_v32 = vmul.f32 %v2802_v15, %v3323_v20 }
 0x11c   :  { %v1665_v11 = vadd.f32 %v1601_v29, %v1464_v36  ;;  %v1367_v53 = vadd.f32 %v1303_v26, %v1238_v61  ;;  %v1006_v13 = vadd.f32 %v942_v24, %v877_v16  ;;  %v1272_v49 = vmul.f32 %v2815_v21, %v5062_v19  ;;  %v5072_v24 = vld [vmem:[#allocation4_spill] sm:$0xff] }
 0x11d   :  { %2013 = vmatmul.f32.gmra.mxu0 %v1911_v40  ;;  %v780_v30 = vmul.f32 %v2779_v6, %v3464_v43  ;;  %v845_v35 = vmul.f32 %v2781_v7, %v3594_v52  ;;  %v974_v29 = vmul.f32 %v2800_v14, %v3709_v39  ;;  %v1401_v20 = vmul.f32 %v2821_v25, %v5072_v24  ;;  %v3731_v36 = vld [vmem:[#allocation2 + $0x12f] sm:$0xff] }
 0x11e   :  { %v1794_v8 = vadd.f32 %v1730_v42, %v1665_v11  ;;  %v1496_v10 = vadd.f32 %v1432_v5, %v1367_v53  ;;  %v1207_v26 = vadd.f32 %v1143_v32, %v1006_v13  ;;  %v1602_v61 = vmul.f32 %v5038_v12, %v3473_v17  ;;  %v3745_v32 = vld [vmem:[#allocation2 + $0x369] sm:$0xff] }
 0x11f   :  { %v1731_v43 = vmul.f32 %v2844_v37, %v3602_v22  ;;  %v1860_v16 = vmul.f32 %v3583_v47, %v3719_v48  ;;  %v909_v40 = vadd.f32 %v845_v35, %v780_v30  ;;  %v1175_v5 = vmul.f32 %v2802_v15, %v3325_v31 }
 0x120   :  { %v1923_v3 = vadd.f32 %v1859_v51, %v1794_v8  ;;  %v1697_v44 = vadd.f32 %v1633_v50, %v1496_v10  ;;  %v1336_v42 = vadd.f32 %v1272_v49, %v1207_v26  ;;  %v3741_v11 = vpop.f32.mrf.mxu0  ;;  %v749_v17 = vmul.f32 %v2779_v6, %v3486_v46  ;;  %v3761_v26 = vld [vmem:[#allocation2 + $0x36f] sm:$0xff] }
 0x121   :  { %5073 = vst [vmem:[#allocation11_spill] sm:$0xff] %v3741_v11  ;;  %v3743_v53 = vpop.f32.mrf.mxu1  ;;  %v1038_v13 = vadd.f32 %v974_v29, %v909_v40  ;;  %v814_v51 = vmul.f32 %v2781_v7, %v3639_v62  ;;  %v943_v50 = vmul.f32 %v2800_v14, %v3731_v36  ;;  %v1304_v30 = vmul.f32 %v2815_v21, %v3447_v54  ;;  %v5074_v29 = vld [vmem:[#allocation7_spill] sm:$0xff] }
 0x122   :  { %615 = vst [vmem:[#allocation2 + $0x168] sm:$0xff] %v3741_v11  ;;  %2049 = vmatmul.f32.gmra.mxu2 %v1923_v3  ;;  %v1826_v31 = vadd.f32 %v1762_v4, %v1697_v44  ;;  %v1465_v49 = vadd.f32 %v1401_v20, %v1336_v42  ;;  %v1433_v8 = vmul.f32 %v2821_v25, %v5074_v29 }
 0x123   :  { %647 = vst [vmem:[#allocation2 + $0x3a8] sm:$0xff] %v3743_v53  ;;  %v1239_v35 = vadd.f32 %v1175_v5, %v1038_v13  ;;  %v1634_v46 = vmul.f32 %v5038_v12, %v3500_v58  ;;  %v878_v10 = vadd.f32 %v814_v51, %v749_v17  ;;  %v1763_v44 = vmul.f32 %v2844_v37, %v3629_v1  ;;  %v3771_v58 = vld [vmem:[#allocation2 + $0x131] sm:$0xff] }
 0x124   :  { %v1955_v40 = vadd.f32 %v1891_v41, %v1826_v31  ;;  %v1666_v11 = vadd.f32 %v1602_v61, %v1465_v49  ;;  %v1892_v4 = vmul.f32 %v3583_v47, %v3745_v32  ;;  %v1144_v42 = vmul.f32 %v2802_v15, %v3385_v45  ;;  %v3783_v49 = vld [vmem:[#allocation2 + $0x147] sm:$0xff] }
 0x125   :  { %v1368_v20 = vadd.f32 %v1304_v30, %v1239_v35  ;;  %v1007_v3 = vadd.f32 %v943_v50, %v878_v10  ;;  %v1273_v5 = vmul.f32 %v2815_v21, %v3502_v59  ;;  %v781_v41 = vmul.f32 %v2779_v6, %v3522_v23 }
 0x126   :  { %2145 = vmatmul.f32.gmra.mxu3 %v1955_v40  ;;  %v1795_v13 = vadd.f32 %v1731_v43, %v1666_v11  ;;  %v846_v61 = vmul.f32 %v2781_v7, %v3661_v18  ;;  %v975_v17 = vmul.f32 %v2800_v14, %v3761_v26  ;;  %v1402_v45 = vmul.f32 %v2821_v25, %v3610_v9 }
 0x127   :  { %v1497_v51 = vadd.f32 %v1433_v8, %v1368_v20  ;;  %v1208_v50 = vadd.f32 %v1144_v42, %v1007_v3  ;;  %v1603_v31 = vmul.f32 %v5038_v12, %v3534_v57  ;;  %v1732_v23 = vmul.f32 %v2844_v37, %v3669_v27  ;;  %v3798_v3 = vld [vmem:[#allocation2 + $0x371] sm:$0xff] }
 0x128   :  { %v1924_v43 = vadd.f32 %v1860_v16, %v1795_v13  ;;  %v1861_v11 = vmul.f32 %v3583_v47, %v3771_v58  ;;  %v910_v30 = vadd.f32 %v846_v61, %v781_v41  ;;  %v3789_v35 = vpop.f32.mrf.mxu0  ;;  %v1176_v20 = vmul.f32 %v2802_v15, %v5068_v63 }
 0x129   :  { %v3791_v8 = vpop.f32.mrf.mxu1  ;;  %v1698_v10 = vadd.f32 %v1634_v46, %v1497_v51  ;;  %v1337_v40 = vadd.f32 %v1273_v5, %v1208_v50  ;;  %616 = vst [vmem:[#allocation2 + $0x170] sm:$0xff] %v3789_v35  ;;  %v750_v57 = vmul.f32 %v2779_v6, %v5067_v34  ;;  %v815_v42 = vmul.f32 %v2781_v7, %v3685_v0  ;;  %v3813_v50 = vld [vmem:[#allocation2 + $0x387] sm:$0xff] }
 0x12a   :  { %2052 = vmatmul.f32.gmra.mxu2 %v1924_v43  ;;  %v1039_v16 = vadd.f32 %v975_v17, %v910_v30  ;;  %648 = vst [vmem:[#allocation2 + $0x3b0] sm:$0xff] %v3791_v8  ;;  %v944_v46 = vmul.f32 %v2800_v14, %v3783_v49  ;;  %v1305_v63 = vmul.f32 %v2815_v21, %v5069_v28 }
 0x12b   :  { %v1827_v5 = vadd.f32 %v1763_v44, %v1698_v10  ;;  %v1466_v13 = vadd.f32 %v1402_v45, %v1337_v40  ;;  %v1434_v34 = vmul.f32 %v2821_v25, %v3612_v55  ;;  %v1635_v61 = vmul.f32 %v5038_v12, %v5071_v56 }
 0x12c   :  { %v1240_v41 = vadd.f32 %v1176_v20, %v1039_v16  ;;  %v1764_v17 = vmul.f32 %v2844_v37, %v3691_v2  ;;  %v879_v51 = vadd.f32 %v815_v42, %v750_v57  ;;  %v1893_v44 = vmul.f32 %v3583_v47, %v3798_v3  ;;  %v3819_v20 = vld [vmem:[#allocation2 + $0x149] sm:$0xff] }
 0x12d   :  { %v1956_v43 = vadd.f32 %v1892_v4, %v1827_v5  ;;  %v1667_v30 = vadd.f32 %v1603_v31, %v1466_v13  ;;  %v1145_v45 = vmul.f32 %v2802_v15, %v5062_v19  ;;  %5075 = vst [vmem:[#allocation18_spill] sm:$0xff] %v3819_v20  ;;  %v782_v56 = vmul.f32 %v2779_v6, %v3594_v52 }
 0x12e   :  { %v1369_v10 = vadd.f32 %v1305_v63, %v1240_v41  ;;  %v1008_v40 = vadd.f32 %v944_v46, %v879_v51  ;;  %v847_v57 = vmul.f32 %v2781_v7, %v3709_v39  ;;  %v1274_v4 = vmul.f32 %v2815_v21, %v5072_v24 }
 0x12f   :  { %2148 = vmatmul.f32.gmra.mxu3 %v1956_v43  ;;  %v1796_v16 = vadd.f32 %v1732_v23, %v1667_v30  ;;  %v1403_v31 = vmul.f32 %v2821_v25, %v3648_v33  ;;  %v976_v19 = vmul.f32 %v2800_v14, %v3813_v50  ;;  %v1604_v5 = vmul.f32 %v5038_v12, %v3602_v22  ;;  %v3837_v23 = vld [vmem:[#allocation2 + $0x14f] sm:$0xff] }
 0x130   :  { %v1498_v42 = vadd.f32 %v1434_v34, %v1369_v10  ;;  %v1209_v46 = vadd.f32 %v1145_v45, %v1008_v40  ;;  %v911_v52 = vadd.f32 %v847_v57, %v782_v56  ;;  %v3833_v13 = vpop.f32.mrf.mxu0  ;;  %v1733_v51 = vmul.f32 %v2844_v37, %v3719_v48  ;;  %v3848_v40 = vld [vmem:[#allocation2 + $0x389] sm:$0xff] }
 0x131   :  { %5076 = vst [vmem:[#allocation12_spill] sm:$0xff] %v3833_v13  ;;  %v3835_v63 = vpop.f32.mrf.mxu1  ;;  %v1925_v41 = vadd.f32 %v1861_v11, %v1796_v16  ;;  %v1862_v43 = vmul.f32 %v3583_v47, %v3819_v20  ;;  %v1177_v34 = vmul.f32 %v2802_v15, %v3447_v54  ;;  %v1306_v10 = vmul.f32 %v2815_v21, %v5074_v29 }
 0x132   :  { %5077 = vst [vmem:[#allocation5_spill] sm:$0xff] %v3835_v63  ;;  %v1699_v22 = vadd.f32 %v1635_v61, %v1498_v42  ;;  %v1338_v30 = vadd.f32 %v1274_v4, %v1209_v46  ;;  %v1040_v45 = vadd.f32 %v976_v19, %v911_v52  ;;  %v1435_v11 = vmul.f32 %v2821_v25, %v3650_v60  ;;  %v3861_v42 = vld [vmem:[#allocation2 + $0x38f] sm:$0xff] }
 0x133   :  { %617 = vst [vmem:[#allocation2 + $0x188] sm:$0xff] %v3833_v13  ;;  %2055 = vmatmul.f32.gmra.mxu2 %v1925_v41  ;;  %v751_v56 = vmul.f32 %v2779_v6, %v3639_v62  ;;  %v816_v54 = vmul.f32 %v2781_v7, %v3731_v36  ;;  %v945_v61 = vmul.f32 %v2800_v14, %v3837_v23 }
 0x134   :  { %649 = vst [vmem:[#allocation2 + $0x3c8] sm:$0xff] %v3835_v63  ;;  %v1828_v57 = vadd.f32 %v1764_v17, %v1699_v22  ;;  %v1467_v16 = vadd.f32 %v1403_v31, %v1338_v30  ;;  %v1241_v4 = vadd.f32 %v1177_v34, %v1040_v45  ;;  %v1636_v19 = vmul.f32 %v5038_v12, %v3629_v1  ;;  %v3871_v34 = vld [vmem:[#allocation2 + $0x151] sm:$0xff]  ;;  %v3876_v1 = vld [vmem:[%s4948_s4] ss:$0 sm:$0xff] }
 0x135   :  { %v1765_v46 = vmul.f32 %v2844_v37, %v3745_v32  ;;  %v1894_v62 = vmul.f32 %v3583_v47, %v3848_v40  ;;  %v880_v52 = vadd.f32 %v816_v54, %v751_v56  ;;  %v1146_v41 = vmul.f32 %v2802_v15, %v3502_v59 }
 0x136   :  { %v1957_v63 = vadd.f32 %v1893_v44, %v1828_v57  ;;  %v1668_v13 = vadd.f32 %v1604_v5, %v1467_v16  ;;  %v1370_v17 = vadd.f32 %v1306_v10, %v1241_v4  ;;  %v1275_v31 = vmul.f32 %v2815_v21, %v3610_v9  ;;  %v2110_v5 = vpop.f32.mrf.mxu3 }
 0x137   :  { %v1009_v22 = vadd.f32 %v945_v61, %v880_v52  ;;  %v783_v30 = vmul.f32 %v2779_v6, %v3661_v18  ;;  %v848_v59 = vmul.f32 %v2781_v7, %v3761_v26  ;;  %v977_v44 = vmul.f32 %v2800_v14, %v3861_v42 }
 0x138   :  { %2151 = vmatmul.f32.gmra.mxu3 %v1957_v63  ;;  %v1797_v45 = vadd.f32 %v1733_v51, %v1668_v13  ;;  %v1499_v10 = vadd.f32 %v1435_v11, %v1370_v17  ;;  %v1404_v56 = vmul.f32 %v2821_v25, %v3693_v38  ;;  %v1605_v54 = vmul.f32 %v5038_v12, %v3669_v27  ;;  %v3888_v61 = vpop.f32.mrf.mxu0  ;;  %v3897_v63 = vld [vmem:[#allocation2 + $0x167] sm:$0xff] }
 0x139   :  { %5078 = vst [vmem:[#allocation14_spill] sm:$0xff] %v3888_v61  ;;  %v1210_v57 = vadd.f32 %v1146_v41, %v1009_v22  ;;  %v1734_v18 = vmul.f32 %v2844_v37, %v3771_v58  ;;  %v1863_v16 = vmul.f32 %v3583_v47, %v3871_v34  ;;  %v912_v4 = vadd.f32 %v848_v59, %v783_v30  ;;  %v3895_v13 = vpop.f32.mrf.mxu1  ;;  %v3903_v22 = vld [vmem:[#allocation2 + $0x391] sm:$0xff] }
 0x13a   :  { %618 = vst [vmem:[#allocation2 + $0x190] sm:$0xff] %v3888_v61  ;;  %v1926_v51 = vadd.f32 %v1862_v43, %v1797_v45  ;;  %v1700_v11 = vadd.f32 %v1636_v19, %v1499_v10  ;;  %v1178_v27 = vmul.f32 %v2802_v15, %v5069_v28  ;;  %v2111_v52 = vadd.f32 %v3876_v1, %v2110_v5 }
 0x13b   :  { %5079 = vst [vmem:[#allocation13_spill] sm:$0xff] %v3895_v13  ;;  %v1339_v41 = vadd.f32 %v1275_v31, %v1210_v57  ;;  %v1041_v17 = vadd.f32 %v977_v44, %v912_v4  ;;  %v752_v30 = vmul.f32 %v2779_v6, %v3685_v0  ;;  %v817_v59 = vmul.f32 %v2781_v7, %v3783_v49  ;;  %v5080_v44 = vld [vmem:[#allocation17_spill] sm:$0xff]  ;;  %v3915_v4 = vld [vmem:[#allocation2 + $0x3a7] sm:$0xff] }
 0x13c   :  { %650 = vst [vmem:[#allocation2 + $0x3d0] sm:$0xff] %v3895_v13  ;;  %2058 = vmatmul.f32.gmra.mxu2 %v1926_v51  ;;  %v1829_v43 = vadd.f32 %v1765_v46, %v1700_v11  ;;  %v1307_v19 = vmul.f32 %v2815_v21, %v3612_v55  ;;  %v2236_v28 = vmax.f32 %v2111_v52, 0.0  ;;  %v946_v5 = vmul.f32 %v2800_v14, %v3897_v63 }
 0x13d   :  { %v1468_v45 = vadd.f32 %v1404_v56, %v1339_v41  ;;  %v1242_v31 = vadd.f32 %v1178_v27, %v1041_v17  ;;  %v1436_v10 = vmul.f32 %v2821_v25, %v5080_v44  ;;  %v881_v57 = vadd.f32 %v817_v59, %v752_v30  ;;  %v3929_v41 = vld [vmem:[#allocation2 + $0x169] sm:$0xff]  ;;  %v2017_v59 = vpop.f32.mrf.mxu2 }
 0x13e   :  { %v1958_v0 = vadd.f32 %v1894_v62, %v1829_v43  ;;  %v1637_v51 = vmul.f32 %v5038_v12, %v3691_v2  ;;  %v1766_v46 = vmul.f32 %v2844_v37, %v3798_v3  ;;  %v1895_v11 = vmul.f32 %v3583_v47, %v3903_v22  ;;  %2300 = vst.msk [vmem:[%s4949_s5 + $0x108] sm:$0xff] %vm175_vm0, %v2236_v28 }
 0x13f   :  { %v1669_v56 = vadd.f32 %v1605_v54, %v1468_v45  ;;  %v1371_v27 = vadd.f32 %v1307_v19, %v1242_v31  ;;  %v1010_v52 = vadd.f32 %v946_v5, %v881_v57  ;;  %v1147_v62 = vmul.f32 %v2802_v15, %v5072_v24  ;;  %v5082_v5 = vld [vmem:[#allocation11_spill] sm:$0xff]  ;;  %v2113_v31 = vpop.f32.mrf.mxu3 }
 0x140   :  { %2154 = vmatmul.f32.gmra.mxu3 %v1958_v0  ;;  %v1276_v2 = vmul.f32 %v2815_v21, %v3648_v33  ;;  %v784_v17 = vmul.f32 %v2779_v6, %v3709_v39  ;;  %v849_v30 = vmul.f32 %v2781_v7, %v3813_v50  ;;  %v978_v54 = vmul.f32 %v2800_v14, %v3915_v4  ;;  %v3939_v43 = vpop.f32.mrf.mxu0 }
 0x141   :  { %5081 = vst [vmem:[#allocation16_spill] sm:$0xff] %v3939_v43  ;;  %v1798_v19 = vadd.f32 %v1734_v18, %v1669_v56  ;;  %v1500_v24 = vadd.f32 %v1436_v10, %v1371_v27  ;;  %v1211_v28 = vadd.f32 %v1147_v62, %v1010_v52  ;;  %v1405_v45 = vmul.f32 %v2821_v25, %v5082_v5  ;;  %v3944_v57 = vpop.f32.mrf.mxu1  ;;  %v3953_v10 = vld [vmem:[#allocation2 + $0x16f] sm:$0xff] }
 0x142   :  { %619 = vst [vmem:[#allocation2 + $0x1a8] sm:$0xff] %v3939_v43  ;;  %v1606_v39 = vmul.f32 %v5038_v12, %v3719_v48  ;;  %v1735_v0 = vmul.f32 %v2844_v37, %v3819_v20  ;;  %v1864_v13 = vmul.f32 %v3583_v47, %v3929_v41  ;;  %v913_v18 = vadd.f32 %v849_v30, %v784_v17 }
 0x143   :  { %5083 = vst [vmem:[#allocation3_spill] sm:$0xff] %v3944_v57  ;;  %v1927_v56 = vadd.f32 %v1863_v16, %v1798_v19  ;;  %v1701_v27 = vadd.f32 %v1637_v51, %v1500_v24  ;;  %v1340_v52 = vadd.f32 %v1276_v2, %v1211_v28  ;;  %v1179_v62 = vmul.f32 %v2802_v15, %v5074_v29  ;;  %v3971_v28 = vld [vmem:[#allocation2 + $0x3af] sm:$0xff] }
 0x144   :  { %651 = vst [vmem:[#allocation2 + $0x3e8] sm:$0xff] %v3944_v57  ;;  %v1042_v43 = vadd.f32 %v978_v54, %v913_v18  ;;  %v2018_v48 = vadd.f32 %v3876_v1, %v2017_v59  ;;  %v2114_v61 = vadd.f32 %v3876_v1, %v2113_v31  ;;  %v753_v20 = vmul.f32 %v2779_v6, %v3731_v36  ;;  %v3961_v57 = vld [vmem:[#allocation2 + $0x3a9] sm:$0xff] }
 0x145   :  { %2061 = vmatmul.f32.gmra.mxu2 %v1927_v56  ;;  %v1830_v17 = vadd.f32 %v1766_v46, %v1701_v27  ;;  %v1469_v30 = vadd.f32 %v1405_v45, %v1340_v52  ;;  %v818_v16 = vmul.f32 %v2781_v7, %v3837_v23  ;;  %v947_v51 = vmul.f32 %v2800_v14, %v3953_v10  ;;  %v3993_v27 = vld [vmem:[#allocation2 + $0x171] sm:$0xff] }
 0x146   :  { %v1243_v29 = vadd.f32 %v1179_v62, %v1042_v43  ;;  %v1308_v2 = vmul.f32 %v2815_v21, %v3650_v60  ;;  %v2205_v54 = vmax.f32 %v2018_v48, 0.0  ;;  %v2237_v59 = vmax.f32 %v2114_v61, 0.0  ;;  %v2020_v48 = vpop.f32.mrf.mxu2 }
 0x147   :  { %v1959_v19 = vadd.f32 %v1895_v11, %v1830_v17  ;;  %v1670_v24 = vadd.f32 %v1606_v39, %v1469_v30  ;;  %v1437_v36 = vmul.f32 %v2821_v25, %v3743_v53  ;;  %v882_v46 = vadd.f32 %v818_v16, %v753_v20 }
 0x148   :  { %v1372_v45 = vadd.f32 %v1308_v2, %v1243_v29  ;;  %v1638_v31 = vmul.f32 %v5038_v12, %v3745_v32  ;;  %v1767_v43 = vmul.f32 %v2844_v37, %v3848_v40  ;;  %v1896_v18 = vmul.f32 %v3583_v47, %v3961_v57  ;;  %2269 = vst.msk [vmem:[%s4949_s5 + $0x10] sm:$0xff] %vm175_vm0, %v2205_v54  ;;  %v3983_v61 = vpop.f32.mrf.mxu0 }
 0x149   :  { %2157 = vmatmul.f32.gmra.mxu3 %v1959_v19  ;;  %v1799_v20 = vadd.f32 %v1735_v0, %v1670_v24  ;;  %2301 = vst.msk [vmem:[%s4949_s5 + $0x110] sm:$0xff] %vm175_vm0, %v2237_v59  ;;  %v1011_v32 = vadd.f32 %v947_v51, %v882_v46  ;;  %v1148_v11 = vmul.f32 %v2802_v15, %v3610_v9  ;;  %v3991_v39 = vpop.f32.mrf.mxu1  ;;  %v2116_v51 = vpop.f32.mrf.mxu3  ;;  %v4011_v59 = vld [vmem:[#allocation2 + $0x187] sm:$0xff] }
 0x14a   :  { %v1501_v56 = vadd.f32 %v1437_v36, %v1372_v45  ;;  %v785_v52 = vmul.f32 %v2779_v6, %v3761_v26  ;;  %v850_v0 = vmul.f32 %v2781_v7, %v3861_v42  ;;  %v979_v62 = vmul.f32 %v2800_v14, %v3971_v28  ;;  %620 = vst [vmem:[#allocation2 + $0x1b0] sm:$0xff] %v3983_v61 }
 0x14b   :  { %v1928_v17 = vadd.f32 %v1864_v13, %v1799_v20  ;;  %v1212_v30 = vadd.f32 %v1148_v11, %v1011_v32  ;;  %v1277_v9 = vmul.f32 %v2815_v21, %v3693_v38  ;;  %v1406_v16 = vmul.f32 %v2821_v25, %v3789_v35  ;;  %652 = vst [vmem:[#allocation2 + $0x3f0] sm:$0xff] %v3991_v39  ;;  %v4021_v32 = vld [vmem:[#allocation2 + $0x3b1] sm:$0xff] }
 0x14c   :  { %v1702_v26 = vadd.f32 %v1638_v31, %v1501_v56  ;;  %v1607_v29 = vmul.f32 %v5038_v12, %v3771_v58  ;;  %v1736_v2 = vmul.f32 %v2844_v37, %v3871_v34  ;;  %v914_v54 = vadd.f32 %v850_v0, %v785_v52 }
 0x14d   :  { %2064 = vmatmul.f32.gmra.mxu2 %v1928_v17  ;;  %v1341_v13 = vadd.f32 %v1277_v9, %v1212_v30  ;;  %v1865_v19 = vmul.f32 %v3583_v47, %v3993_v27  ;;  %v1180_v24 = vmul.f32 %v2802_v15, %v3612_v55  ;;  %v2021_v36 = vadd.f32 %v3876_v1, %v2020_v48  ;;  %v4039_v9 = vld [vmem:[#allocation2 + $0x3c7] sm:$0xff] }
 0x14e   :  { %v1831_v46 = vadd.f32 %v1767_v43, %v1702_v26  ;;  %v1043_v45 = vadd.f32 %v979_v62, %v914_v54  ;;  %v2117_v58 = vadd.f32 %v3876_v1, %v2116_v51  ;;  %v754_v31 = vmul.f32 %v2779_v6, %v3783_v49 }
 0x14f   :  { %v1470_v20 = vadd.f32 %v1406_v16, %v1341_v13  ;;  %v2206_v11 = vmax.f32 %v2021_v36, 0.0  ;;  %v819_v56 = vmul.f32 %v2781_v7, %v3897_v63  ;;  %v948_v52 = vmul.f32 %v2800_v14, %v4011_v59  ;;  %v4055_v36 = vld [vmem:[#allocation2 + $0x189] sm:$0xff] }
 0x150   :  { %v1960_v55 = vadd.f32 %v1896_v18, %v1831_v46  ;;  %v1244_v0 = vadd.f32 %v1180_v24, %v1043_v45  ;;  %v1309_v43 = vmul.f32 %v2815_v21, %v5080_v44  ;;  %v2238_v62 = vmax.f32 %v2117_v58, 0.0  ;;  %v4029_v48 = vpop.f32.mrf.mxu0 }
 0x151   :  { %v1671_v17 = vadd.f32 %v1607_v29, %v1470_v20  ;;  %v1438_v49 = vmul.f32 %v2821_v25, %v3791_v8  ;;  %v1639_v30 = vmul.f32 %v5038_v12, %v3798_v3  ;;  %2270 = vst.msk [vmem:[%s4949_s5 + $0x18] sm:$0xff] %vm175_vm0, %v2206_v11  ;;  %v883_v18 = vadd.f32 %v819_v56, %v754_v31  ;;  %v4041_v16 = vpop.f32.mrf.mxu1  ;;  %v5084_v20 = vld [vmem:[#allocation12_spill] sm:$0xff]  ;;  %v5085_v56 = vld [vmem:[#allocation18_spill] sm:$0xff] }
 0x152   :  { %2160 = vmatmul.f32.gmra.mxu3 %v1960_v55  ;;  %v1373_v51 = vadd.f32 %v1309_v43, %v1244_v0  ;;  %v1768_v26 = vmul.f32 %v2844_v37, %v3903_v22  ;;  %v1897_v29 = vmul.f32 %v3583_v47, %v4021_v32  ;;  %2302 = vst.msk [vmem:[%s4949_s5 + $0x118] sm:$0xff] %vm175_vm0, %v2238_v62 }
 0x153   :  { %v1800_v3 = vadd.f32 %v1736_v2, %v1671_v17  ;;  %v1012_v54 = vadd.f32 %v948_v52, %v883_v18  ;;  %v1149_v13 = vmul.f32 %v2802_v15, %v3648_v33  ;;  %v1278_v24 = vmul.f32 %v2815_v21, %v5082_v5  ;;  %621 = vst [vmem:[#allocation2 + $0x1c8] sm:$0xff] %v4029_v48  ;;  %v4073_v17 = vld [vmem:[#allocation2 + $0x18f] sm:$0xff] }
 0x154   :  { %v1502_v46 = vadd.f32 %v1438_v49, %v1373_v51  ;;  %v786_v45 = vmul.f32 %v2779_v6, %v3813_v50  ;;  %v851_v58 = vmul.f32 %v2781_v7, %v3915_v4  ;;  %v980_v2 = vmul.f32 %v2800_v14, %v4039_v9  ;;  %653 = vst [vmem:[#allocation2 + $0x408] sm:$0xff] %v4041_v16  ;;  %v2023_v62 = vpop.f32.mrf.mxu2 }
 0x155   :  { %v1929_v33 = vadd.f32 %v1865_v19, %v1800_v3  ;;  %v1213_v31 = vadd.f32 %v1149_v13, %v1012_v54  ;;  %v1407_v11 = vmul.f32 %v2821_v25, %v5084_v20  ;;  %v1608_v52 = vmul.f32 %v5038_v12, %v5085_v56  ;;  %v2119_v51 = vpop.f32.mrf.mxu3 }
 0x156   :  { %v1703_v55 = vadd.f32 %v1639_v30, %v1502_v46  ;;  %v1737_v50 = vmul.f32 %v2844_v37, %v3929_v41  ;;  %v1866_v0 = vmul.f32 %v3583_v47, %v4055_v36  ;;  %v915_v43 = vadd.f32 %v851_v58, %v786_v45 }
 0x157   :  { %2067 = vmatmul.f32.gmra.mxu2 %v1929_v33  ;;  %v1342_v19 = vadd.f32 %v1278_v24, %v1213_v31  ;;  %v1181_v49 = vmul.f32 %v2802_v15, %v3650_v60  ;;  %v2024_v18 = vadd.f32 %v3876_v1, %v2023_v62  ;;  %v755_v30 = vmul.f32 %v2779_v6, %v3837_v23  ;;  %v4092_v31 = vld [vmem:[#allocation2 + $0x3c9] sm:$0xff] }
 0x158   :  { %v1832_v3 = vadd.f32 %v1768_v26, %v1703_v55  ;;  %v1044_v54 = vadd.f32 %v980_v2, %v915_v43  ;;  %v2120_v13 = vadd.f32 %v3876_v1, %v2119_v51  ;;  %v820_v46 = vmul.f32 %v2781_v7, %v3953_v10  ;;  %v4083_v45 = vpop.f32.mrf.mxu0  ;;  %v5088_v43 = vld [vmem:[#allocation5_spill] sm:$0xff] }
 0x159   :  { %5086 = vst [vmem:[#allocation8_spill] sm:$0xff] %v4083_v45  ;;  %v1471_v58 = vadd.f32 %v1407_v11, %v1342_v19  ;;  %v1310_v24 = vmul.f32 %v2815_v21, %v3743_v53  ;;  %v2207_v60 = vmax.f32 %v2024_v18, 0.0  ;;  %v949_v33 = vmul.f32 %v2800_v14, %v4073_v17  ;;  %v4090_v23 = vpop.f32.mrf.mxu1 }
 0x15a   :  { %622 = vst [vmem:[#allocation2 + $0x1d0] sm:$0xff] %v4083_v45  ;;  %v1961_v26 = vadd.f32 %v1897_v29, %v1832_v3  ;;  %v1245_v2 = vadd.f32 %v1181_v49, %v1044_v54  ;;  %v2239_v56 = vmax.f32 %v2120_v13, 0.0  ;;  %v884_v55 = vadd.f32 %v820_v46, %v755_v30  ;;  %v4105_v29 = vld [vmem:[#allocation2 + $0x3cf] sm:$0xff] }
 0x15b   :  { %5087 = vst [vmem:[#allocation9_spill] sm:$0xff] %v4090_v23  ;;  %v1672_v11 = vadd.f32 %v1608_v52, %v1471_v58  ;;  %v1439_v62 = vmul.f32 %v2821_v25, %v5088_v43  ;;  %v1640_v19 = vmul.f32 %v5038_v12, %v3848_v40  ;;  %v1769_v18 = vmul.f32 %v2844_v37, %v3961_v57  ;;  %v4115_v3 = vld [vmem:[#allocation2 + $0x191] sm:$0xff] }
 0x15c   :  { %654 = vst [vmem:[#allocation2 + $0x410] sm:$0xff] %v4090_v23  ;;  %2163 = vmatmul.f32.gmra.mxu3 %v1961_v26  ;;  %v1374_v49 = vadd.f32 %v1310_v24, %v1245_v2  ;;  %v1013_v52 = vadd.f32 %v949_v33, %v884_v55  ;;  %v1150_v40 = vmul.f32 %v2802_v15, %v3693_v38 }
 0x15d   :  { %2271 = vst.msk [vmem:[%s4949_s5 + $0x20] sm:$0xff] %vm175_vm0, %v2207_v60  ;;  %v1801_v51 = vadd.f32 %v1737_v50, %v1672_v11  ;;  %v1898_v30 = vmul.f32 %v3583_v47, %v4092_v31  ;;  %v787_v54 = vmul.f32 %v2779_v6, %v3861_v42  ;;  %v852_v13 = vmul.f32 %v2781_v7, %v3971_v28  ;;  %v5089_v60 = vld [vmem:[#allocation14_spill] sm:$0xff] }
 0x15e   :  { %2303 = vst.msk [vmem:[%s4949_s5 + $0x120] sm:$0xff] %vm175_vm0, %v2239_v56  ;;  %v1503_v46 = vadd.f32 %v1439_v62, %v1374_v49  ;;  %v1214_v58 = vadd.f32 %v1150_v40, %v1013_v52  ;;  %v1279_v24 = vmul.f32 %v2815_v21, %v3789_v35  ;;  %v981_v38 = vmul.f32 %v2800_v14, %v4105_v29  ;;  %v4133_v62 = vld [vmem:[#allocation2 + $0x1a7] sm:$0xff]  ;;  %v5091_v40 = vld [vmem:[#allocation13_spill] sm:$0xff] }
 0x15f   :  { %v1930_v50 = vadd.f32 %v1866_v0, %v1801_v51  ;;  %v1408_v33 = vmul.f32 %v2821_v25, %v5089_v60  ;;  %v1609_v26 = vmul.f32 %v5038_v12, %v3871_v34  ;;  %v916_v2 = vadd.f32 %v852_v13, %v787_v54  ;;  %v4147_v13 = vld [vmem:[#allocation2 + $0x3d1] sm:$0xff] }
 0x160   :  { %v1704_v42 = vadd.f32 %v1640_v19, %v1503_v46  ;;  %v1343_v56 = vadd.f32 %v1279_v24, %v1214_v58  ;;  %v1738_v55 = vmul.f32 %v2844_v37, %v3993_v27  ;;  %v1867_v11 = vmul.f32 %v3583_v47, %v4115_v3  ;;  %v4135_v49 = vpop.f32.mrf.mxu0  ;;  %v2026_v46 = vpop.f32.mrf.mxu2 }
 0x161   :  { %5090 = vst [vmem:[#allocation10_spill] sm:$0xff] %v4135_v49  ;;  %2070 = vmatmul.f32.gmra.mxu2 %v1930_v50  ;;  %v1045_v0 = vadd.f32 %v981_v38, %v916_v2  ;;  %v1182_v52 = vmul.f32 %v2802_v15, %v5080_v44  ;;  %v4141_v34 = vmul.f32 %v2802_v15, %v5091_v40  ;;  %v4145_v51 = vpop.f32.mrf.mxu1  ;;  %v2122_v2 = vpop.f32.mrf.mxu3 }
 0x162   :  { %v1311_v19 = vmul.f32 %v2815_v21, %v3791_v8  ;;  %5093 = vst [vmem:[#allocation15_spill] sm:$0xff] %v4145_v51  ;;  %v1833_v54 = vadd.f32 %v1769_v18, %v1704_v42  ;;  %v1472_v47 = vadd.f32 %v1408_v33, %v1343_v56  ;;  %v756_v58 = vmul.f32 %v2779_v6, %v3897_v63 }
 0x163   :  { %5092 = vst [vmem:[#allocation6_spill] sm:$0xff] %v4141_v34  ;;  %v821_v44 = vmul.f32 %v2781_v7, %v4011_v59  ;;  %v1246_v24 = vadd.f32 %v1182_v52, %v1045_v0  ;;  %v1440_v38 = vmul.f32 %v2821_v25, %v5091_v40  ;;  %v2027_v50 = vadd.f32 %v3876_v1, %v2026_v46 }
 0x164   :  { %623 = vst [vmem:[#allocation2 + $0x1e8] sm:$0xff] %v4135_v49  ;;  %v950_v18 = vmul.f32 %v2800_v14, %v4133_v62  ;;  %v1962_v33 = vadd.f32 %v1898_v30, %v1833_v54  ;;  %v1673_v42 = vadd.f32 %v1609_v26, %v1472_v47  ;;  %v2123_v63 = vadd.f32 %v3876_v1, %v2122_v2  ;;  %v4169_v26 = vld [vmem:[#allocation2 + $0x3e7] sm:$0xff] }
 0x165   :  { %655 = vst [vmem:[#allocation2 + $0x428] sm:$0xff] %v4145_v51  ;;  %v885_v56 = vadd.f32 %v821_v44, %v756_v58  ;;  %v1375_v23 = vadd.f32 %v1311_v19, %v1246_v24  ;;  %v1641_v0 = vmul.f32 %v5038_v12, %v3903_v22  ;;  %v4165_v52 = vmul.f32 %v5038_v12, %v4147_v13  ;;  %v4176_v22 = vld [vmem:[%s4946_s2 + $0x8] ss:$0 sm:$0xff] }
 0x166   :  { %v2208_v46 = vmax.f32 %v2027_v50, 0.0  ;;  %2166 = vmatmul.f32.gmra.mxu3 %v1962_v33  ;;  %v1802_v49 = vadd.f32 %v1738_v55, %v1673_v42  ;;  %v2240_v34 = vmax.f32 %v2123_v63, 0.0  ;;  %v1151_v30 = vmul.f32 %v2802_v15, %v5082_v5  ;;  %v5094_v5 = vld [vmem:[#allocation16_spill] sm:$0xff] }
 0x167   :  { %v1014_v45 = vadd.f32 %v950_v18, %v885_v56  ;;  %v1504_v54 = vadd.f32 %v1440_v38, %v1375_v23  ;;  %v1770_v19 = vmul.f32 %v2844_v37, %v4021_v32  ;;  %v1899_v47 = vmul.f32 %v4176_v22, %v4147_v13  ;;  %v4188_v23 = vld [vmem:[#allocation2 + $0x1a9] sm:$0xff] }
 0x168   :  { %2272 = vst.msk [vmem:[%s4949_s5 + $0x28] sm:$0xff] %vm175_vm0, %v2208_v46  ;;  %v4186_v55 = vmul.f32 %v2802_v15, %v5094_v5  ;;  %v1931_v58 = vadd.f32 %v1867_v11, %v1802_v49  ;;  %v1280_v24 = vmul.f32 %v2815_v21, %v5084_v20  ;;  %v1409_v38 = vmul.f32 %v2821_v25, %v5094_v5  ;;  %v4198_v50 = vpop.f32.mrf.mxu0  ;;  %v2029_v63 = vpop.f32.mrf.mxu2 }
 0x169   :  { %2304 = vst.msk [vmem:[%s4949_s5 + $0x128] sm:$0xff] %vm175_vm0, %v2240_v34  ;;  %v1215_v44 = vadd.f32 %v1151_v30, %v1014_v45  ;;  %v1705_v2 = vadd.f32 %v1641_v0, %v1504_v54  ;;  %v788_v18 = vmul.f32 %v2779_v6, %v3915_v4  ;;  %v853_v11 = vmul.f32 %v2781_v7, %v4039_v9  ;;  %v4207_v45 = vpop.f32.mrf.mxu1  ;;  %v2125_v54 = vpop.f32.mrf.mxu3 }
 0x16a   :  { %5095 = vst [vmem:[#allocation4_spill] sm:$0xff] %v4198_v50  ;;  %v982_v49 = vmul.f32 %v2800_v14, %v4169_v26  ;;  %2073 = vmatmul.f32.gmra.mxu2 %v1931_v58  ;;  %v1610_v33 = vmul.f32 %v5038_v12, %v3929_v41  ;;  %v4213_v42 = vmul.f32 %v5038_v12, %v4188_v23  ;;  %v4221_v58 = vld [vmem:[#allocation2 + $0x1af] sm:$0xff] }
 0x16b   :  { %624 = vst [vmem:[#allocation2 + $0x1f0] sm:$0xff] %v4198_v50  ;;  %v1344_v34 = vadd.f32 %v1280_v24, %v1215_v44  ;;  %v1739_v4 = vmul.f32 %v2844_v37, %v4055_v36  ;;  %v1834_v56 = vadd.f32 %v1770_v19, %v1705_v2  ;;  %v1868_v0 = vmul.f32 %v4176_v22, %v4188_v23  ;;  %v5098_v44 = vld [vmem:[#allocation3_spill] sm:$0xff] }
 0x16c   :  { %5096 = vst [vmem:[#allocation7_spill] sm:$0xff] %v4207_v45  ;;  %v917_v46 = vadd.f32 %v853_v11, %v788_v18  ;;  %v1183_v30 = vmul.f32 %v2802_v15, %v3743_v53  ;;  %v4226_v24 = vmul.f32 %v2802_v15, %v5098_v44  ;;  %v1312_v19 = vmul.f32 %v2815_v21, %v5088_v43  ;;  %v4231_v11 = vld [vmem:[#allocation2 + $0x3e9] sm:$0xff] }
 0x16d   :  { %5097 = vst [vmem:[#allocation17_spill] sm:$0xff] %v4213_v42  ;;  %v1473_v41 = vadd.f32 %v1409_v38, %v1344_v34  ;;  %v2030_v2 = vadd.f32 %v3876_v1, %v2029_v63  ;;  %v1963_v50 = vadd.f32 %v1899_v47, %v1834_v56  ;;  %v2126_v53 = vadd.f32 %v3876_v1, %v2125_v54 }
 0x16e   :  { %656 = vst [vmem:[#allocation2 + $0x430] sm:$0xff] %v4207_v45  ;;  %v1046_v18 = vadd.f32 %v982_v49, %v917_v46  ;;  %v757_v42 = vmul.f32 %v2779_v6, %v3953_v10  ;;  %v822_v34 = vmul.f32 %v2781_v7, %v4073_v17  ;;  %v951_v51 = vmul.f32 %v2800_v14, %v4221_v58  ;;  %v4254_v46 = vld [vmem:[#allocation2 + $0x3ef] sm:$0xff] }
 0x16f   :  { %5099 = vst [vmem:[#allocation11_spill] sm:$0xff] %v4226_v24  ;;  %v1674_v45 = vadd.f32 %v1610_v33, %v1473_v41  ;;  %v2209_v38 = vmax.f32 %v2030_v2, 0.0  ;;  %2169 = vmatmul.f32.gmra.mxu3 %v1963_v50  ;;  %v1441_v47 = vmul.f32 %v2821_v25, %v5098_v44  ;;  %v1642_v49 = vmul.f32 %v5038_v12, %v3961_v57 }
 0x170   :  { %v1247_v24 = vadd.f32 %v1183_v30, %v1046_v18  ;;  %v2241_v63 = vmax.f32 %v2126_v53, 0.0  ;;  %v4246_v10 = vmul.f32 %v5038_v12, %v4231_v11  ;;  %v1771_v33 = vmul.f32 %v2844_v37, %v4092_v31  ;;  %v4256_v30 = vpop.f32.mrf.mxu0 }
 0x171   :  { %v1803_v56 = vadd.f32 %v1739_v4, %v1674_v45  ;;  %2273 = vst.msk [vmem:[%s4949_s5 + $0x30] sm:$0xff] %vm175_vm0, %v2209_v38  ;;  %v886_v50 = vadd.f32 %v822_v34, %v757_v42  ;;  %v1900_v45 = vmul.f32 %v4176_v22, %v4231_v11  ;;  %v1152_v4 = vmul.f32 %v2802_v15, %v3789_v35  ;;  %v4270_v42 = vld [vmem:[#allocation2 + $0x1b1] sm:$0xff]  ;;  %v4272_v41 = vpop.f32.mrf.mxu1  ;;  %v2032_v53 = vpop.f32.mrf.mxu2 }
 0x172   :  { %5100 = vst [vmem:[#allocation12_spill] sm:$0xff] %v4246_v10  ;;  %v1376_v57 = vadd.f32 %v1312_v19, %v1247_v24  ;;  %v4268_v54 = vmul.f32 %v2802_v15, %v3983_v61  ;;  %v1281_v2 = vmul.f32 %v2815_v21, %v5089_v60  ;;  %v1410_v18 = vmul.f32 %v2821_v25, %v3983_v61  ;;  %v4307_v10 = vld [vmem:[#allocation2 + $0x3f1] sm:$0xff] }
 0x173   :  { %5101 = vst [vmem:[#allocation18_spill] sm:$0xff] %v4256_v30  ;;  %v1932_v24 = vadd.f32 %v1868_v0, %v1803_v56  ;;  %v1015_v19 = vadd.f32 %v951_v51, %v886_v50  ;;  %v789_v38 = vmul.f32 %v2779_v6, %v3971_v28  ;;  %v854_v34 = vmul.f32 %v2781_v7, %v4105_v29  ;;  %v2128_v51 = vpop.f32.mrf.mxu3 }
 0x174   :  { %2305 = vst.msk [vmem:[%s4949_s5 + $0x130] sm:$0xff] %vm175_vm0, %v2241_v63  ;;  %v1505_v35 = vadd.f32 %v1441_v47, %v1376_v57  ;;  %v983_v0 = vmul.f32 %v2800_v14, %v4254_v46  ;;  %v1611_v56 = vmul.f32 %v5038_v12, %v3993_v27  ;;  %v4290_v47 = vmul.f32 %v5038_v12, %v4270_v42 }
 0x175   :  { %5102 = vst [vmem:[#allocation5_spill] sm:$0xff] %v4268_v54  ;;  %2076 = vmatmul.f32.gmra.mxu2 %v1932_v24  ;;  %v1216_v63 = vadd.f32 %v1152_v4, %v1015_v19  ;;  %v1740_v28 = vmul.f32 %v2844_v37, %v4115_v3  ;;  %v1869_v57 = vmul.f32 %v4176_v22, %v4270_v42  ;;  %v4298_v24 = vld [vmem:[#allocation2 + $0x1c7] sm:$0xff] }
 0x176   :  { %5103 = vst [vmem:[#allocation14_spill] sm:$0xff] %v4272_v41  ;;  %v1706_v50 = vadd.f32 %v1642_v49, %v1505_v35  ;;  %v4302_v27 = vmul.f32 %v2802_v15, %v3991_v39  ;;  %v1313_v19 = vmul.f32 %v2815_v21, %v5091_v40 }
 0x177   :  { %625 = vst [vmem:[#allocation2 + $0x208] sm:$0xff] %v4256_v30  ;;  %v918_v30 = vadd.f32 %v854_v34, %v789_v38  ;;  %v1345_v4 = vadd.f32 %v1281_v2, %v1216_v63  ;;  %v2129_v38 = vadd.f32 %v3876_v1, %v2128_v51  ;;  %v823_v63 = vmul.f32 %v2781_v7, %v4133_v62 }
 0x178   :  { %657 = vst [vmem:[#allocation2 + $0x448] sm:$0xff] %v4272_v41  ;;  %v1184_v41 = vmul.f32 %v2802_v15, %v3791_v8  ;;  %v1835_v49 = vadd.f32 %v1771_v33, %v1706_v50  ;;  %v758_v8 = vmul.f32 %v2779_v6, %v4011_v59  ;;  %v1442_v33 = vmul.f32 %v2821_v25, %v3991_v39 }
 0x179   :  { %5104 = vst [vmem:[#allocation13_spill] sm:$0xff] %v4290_v47  ;;  %v2033_v47 = vadd.f32 %v3876_v1, %v2032_v53  ;;  %v1047_v35 = vadd.f32 %v983_v0, %v918_v30  ;;  %v1474_v34 = vadd.f32 %v1410_v18, %v1345_v4  ;;  %v2242_v30 = vmax.f32 %v2129_v38, 0.0  ;;  %v4340_v4 = vpop.f32.mrf.mxu1 }
 0x17a   :  { %5105 = vst [vmem:[#allocation16_spill] sm:$0xff] %v4302_v27  ;;  %v952_v27 = vmul.f32 %v2800_v14, %v4298_v24  ;;  %v1964_v40 = vadd.f32 %v1900_v45, %v1835_v49  ;;  %v1643_v0 = vmul.f32 %v5038_v12, %v4021_v32  ;;  %v4322_v59 = vmul.f32 %v5038_v12, %v4307_v10  ;;  %v2035_v45 = vpop.f32.mrf.mxu2 }
 0x17b   :  { %v2210_v2 = vmax.f32 %v2033_v47, 0.0  ;;  %v1248_v54 = vadd.f32 %v1184_v41, %v1047_v35  ;;  %v1675_v53 = vadd.f32 %v1611_v56, %v1474_v34  ;;  %v887_v18 = vadd.f32 %v823_v63, %v758_v8  ;;  %v4328_v41 = vpop.f32.mrf.mxu0  ;;  %2306 = vst.msk [vmem:[%s4949_s5 + $0x138] sm:$0xff] %vm175_vm0, %v2242_v30  ;;  %v4338_v47 = vld [vmem:[#allocation2 + $0x407] sm:$0xff]  ;;  %v2131_v50 = vpop.f32.mrf.mxu3 }
 0x17c   :  { %2172 = vmatmul.f32.gmra.mxu3 %v1964_v40  ;;  %v1772_v56 = vmul.f32 %v2844_v37, %v4147_v13  ;;  %v1901_v32 = vmul.f32 %v4176_v22, %v4307_v10  ;;  %v4346_v13 = vmul.f32 %v2802_v15, %v4029_v48  ;;  %626 = vst [vmem:[#allocation2 + $0x210] sm:$0xff] %v4328_v41 }
 0x17d   :  { %2274 = vst.msk [vmem:[%s4949_s5 + $0x38] sm:$0xff] %vm175_vm0, %v2210_v2  ;;  %v1377_v51 = vadd.f32 %v1313_v19, %v1248_v54  ;;  %v1804_v49 = vadd.f32 %v1740_v28, %v1675_v53  ;;  %v1016_v35 = vadd.f32 %v952_v27, %v887_v18  ;;  %v1153_v54 = vmul.f32 %v2802_v15, %v5084_v20  ;;  %v4348_v19 = vld [vmem:[#allocation2 + $0x1c9] sm:$0xff] }
 0x17e   :  { %v1282_v8 = vmul.f32 %v2815_v21, %v5094_v5  ;;  %v790_v34 = vmul.f32 %v2779_v6, %v4039_v9  ;;  %v855_v28 = vmul.f32 %v2781_v7, %v4169_v26  ;;  %658 = vst [vmem:[#allocation2 + $0x450] sm:$0xff] %v4340_v4  ;;  %v1411_v2 = vmul.f32 %v2821_v25, %v4029_v48 }
 0x17f   :  { %v1506_v38 = vadd.f32 %v1442_v33, %v1377_v51  ;;  %v1933_v20 = vadd.f32 %v1869_v57, %v1804_v49  ;;  %v1217_v27 = vadd.f32 %v1153_v54, %v1016_v35  ;;  %v984_v63 = vmul.f32 %v2800_v14, %v4338_v47 }
 0x180   :  { %v1612_v5 = vmul.f32 %v5038_v12, %v4055_v36  ;;  %v4366_v9 = vmul.f32 %v5038_v12, %v4348_v19  ;;  %v919_v33 = vadd.f32 %v855_v28, %v790_v34  ;;  %v1741_v57 = vmul.f32 %v2844_v37, %v4188_v23 }
 0x181   :  { %v1707_v40 = vadd.f32 %v1643_v0, %v1506_v38  ;;  %2079 = vmatmul.f32.gmra.mxu2 %v1933_v20  ;;  %v1346_v30 = vadd.f32 %v1282_v8, %v1217_v27  ;;  %v1870_v53 = vmul.f32 %v4176_v22, %v4348_v19  ;;  %v1185_v18 = vmul.f32 %v2802_v15, %v5088_v43  ;;  %v4374_v0 = vld [vmem:[#allocation2 + $0x1cf] sm:$0xff] }
 0x182   :  { %v1048_v36 = vadd.f32 %v984_v63, %v919_v33  ;;  %v4378_v49 = vmul.f32 %v2802_v15, %v4041_v16  ;;  %v1314_v35 = vmul.f32 %v2815_v21, %v5098_v44  ;;  %v4382_v38 = vld [vmem:[#allocation2 + $0x409] sm:$0xff]  ;;  %v2036_v23 = vadd.f32 %v3876_v1, %v2035_v45  ;;  %v2038_v34 = vpop.f32.mrf.mxu2 }
 0x183   :  { %v1836_v51 = vadd.f32 %v1772_v56, %v1707_v40  ;;  %v1475_v54 = vadd.f32 %v1411_v2, %v1346_v30  ;;  %v2132_v8 = vadd.f32 %v3876_v1, %v2131_v50  ;;  %v759_v43 = vmul.f32 %v2779_v6, %v4073_v17  ;;  %v2134_v44 = vpop.f32.mrf.mxu3  ;;  %v4400_v30 = vld [vmem:[#allocation2 + $0x40f] sm:$0xff] }
 0x184   :  { %v1249_v28 = vadd.f32 %v1185_v18, %v1048_v36  ;;  %v824_v20 = vmul.f32 %v2781_v7, %v4221_v58  ;;  %v953_v27 = vmul.f32 %v2800_v14, %v4374_v0  ;;  %v1443_v63 = vmul.f32 %v2821_v25, %v4041_v16 }
 0x185   :  { %v1965_v56 = vadd.f32 %v1901_v32, %v1836_v51  ;;  %v1676_v2 = vadd.f32 %v1612_v5, %v1475_v54  ;;  %v2211_v45 = vmax.f32 %v2036_v23, 0.0  ;;  %v2243_v40 = vmax.f32 %v2132_v8, 0.0  ;;  %v4422_v23 = vld [vmem:[#allocation2 + $0x1d1] sm:$0xff] }
 0x186   :  { %v1378_v50 = vadd.f32 %v1314_v35, %v1249_v28  ;;  %v1644_v17 = vmul.f32 %v5038_v12, %v4092_v31  ;;  %v4398_v32 = vmul.f32 %v5038_v12, %v4382_v38  ;;  %v888_v33 = vadd.f32 %v824_v20, %v759_v43  ;;  %v5106_v35 = vld [vmem:[#allocation8_spill] sm:$0xff] }
 0x187   :  { %2175 = vmatmul.f32.gmra.mxu3 %v1965_v56  ;;  %v1805_v18 = vadd.f32 %v1741_v57, %v1676_v2  ;;  %v1773_v5 = vmul.f32 %v2844_v37, %v4231_v11  ;;  %v1902_v51 = vmul.f32 %v4176_v22, %v4382_v38  ;;  %2275 = vst.msk [vmem:[%s4949_s5 + $0x40] sm:$0xff] %vm175_vm0, %v2211_v45  ;;  %v4434_v2 = vld [vmem:[#allocation2 + $0x1e7] sm:$0xff] }
 0x188   :  { %v1154_v31 = vmul.f32 %v2802_v15, %v5089_v60  ;;  %v1507_v36 = vadd.f32 %v1443_v63, %v1378_v50  ;;  %2307 = vst.msk [vmem:[%s4949_s5 + $0x140] sm:$0xff] %vm175_vm0, %v2243_v40  ;;  %v1017_v57 = vadd.f32 %v953_v27, %v888_v33  ;;  %v4418_v11 = vmul.f32 %v2802_v15, %v5106_v35 }
 0x189   :  { %v1283_v54 = vmul.f32 %v2815_v21, %v3983_v61  ;;  %v1934_v8 = vadd.f32 %v1870_v53, %v1805_v18  ;;  %v791_v60 = vmul.f32 %v2779_v6, %v4105_v29  ;;  %v856_v43 = vmul.f32 %v2781_v7, %v4254_v46 }
 0x18a   :  { %v985_v56 = vmul.f32 %v2800_v14, %v4400_v30  ;;  %v1708_v28 = vadd.f32 %v1644_v17, %v1507_v36  ;;  %v1218_v20 = vadd.f32 %v1154_v31, %v1017_v57  ;;  %v1412_v27 = vmul.f32 %v2821_v25, %v5106_v35  ;;  %v2041_v40 = vpop.f32.mrf.mxu2 }
 0x18b   :  { %v1613_v61 = vmul.f32 %v5038_v12, %v4115_v3  ;;  %2082 = vmatmul.f32.gmra.mxu2 %v1934_v8  ;;  %v4438_v29 = vmul.f32 %v5038_v12, %v4422_v23  ;;  %v1742_v53 = vmul.f32 %v2844_v37, %v4270_v42  ;;  %v920_v63 = vadd.f32 %v856_v43, %v791_v60  ;;  %v2137_v18 = vpop.f32.mrf.mxu3 }
 0x18c   :  { %v2039_v45 = vadd.f32 %v3876_v1, %v2038_v34  ;;  %v1837_v50 = vadd.f32 %v1773_v5, %v1708_v28  ;;  %v1347_v17 = vadd.f32 %v1283_v54, %v1218_v20  ;;  %v2135_v33 = vadd.f32 %v3876_v1, %v2134_v44  ;;  %v4452_v54 = vld [vmem:[#allocation2 + $0x427] sm:$0xff]  ;;  %v5107_v44 = vld [vmem:[#allocation6_spill] sm:$0xff] }
 0x18d   :  { %v760_v3 = vmul.f32 %v2779_v6, %v4133_v62  ;;  %v1049_v31 = vadd.f32 %v985_v56, %v920_v63  ;;  %v825_v57 = vmul.f32 %v2781_v7, %v4298_v24  ;;  %v954_v42 = vmul.f32 %v2800_v14, %v4434_v2  ;;  %v5108_v56 = vld [vmem:[#allocation9_spill] sm:$0xff] }
 0x18e   :  { %v2212_v36 = vmax.f32 %v2039_v45, 0.0  ;;  %v1966_v8 = vadd.f32 %v1902_v51, %v1837_v50  ;;  %v1476_v60 = vadd.f32 %v1412_v27, %v1347_v17  ;;  %v1871_v34 = vmul.f32 %v4176_v22, %v4422_v23  ;;  %v4459_v20 = vld [vmem:[#allocation2 + $0x411] sm:$0xff] }
 0x18f   :  { %v2244_v5 = vmax.f32 %v2135_v33, 0.0  ;;  %v1250_v43 = vadd.f32 %v5107_v44, %v1049_v31  ;;  %v1315_v62 = vmul.f32 %v2815_v21, %v3991_v39  ;;  %v1444_v28 = vmul.f32 %v2821_v25, %v5108_v56 }
 0x190   :  { %2276 = vst.msk [vmem:[%s4949_s5 + $0x48] sm:$0xff] %vm175_vm0, %v2212_v36  ;;  %v889_v51 = vadd.f32 %v825_v57, %v760_v3  ;;  %2178 = vmatmul.f32.gmra.mxu3 %v1966_v8  ;;  %v1677_v27 = vadd.f32 %v1613_v61, %v1476_v60  ;;  %v1774_v63 = vmul.f32 %v2844_v37, %v4307_v10  ;;  %v2011_v61 = vpop.f32.mrf.mxu0  ;;  %v5109_v36 = vld [vmem:[#allocation10_spill] sm:$0xff] }
 0x191   :  { %2308 = vst.msk [vmem:[%s4949_s5 + $0x148] sm:$0xff] %vm175_vm0, %v2244_v5  ;;  %v792_v39 = vmul.f32 %v2779_v6, %v4169_v26  ;;  %v1379_v45 = vadd.f32 %v1315_v62, %v1250_v43  ;;  %v857_v17 = vmul.f32 %v2781_v7, %v4338_v47  ;;  %v986_v33 = vmul.f32 %v2800_v14, %v4452_v54 }
 0x192   :  { %v1018_v50 = vadd.f32 %v954_v42, %v889_v51  ;;  %v1806_v3 = vadd.f32 %v1742_v53, %v1677_v27  ;;  %v1903_v10 = vmul.f32 %v4176_v22, %v4459_v20  ;;  %v1284_v31 = vmul.f32 %v2815_v21, %v4029_v48  ;;  %v2044_v5 = vpop.f32.mrf.mxu2  ;;  %v4489_v51 = vld [vmem:[#allocation2 + $0x1ef] sm:$0xff] }
 0x193   :  { %v1413_v57 = vmul.f32 %v2821_v25, %v5109_v36  ;;  %v1508_v26 = vadd.f32 %v1444_v28, %v1379_v45  ;;  %v921_v8 = vadd.f32 %v857_v17, %v792_v39  ;;  %v1316_v60 = vmul.f32 %v2815_v21, %v4041_v16  ;;  %v4492_v28 = vld [vmem:[#allocation2 + $0x1e9] sm:$0xff]  ;;  %v5110_v17 = vld [vmem:[#allocation11_spill] sm:$0xff] }
 0x194   :  { %v1219_v42 = vadd.f32 %v4186_v55, %v1018_v50  ;;  %v1935_v44 = vadd.f32 %v1871_v34, %v1806_v3  ;;  %v2042_v53 = vadd.f32 %v3876_v1, %v2041_v40  ;;  %v2138_v43 = vadd.f32 %v3876_v1, %v2137_v18  ;;  %v2140_v18 = vpop.f32.mrf.mxu3  ;;  %v4501_v3 = vld [vmem:[#allocation2 + $0x42f] sm:$0xff] }
 0x195   :  { %v2012_v62 = vadd.f32 %v3876_v1, %v2011_v61  ;;  %v1709_v48 = vadd.f32 %v4165_v52, %v1508_v26  ;;  %v1050_v55 = vadd.f32 %v986_v33, %v921_v8  ;;  %v761_v39 = vmul.f32 %v2779_v6, %v4221_v58  ;;  %v5112_v8 = vld [vmem:[#allocation17_spill] sm:$0xff] }
 0x196   :  { %v1348_v27 = vadd.f32 %v1284_v31, %v1219_v42  ;;  %2085 = vmatmul.f32.gmra.mxu2 %v1935_v44  ;;  %v2213_v16 = vmax.f32 %v2042_v53, 0.0  ;;  %v2245_v34 = vmax.f32 %v2138_v43, 0.0  ;;  %v826_v40 = vmul.f32 %v2781_v7, %v4374_v0  ;;  %v5111_v31 = vld [vmem:[#allocation15_spill] sm:$0xff]  ;;  %v4509_v42 = vld [vmem:[#allocation2 + $0x429] sm:$0xff] }
 0x197   :  { %v2203_v45 = vmax.f32 %v2012_v62, 0.0  ;;  %v1838_v1 = vadd.f32 %v1774_v63, %v1709_v48  ;;  %v1251_v61 = vadd.f32 %v5110_v17, %v1050_v55  ;;  %v955_v52 = vmul.f32 %v2800_v14, %v4489_v51 }
 0x198   :  { %v1477_v50 = vadd.f32 %v1413_v57, %v1348_v27  ;;  %v1743_v58 = vmul.f32 %v2844_v37, %v4348_v19  ;;  %v1872_v33 = vmul.f32 %v4176_v22, %v4492_v28  ;;  %v1445_v26 = vmul.f32 %v2821_v25, %v5111_v31  ;;  %2277 = vst.msk [vmem:[%s4949_s5 + $0x50] sm:$0xff] %vm175_vm0, %v2213_v16  ;;  %v5113_v16 = vld [vmem:[#allocation5_spill] sm:$0xff] }
 0x199   :  { %v890_v63 = vadd.f32 %v826_v40, %v761_v39  ;;  %v1967_v57 = vadd.f32 %v1903_v10, %v1838_v1  ;;  %v1380_v53 = vadd.f32 %v1316_v60, %v1251_v61  ;;  %v1775_v19 = vmul.f32 %v2844_v37, %v4382_v38  ;;  %2309 = vst.msk [vmem:[%s4949_s5 + $0x150] sm:$0xff] %vm175_vm0, %v2245_v34  ;;  %v5115_v61 = vld [vmem:[#allocation12_spill] sm:$0xff] }
 0x19a   :  { %v1678_v44 = vadd.f32 %v5112_v8, %v1477_v50  ;;  %2267 = vst.msk [vmem:[%s4949_s5] sm:$0xff] %vm175_vm0, %v2203_v45  ;;  %v793_v10 = vmul.f32 %v2779_v6, %v4254_v46  ;;  %v858_v60 = vmul.f32 %v2781_v7, %v4400_v30  ;;  %v987_v38 = vmul.f32 %v2800_v14, %v4501_v3  ;;  %v2014_v39 = vpop.f32.mrf.mxu0  ;;  %v5114_v45 = vld [vmem:[#allocation4_spill] sm:$0xff]  ;;  %v2047_v50 = vpop.f32.mrf.mxu2  ;;  %v4551_v8 = vld [vmem:[#allocation2 + $0x1f1] sm:$0xff] }
 0x19b   :  { %v1019_v43 = vadd.f32 %v955_v52, %v890_v63  ;;  %2181 = vmatmul.f32.gmra.mxu3 %v1967_v57  ;;  %v1509_v48 = vadd.f32 %v1445_v26, %v1380_v53  ;;  %v1904_v27 = vmul.f32 %v4176_v22, %v4509_v42  ;;  %v1285_v55 = vmul.f32 %v2815_v21, %v5106_v35  ;;  %v4549_v63 = vld [vmem:[#allocation2 + $0x207] sm:$0xff] }
 0x19c   :  { %v1807_v62 = vadd.f32 %v1743_v58, %v1678_v44  ;;  %v1414_v46 = vmul.f32 %v2821_v25, %v5114_v45  ;;  %v922_v40 = vadd.f32 %v858_v60, %v793_v10  ;;  %v1317_v1 = vmul.f32 %v2815_v21, %v5108_v56  ;;  %v4545_v58 = vld [vmem:[%s4948_s4] ss:$0 sm:$0xff] }
 0x19d   :  { %v1220_v34 = vadd.f32 %v5113_v16, %v1019_v43  ;;  %v1710_v52 = vadd.f32 %v5115_v61, %v1509_v48  ;;  %v2045_v35 = vadd.f32 %v4545_v58, %v2044_v5  ;;  %v2141_v26 = vadd.f32 %v4545_v58, %v2140_v18  ;;  %v5116_v18 = vld [vmem:[#allocation16_spill] sm:$0xff] }
 0x19e   :  { %v1936_v17 = vadd.f32 %v1872_v33, %v1807_v62  ;;  %v1051_v44 = vadd.f32 %v987_v38, %v922_v40  ;;  %v2015_v53 = vadd.f32 %v4545_v58, %v2014_v39  ;;  %v762_v33 = vmul.f32 %v2779_v6, %v4298_v24  ;;  %v2143_v38 = vpop.f32.mrf.mxu3  ;;  %v4571_v40 = vld [vmem:[#allocation2 + $0x447] sm:$0xff] }
 0x19f   :  { %v1349_v57 = vadd.f32 %v1285_v55, %v1220_v34  ;;  %v1839_v43 = vadd.f32 %v1775_v19, %v1710_v52  ;;  %v2214_v10 = vmax.f32 %v2045_v35, 0.0  ;;  %v2246_v60 = vmax.f32 %v2141_v26, 0.0  ;;  %v4565_v19 = vld [vmem:[#allocation2 + $0x431] sm:$0xff] }
 0x1a0   :  { %2088 = vmatmul.f32.gmra.mxu2 %v1936_v17  ;;  %v827_v5 = vmul.f32 %v2781_v7, %v4434_v2  ;;  %v1252_v48 = vadd.f32 %v5116_v18, %v1051_v44  ;;  %v2204_v16 = vmax.f32 %v2015_v53, 0.0  ;;  %v956_v55 = vmul.f32 %v2800_v14, %v4549_v63  ;;  %v5117_v17 = vld [vmem:[#allocation13_spill] sm:$0xff] }
 0x1a1   :  { %v1478_v62 = vadd.f32 %v1414_v46, %v1349_v57  ;;  %v1968_v34 = vadd.f32 %v1904_v27, %v1839_v43  ;;  %v1744_v39 = vmul.f32 %v2844_v37, %v4422_v23  ;;  %v1873_v24 = vmul.f32 %v4176_v22, %v4551_v8  ;;  %2278 = vst.msk [vmem:[%s4949_s5 + $0x58] sm:$0xff] %vm175_vm0, %v2214_v10  ;;  %v5118_v27 = vld [vmem:[#allocation7_spill] sm:$0xff]  ;;  %v4599_v18 = vld [vmem:[#allocation2 + $0x20f] sm:$0xff] }
 0x1a2   :  { %v891_v46 = vadd.f32 %v827_v5, %v762_v33  ;;  %v1381_v52 = vadd.f32 %v1317_v1, %v1252_v48  ;;  %v1446_v35 = vmul.f32 %v2821_v25, %v5118_v27  ;;  %v1776_v23 = vmul.f32 %v2844_v37, %v4459_v20  ;;  %2310 = vst.msk [vmem:[%s4949_s5 + $0x158] sm:$0xff] %vm175_vm0, %v2246_v60  ;;  %v5119_v5 = vld [vmem:[#allocation18_spill] sm:$0xff] }
 0x1a3   :  { %v1679_v61 = vadd.f32 %v5117_v17, %v1478_v62  ;;  %2184 = vmatmul.f32.gmra.mxu3 %v1968_v34  ;;  %2268 = vst.msk [vmem:[%s4949_s5 + $0x8] sm:$0xff] %vm175_vm0, %v2204_v16  ;;  %v794_v1 = vmul.f32 %v2779_v6, %v4338_v47  ;;  %v859_v57 = vmul.f32 %v2781_v7, %v4452_v54 }
 0x1a4   :  { %v1020_v26 = vadd.f32 %v956_v55, %v891_v46  ;;  %v1510_v53 = vadd.f32 %v1446_v35, %v1381_v52  ;;  %v1905_v33 = vmul.f32 %v4176_v22, %v4565_v19  ;;  %v988_v43 = vmul.f32 %v2800_v14, %v4571_v40 }
 0x1a5   :  { %v1808_v44 = vadd.f32 %v1744_v39, %v1679_v61  ;;  %v1286_v60 = vmul.f32 %v2815_v21, %v5109_v36  ;;  %v1415_v62 = vmul.f32 %v2821_v25, %v5119_v5  ;;  %v923_v47 = vadd.f32 %v859_v57, %v794_v1  ;;  %v2050_v39 = vpop.f32.mrf.mxu2 }
 0x1a6   :  { %v1221_v10 = vadd.f32 %v4346_v13, %v1020_v26  ;;  %v1711_v16 = vadd.f32 %v4322_v59, %v1510_v53  ;;  %v1745_v55 = vmul.f32 %v2844_v37, %v4492_v28  ;;  %v2048_v34 = vadd.f32 %v4545_v58, %v2047_v50  ;;  %v4605_v13 = vld [vmem:[#allocation2 + $0x209] sm:$0xff] }
 0x1a7   :  { %v1937_v48 = vadd.f32 %v1873_v24, %v1808_v44  ;;  %v1052_v17 = vadd.f32 %v988_v43, %v923_v47  ;;  %v2144_v61 = vadd.f32 %v4545_v58, %v2143_v38  ;;  %v763_v52 = vmul.f32 %v2779_v6, %v4374_v0  ;;  %v4610_v24 = vld [vmem:[#allocation2 + $0x449] sm:$0xff]  ;;  %v5120_v43 = vld [vmem:[#allocation14_spill] sm:$0xff] }
 0x1a8   :  { %v1350_v46 = vadd.f32 %v1286_v60, %v1221_v10  ;;  %v1840_v35 = vadd.f32 %v1776_v23, %v1711_v16  ;;  %v2215_v59 = vmax.f32 %v2048_v34, 0.0  ;;  %v828_v26 = vmul.f32 %v2781_v7, %v4489_v51  ;;  %v4619_v53 = vld [vmem:[#allocation2 + $0x44f] sm:$0xff] }
 0x1a9   :  { %2091 = vmatmul.f32.gmra.mxu2 %v1937_v48  ;;  %v957_v50 = vmul.f32 %v2800_v14, %v4599_v18  ;;  %v1253_v57 = vadd.f32 %v4378_v49, %v1052_v17  ;;  %v1318_v38 = vmul.f32 %v2815_v21, %v5111_v31  ;;  %v2247_v44 = vmax.f32 %v2144_v61, 0.0  ;;  %v2146_v49 = vpop.f32.mrf.mxu3  ;;  %v4638_v16 = vld [vmem:[#allocation2 + $0x211] sm:$0xff] }
 0x1aa   :  { %v1479_v1 = vadd.f32 %v1415_v62, %v1350_v46  ;;  %v1969_v0 = vadd.f32 %v1905_v33, %v1840_v35  ;;  %v1874_v23 = vmul.f32 %v4176_v22, %v4605_v13  ;;  %v1447_v10 = vmul.f32 %v2821_v25, %v5120_v43  ;;  %2279 = vst.msk [vmem:[%s4949_s5 + $0x60] sm:$0xff] %vm175_vm0, %v2215_v59 }
 0x1ab   :  { %v892_v60 = vadd.f32 %v828_v26, %v763_v52  ;;  %v1382_v47 = vadd.f32 %v1318_v38, %v1253_v57  ;;  %v1777_v48 = vmul.f32 %v2844_v37, %v4509_v42  ;;  %v1906_v33 = vmul.f32 %v4176_v22, %v4610_v24  ;;  %2311 = vst.msk [vmem:[%s4949_s5 + $0x160] sm:$0xff] %vm175_vm0, %v2247_v44  ;;  %v695_v57 = vld [vmem:[#allocation2 + $0x227] sm:$0xff] }
 0x1ac   :  { %v1680_v62 = vadd.f32 %v4366_v9, %v1479_v1  ;;  %2187 = vmatmul.f32.gmra.mxu3 %v1969_v0  ;;  %v795_v46 = vmul.f32 %v2779_v6, %v4400_v30  ;;  %v860_v9 = vmul.f32 %v2781_v7, %v4501_v3  ;;  %v989_v17 = vmul.f32 %v2800_v14, %v4619_v53 }
 0x1ad   :  { %v1021_v34 = vadd.f32 %v957_v50, %v892_v60  ;;  %v1511_v52 = vadd.f32 %v1447_v10, %v1382_v47  ;;  %v1287_v35 = vmul.f32 %v2815_v21, %v5114_v45  ;;  %v1416_v59 = vmul.f32 %v2821_v25, %v4328_v41  ;;  %v2053_v38 = vpop.f32.mrf.mxu2 }
 0x1ae   :  { %v1809_v61 = vadd.f32 %v1745_v55, %v1680_v62  ;;  %v1746_v50 = vmul.f32 %v2844_v37, %v4551_v8  ;;  %v1875_v30 = vmul.f32 %v4176_v22, %v4638_v16  ;;  %v924_v1 = vadd.f32 %v860_v9, %v795_v46  ;;  %v4662_v46 = vld [vmem:[#allocation2 + $0x451] sm:$0xff] }
 0x1af   :  { %v1222_v26 = vadd.f32 %v4418_v11, %v1021_v34  ;;  %v1712_v55 = vadd.f32 %v4398_v32, %v1511_v52  ;;  %v1190_v0 = vmul.f32 %v2802_v15, %v5108_v56  ;;  %v2051_v10 = vadd.f32 %v4545_v58, %v2050_v39  ;;  %v731_v52 = vld [vmem:[#allocation2 + $0x467] sm:$0xff] }
 0x1b0   :  { %v1938_v44 = vadd.f32 %v1874_v23, %v1809_v61  ;;  %v1053_v62 = vadd.f32 %v989_v17, %v924_v1  ;;  %v2147_v11 = vadd.f32 %v4545_v58, %v2146_v49  ;;  %v764_v47 = vmul.f32 %v2779_v6, %v4434_v2 }
 0x1b1   :  { %v1351_v60 = vadd.f32 %v1287_v35, %v1222_v26  ;;  %v1841_v34 = vadd.f32 %v1777_v48, %v1712_v55  ;;  %v2216_v9 = vmax.f32 %v2051_v10, 0.0  ;;  %v829_v32 = vmul.f32 %v2781_v7, %v4549_v63 }
 0x1b2   :  { %2094 = vmatmul.f32.gmra.mxu2 %v1938_v44  ;;  %v958_v23 = vmul.f32 %v2800_v14, %v695_v57  ;;  %v1254_v61 = vadd.f32 %v1190_v0, %v1053_v62  ;;  %v1319_v39 = vmul.f32 %v2815_v21, %v5118_v27  ;;  %v2248_v17 = vmax.f32 %v2147_v11, 0.0  ;;  %v2149_v35 = vpop.f32.mrf.mxu3  ;;  %v4695_v11 = vld [vmem:[#allocation2 + $0x248] sm:$0xff] }
 0x1b3   :  { %v1480_v56 = vadd.f32 %v1416_v59, %v1351_v60  ;;  %v1970_v49 = vadd.f32 %v1906_v33, %v1841_v34  ;;  %v1448_v2 = vmul.f32 %v2821_v25, %v4340_v4  ;;  %v1649_v48 = vmul.f32 %v5038_v12, %v4459_v20  ;;  %2280 = vst.msk [vmem:[%s4949_s5 + $0x68] sm:$0xff] %vm175_vm0, %v2216_v9  ;;  %v696_v34 = vld [vmem:[#allocation2 + $0x22f] sm:$0xff] }
 0x1b4   :  { %v893_v63 = vadd.f32 %v829_v32, %v764_v47  ;;  %v1383_v26 = vadd.f32 %v1319_v39, %v1254_v61  ;;  %v1778_v33 = vmul.f32 %v2844_v37, %v4565_v19  ;;  %v1907_v1 = vmul.f32 %v4176_v22, %v4662_v46  ;;  %2312 = vst.msk [vmem:[%s4949_s5 + $0x168] sm:$0xff] %vm175_vm0, %v2248_v17 }
 0x1b5   :  { %v1681_v59 = vadd.f32 %v4438_v29, %v1480_v56  ;;  %2190 = vmatmul.f32.gmra.mxu3 %v1970_v49  ;;  %v1159_v57 = vmul.f32 %v2802_v15, %v5109_v36  ;;  %v796_v29 = vmul.f32 %v2779_v6, %v4452_v54  ;;  %v861_v44 = vmul.f32 %v2781_v7, %v4571_v40 }
 0x1b6   :  { %v1022_v20 = vadd.f32 %v958_v23, %v893_v63  ;;  %v1512_v0 = vadd.f32 %v1448_v2, %v1383_v26  ;;  %v1288_v10 = vmul.f32 %v2815_v21, %v5119_v5  ;;  %v990_v60 = vmul.f32 %v2800_v14, %v731_v52  ;;  %v2056_v40 = vpop.f32.mrf.mxu2  ;;  %v2447_v52 = vld [vmem:[#allocation2 + $0x267] sm:$0xff] }
 0x1b7   :  { %v1810_v55 = vadd.f32 %v1746_v50, %v1681_v59  ;;  %v4699_v47 = vmul.f32 %v4695_v11, %v2821_v25  ;;  %v1618_v54 = vmul.f32 %v5038_v12, %v4492_v28  ;;  %v925_v36 = vadd.f32 %v861_v44, %v796_v29  ;;  %v1549_v28 = vld [vmem:[#allocation2 + $0x229] sm:$0xff] }
 0x1b8   :  { %v1223_v62 = vadd.f32 %v1159_v57, %v1022_v20  ;;  %v1713_v9 = vadd.f32 %v1649_v48, %v1512_v0  ;;  %v1191_v5 = vmul.f32 %v2802_v15, %v5111_v31  ;;  %v1320_v32 = vmul.f32 %v2815_v21, %v5120_v43  ;;  %v1585_v29 = vld [vmem:[#allocation2 + $0x469] sm:$0xff] }
 0x1b9   :  { %v1939_v50 = vadd.f32 %v1875_v30, %v1810_v55  ;;  %v1054_v56 = vadd.f32 %v990_v60, %v925_v36  ;;  %v2054_v61 = vadd.f32 %v4545_v58, %v2053_v38  ;;  %v2150_v39 = vadd.f32 %v4545_v58, %v2149_v35 }
 0x1ba   :  { %v1352_v23 = vadd.f32 %v1288_v10, %v1223_v62  ;;  %v1842_v17 = vadd.f32 %v1778_v33, %v1713_v9  ;;  %v765_v49 = vmul.f32 %v2779_v6, %v4489_v51  ;;  %v830_v30 = vmul.f32 %v2781_v7, %v4599_v18  ;;  %v732_v33 = vld [vmem:[#allocation2 + $0x46f] sm:$0xff] }
 0x1bb   :  { %2097 = vmatmul.f32.gmra.mxu2 %v1939_v50  ;;  %v959_v31 = vmul.f32 %v2800_v14, %v696_v34  ;;  %v1255_v43 = vadd.f32 %v1191_v5, %v1054_v56  ;;  %v2217_v48 = vmax.f32 %v2054_v61, 0.0  ;;  %v2249_v63 = vmax.f32 %v2150_v39, 0.0  ;;  %v2152_v51 = vpop.f32.mrf.mxu3  ;;  %v697_v34 = vld [vmem:[#allocation2 + $0x247] sm:$0xff]  ;;  %v1550_v61 = vld [vmem:[#allocation2 + $0x231] sm:$0xff] }
 0x1bc   :  { %v1481_v2 = vadd.f32 %v4699_v47, %v1352_v23  ;;  %v831_v38 = vmul.f32 %v2447_v52, %v2781_v7  ;;  %v1971_v35 = vadd.f32 %v1907_v1, %v1842_v17  ;;  %v1747_v59 = vmul.f32 %v2844_v37, %v4605_v13  ;;  %v2448_v17 = vld [vmem:[#allocation2 + $0x287] sm:$0xff]  ;;  %v1586_v52 = vld [vmem:[#allocation2 + $0x471] sm:$0xff] }
 0x1bd   :  { %v894_v26 = vadd.f32 %v830_v30, %v765_v49  ;;  %v1876_v18 = vmul.f32 %v4176_v22, %v1549_v28  ;;  %v1384_v57 = vadd.f32 %v1320_v32, %v1255_v43  ;;  %v1650_v44 = vmul.f32 %v5038_v12, %v4509_v42  ;;  %2281 = vst.msk [vmem:[%s4949_s5 + $0x70] sm:$0xff] %vm175_vm0, %v2217_v48 }
 0x1be   :  { %v1682_v20 = vadd.f32 %v1618_v54, %v1481_v2  ;;  %2193 = vmatmul.f32.gmra.mxu3 %v1971_v35  ;;  %2313 = vst.msk [vmem:[%s4949_s5 + $0x170] sm:$0xff] %vm175_vm0, %v2249_v63  ;;  %v1160_v1 = vmul.f32 %v2802_v15, %v5114_v45  ;;  %v797_v55 = vmul.f32 %v2779_v6, %v4501_v3  ;;  %v1551_v35 = vld [vmem:[#allocation2 + $0x249] sm:$0xff] }
 0x1bf   :  { %v1023_v13 = vadd.f32 %v959_v31, %v894_v26  ;;  %v1513_v42 = vadd.f32 %v4699_v47, %v1384_v57  ;;  %v862_v10 = vmul.f32 %v2781_v7, %v4619_v53  ;;  %v991_v60 = vmul.f32 %v2800_v14, %v732_v33  ;;  %v2059_v50 = vpop.f32.mrf.mxu2 }
 0x1c0   :  { %v1811_v0 = vadd.f32 %v1747_v59, %v1682_v20  ;;  %v1779_v62 = vmul.f32 %v2844_v37, %v4610_v24  ;;  %v1908_v54 = vmul.f32 %v4176_v22, %v1585_v29  ;;  %v1289_v45 = vmul.f32 %v2815_v21, %v4328_v41  ;;  %v2449_v20 = vld [vmem:[#allocation2 + $0x268] sm:$0xff] }
 0x1c1   :  { %v1224_v36 = vadd.f32 %v1160_v1, %v1023_v13  ;;  %v1714_v9 = vadd.f32 %v1650_v44, %v1513_v42  ;;  %v1619_v5 = vmul.f32 %v5038_v12, %v4551_v8  ;;  %v926_v32 = vadd.f32 %v862_v10, %v797_v55 }
 0x1c2   :  { %v1940_v3 = vadd.f32 %v1876_v18, %v1811_v0  ;;  %v1192_v53 = vmul.f32 %v2802_v15, %v5118_v27  ;;  %v2057_v24 = vadd.f32 %v4545_v58, %v2056_v40  ;;  %v2153_v23 = vadd.f32 %v4545_v58, %v2152_v51  ;;  %v2450_v0 = vld [vmem:[#allocation2 + $0x288] sm:$0xff] }
 0x1c3   :  { %v1353_v7 = vadd.f32 %v1289_v45, %v1224_v36  ;;  %v1843_v56 = vadd.f32 %v1779_v62, %v1714_v9  ;;  %v1055_v41 = vadd.f32 %v991_v60, %v926_v32  ;;  %v766_v39 = vmul.f32 %v2779_v6, %v697_v34  ;;  %v2155_v31 = vpop.f32.mrf.mxu3 }
 0x1c4   :  { %2100 = vmatmul.f32.gmra.mxu2 %v1940_v3  ;;  %v960_v28 = vmul.f32 %v2448_v17, %v2800_v14  ;;  %v1321_v49 = vmul.f32 %v2815_v21, %v4340_v4  ;;  %v2218_v30 = vmax.f32 %v2057_v24, 0.0  ;;  %v2250_v27 = vmax.f32 %v2153_v23, 0.0  ;;  %v2453_v3 = vld [vmem:[#allocation2 + $0x289] sm:$0xff] }
 0x1c5   :  { %v1482_v8 = vadd.f32 %v4699_v47, %v1353_v7  ;;  %v1972_v40 = vadd.f32 %v1908_v54, %v1843_v56  ;;  %v1256_v2 = vadd.f32 %v1192_v53, %v1055_v41  ;;  %v895_v43 = vadd.f32 %v831_v38, %v766_v39  ;;  %v2451_v54 = vld [vmem:[#allocation2 + $0x269] sm:$0xff] }
 0x1c6   :  { %v1161_v48 = vmul.f32 %v4695_v11, %v2802_v15  ;;  %v1748_v6 = vmul.f32 %v2844_v37, %v4638_v16  ;;  %v1877_v14 = vmul.f32 %v4176_v22, %v1550_v61  ;;  %2282 = vst.msk [vmem:[%s4949_s5 + $0x78] sm:$0xff] %vm175_vm0, %v2218_v30  ;;  %v1651_v38 = vmul.f32 %v5038_v12, %v4565_v19 }
 0x1c7   :  { %v1683_v63 = vadd.f32 %v1619_v5, %v1482_v8  ;;  %2196 = vmatmul.f32.gmra.mxu3 %v1972_v40  ;;  %v1385_v4 = vadd.f32 %v1321_v49, %v1256_v2  ;;  %2314 = vst.msk [vmem:[%s4949_s5 + $0x178] sm:$0xff] %vm175_vm0, %v2250_v27  ;;  %v1024_v15 = vadd.f32 %v960_v28, %v895_v43 }
 0x1c8   :  { %v1780_v11 = vmul.f32 %v2844_v37, %v4662_v46  ;;  %v2060_v59 = vadd.f32 %v4545_v58, %v2059_v50  ;;  %v2156_v26 = vadd.f32 %v4545_v58, %v2155_v31  ;;  %v1909_v51 = vmul.f32 %v4176_v22, %v1586_v52  ;;  %v2062_v57 = vpop.f32.mrf.mxu2  ;;  %v2452_v50 = vld [vmem:[%s4946_s2 + $0x8] ss:$0 sm:$0xff] }
 0x1c9   :  { %v1812_v16 = vadd.f32 %v1748_v6, %v1683_v63  ;;  %v1514_v33 = vadd.f32 %v4699_v47, %v1385_v4  ;;  %v1225_v19 = vadd.f32 %v1161_v48, %v1024_v15  ;;  %v1290_v18 = vmul.f32 %v2449_v20, %v2815_v21 }
 0x1ca   :  { %v2219_v44 = vmax.f32 %v2060_v59, 0.0  ;;  %v2251_v13 = vmax.f32 %v2156_v26, 0.0  ;;  %v2063_v1 = vadd.f32 %v4545_v58, %v2062_v57  ;;  %v1419_v42 = vmul.f32 %v2450_v0, %v2821_v25 }
 0x1cb   :  { %v1941_v29 = vadd.f32 %v1877_v14, %v1812_v16  ;;  %v1715_v46 = vadd.f32 %v1651_v38, %v1514_v33  ;;  %v1354_v55 = vadd.f32 %v1290_v18, %v1225_v19  ;;  %v1620_v10 = vmul.f32 %v5038_v12, %v1551_v35 }
 0x1cc   :  { %2283 = vst.msk [vmem:[%s4949_s5 + $0x80] sm:$0xff] %vm175_vm0, %v2219_v44  ;;  %v2220_v21 = vmax.f32 %v2063_v1, 0.0  ;;  %v2158_v60 = vpop.f32.mrf.mxu3  ;;  %v1749_v36 = vmul.f32 %v2451_v54, %v2844_v37  ;;  %v1878_v9 = vmul.f32 %v2453_v3, %v2452_v50 }
 0x1cd   :  { %2103 = vmatmul.f32.gmra.mxu2 %v1941_v29  ;;  %v1844_v22 = vadd.f32 %v1780_v11, %v1715_v46  ;;  %v1483_v47 = vadd.f32 %v1419_v42, %v1354_v55  ;;  %2315 = vst.msk [vmem:[%s4949_s5 + $0x180] sm:$0xff] %vm175_vm0, %v2251_v13  ;;  %v2159_v25 = vadd.f32 %v4545_v58, %v2158_v60 }
 0x1ce   :  { %2284 = vst.msk [vmem:[%s4949_s5 + $0x88] sm:$0xff] %vm175_vm0, %v2220_v21 }
 0x1cf   :  { %v1973_v12 = vadd.f32 %v1909_v51, %v1844_v22  ;;  %v1684_v62 = vadd.f32 %v1620_v10, %v1483_v47  ;;  %v2252_v45 = vmax.f32 %v2159_v25, 0.0 }
 0x1d0   :  { %v2065_v5 = vpop.f32.mrf.mxu2 }
 0x1d1   :  { %2199 = vmatmul.f32.gmra.mxu3 %v1973_v12  ;;  %v1813_v34 = vadd.f32 %v1749_v36, %v1684_v62  ;;  %2316 = vst.msk [vmem:[%s4949_s5 + $0x188] sm:$0xff] %vm175_vm0, %v2252_v45  ;;  %v2066_v32 = vadd.f32 %v4545_v58, %v2065_v5 }
 0x1d3   :  { %v1942_v7 = vadd.f32 %v1878_v9, %v1813_v34  ;;  %v2221_v53 = vmax.f32 %v2066_v32, 0.0 }
 0x1d5   :  { %2106 = vmatmul.f32.gmra.mxu2 %v1942_v7  ;;  %2285 = vst.msk [vmem:[%s4949_s5 + $0x90] sm:$0xff] %vm175_vm0, %v2221_v53  ;;  %v2161_v37 = vpop.f32.mrf.mxu3 }
 0x1d6   :  { %v2162_v24 = vadd.f32 %v4545_v58, %v2161_v37 }
 0x1d8   :  { %v2253_v23 = vmax.f32 %v2162_v24, 0.0 }
 0x1da   :  { %2317 = vst.msk [vmem:[%s4949_s5 + $0x190] sm:$0xff] %vm175_vm0, %v2253_v23  ;;  %v2068_v56 = vpop.f32.mrf.mxu2 }
 0x1db   :  { %v2069_v61 = vadd.f32 %v4545_v58, %v2068_v56 }
 0x1dd   :  { %v2222_v41 = vmax.f32 %v2069_v61, 0.0 }
 0x1df   :  { %2286 = vst.msk [vmem:[%s4949_s5 + $0x98] sm:$0xff] %vm175_vm0, %v2222_v41  ;;  %v2164_v39 = vpop.f32.mrf.mxu3 }
 0x1e0   :  { %v2165_v17 = vadd.f32 %v4545_v58, %v2164_v39 }
 0x1e2   :  { %v2254_v28 = vmax.f32 %v2165_v17, 0.0 }
 0x1e4   :  { %2318 = vst.msk [vmem:[%s4949_s5 + $0x198] sm:$0xff] %vm175_vm0, %v2254_v28  ;;  %v2071_v8 = vpop.f32.mrf.mxu2 }
 0x1e5   :  { %v2072_v49 = vadd.f32 %v4545_v58, %v2071_v8 }
 0x1e7   :  { %v2223_v30 = vmax.f32 %v2072_v49, 0.0 }
 0x1e9   :  { %2287 = vst.msk [vmem:[%s4949_s5 + $0xa0] sm:$0xff] %vm175_vm0, %v2223_v30  ;;  %v2167_v27 = vpop.f32.mrf.mxu3 }
 0x1ea   :  { %v2168_v31 = vadd.f32 %v4545_v58, %v2167_v27 }
 0x1ec   :  { %v2255_v40 = vmax.f32 %v2168_v31, 0.0 }
 0x1ed   :  { %v2074_v2 = vpop.f32.mrf.mxu2 }
 0x1ee   :  { %2319 = vst.msk [vmem:[%s4949_s5 + $0x1a0] sm:$0xff] %vm175_vm0, %v2255_v40  ;;  %v2075_v43 = vadd.f32 %v4545_v58, %v2074_v2 }
 0x1f0   :  { %v2224_v48 = vmax.f32 %v2075_v43, 0.0 }
 0x1f2   :  { %2288 = vst.msk [vmem:[%s4949_s5 + $0xa8] sm:$0xff] %vm175_vm0, %v2224_v48  ;;  %v2170_v63 = vpop.f32.mrf.mxu3 }
 0x1f3   :  { %v2171_v6 = vadd.f32 %v4545_v58, %v2170_v63 }
 0x1f5   :  { %v2256_v14 = vmax.f32 %v2171_v6, 0.0 }
 0x1f7   :  { %2320 = vst.msk [vmem:[%s4949_s5 + $0x1a8] sm:$0xff] %vm175_vm0, %v2256_v14 }
 0x1f8   :  { %v2077_v52 = vpop.f32.mrf.mxu2 }
 0x1f9   :  { %v2078_v4 = vadd.f32 %v4545_v58, %v2077_v52 }
 0x1fb   :  { %v2225_v38 = vmax.f32 %v2078_v4, 0.0 }
 0x1fd   :  { %2289 = vst.msk [vmem:[%s4949_s5 + $0xb0] sm:$0xff] %vm175_vm0, %v2225_v38 }
 0x1ff   :  { %v2173_v15 = vpop.f32.mrf.mxu3 }
 0x200   :  { %v2174_v16 = vadd.f32 %v4545_v58, %v2173_v15 }
 0x202   :  { %v2257_v11 = vmax.f32 %v2174_v16, 0.0 }
 0x204   :  { %2321 = vst.msk [vmem:[%s4949_s5 + $0x1b0] sm:$0xff] %vm175_vm0, %v2257_v11  ;;  %v2080_v35 = vpop.f32.mrf.mxu2 }
 0x205   :  { %v2081_v59 = vadd.f32 %v4545_v58, %v2080_v35 }
 0x207   :  { %v2226_v26 = vmax.f32 %v2081_v59, 0.0 }
 0x209   :  { %2290 = vst.msk [vmem:[%s4949_s5 + $0xb8] sm:$0xff] %vm175_vm0, %v2226_v26 }
 0x20a   :  { %v2176_v33 = vpop.f32.mrf.mxu3 }
 0x20b   :  { %v2177_v51 = vadd.f32 %v4545_v58, %v2176_v33 }
 0x20d   :  { %v2258_v19 = vmax.f32 %v2177_v51, 0.0 }
 0x20e   :  { %v2083_v20 = vpop.f32.mrf.mxu2 }
 0x20f   :  { %2322 = vst.msk [vmem:[%s4949_s5 + $0x1b8] sm:$0xff] %vm175_vm0, %v2258_v19  ;;  %v2084_v18 = vadd.f32 %v4545_v58, %v2083_v20 }
 0x211   :  { %v2227_v57 = vmax.f32 %v2084_v18, 0.0 }
 0x213   :  { %2291 = vst.msk [vmem:[%s4949_s5 + $0xc0] sm:$0xff] %vm175_vm0, %v2227_v57  ;;  %v2179_v29 = vpop.f32.mrf.mxu3 }
 0x214   :  { %v2180_v44 = vadd.f32 %v4545_v58, %v2179_v29 }
 0x216   :  { %v2259_v13 = vmax.f32 %v2180_v44, 0.0 }
 0x218   :  { %2323 = vst.msk [vmem:[%s4949_s5 + $0x1c0] sm:$0xff] %vm175_vm0, %v2259_v13 }
 0x219   :  { %v2086_v1 = vpop.f32.mrf.mxu2 }
 0x21a   :  { %v2087_v46 = vadd.f32 %v4545_v58, %v2086_v1 }
 0x21c   :  { %v2228_v55 = vmax.f32 %v2087_v46, 0.0 }
 0x21e   :  { %2292 = vst.msk [vmem:[%s4949_s5 + $0xc8] sm:$0xff] %vm175_vm0, %v2228_v55  ;;  %v2182_v0 = vpop.f32.mrf.mxu3 }
 0x21f   :  { %v2183_v42 = vadd.f32 %v4545_v58, %v2182_v0 }
 0x221   :  { %v2260_v10 = vmax.f32 %v2183_v42, 0.0 }
 0x223   :  { %v2089_v21 = vpop.f32.mrf.mxu2  ;;  %2324 = vst.msk [vmem:[%s4949_s5 + $0x1c8] sm:$0xff] %vm175_vm0, %v2260_v10 }
 0x224   :  { %v2090_v22 = vadd.f32 %v4545_v58, %v2089_v21 }
 0x226   :  { %v2229_v47 = vmax.f32 %v2090_v22, 0.0  ;;  %v2185_v60 = vpop.f32.mrf.mxu3 }
 0x227   :  { %v2186_v25 = vadd.f32 %v4545_v58, %v2185_v60 }
 0x228   :  { %2293 = vst.msk [vmem:[%s4949_s5 + $0xd0] sm:$0xff] %vm175_vm0, %v2229_v47 }
 0x229   :  { %v2261_v12 = vmax.f32 %v2186_v25, 0.0 }
 0x22b   :  { %2325 = vst.msk [vmem:[%s4949_s5 + $0x1d0] sm:$0xff] %vm175_vm0, %v2261_v12 }
 0x22c   :  { %v2092_v62 = vpop.f32.mrf.mxu2 }
 0x22d   :  { %v2093_v54 = vadd.f32 %v4545_v58, %v2092_v62 }
 0x22f   :  { %v2230_v36 = vmax.f32 %v2093_v54, 0.0  ;;  %v2188_v45 = vpop.f32.mrf.mxu3 }
 0x230   :  { %v2189_v34 = vadd.f32 %v4545_v58, %v2188_v45 }
 0x231   :  { %2294 = vst.msk [vmem:[%s4949_s5 + $0xd8] sm:$0xff] %vm175_vm0, %v2230_v36 }
 0x232   :  { %v2262_v50 = vmax.f32 %v2189_v34, 0.0 }
 0x234   :  { %2326 = vst.msk [vmem:[%s4949_s5 + $0x1d8] sm:$0xff] %vm175_vm0, %v2262_v50 }
 0x235   :  { %v2095_v3 = vpop.f32.mrf.mxu2 }
 0x236   :  { %v2096_v9 = vadd.f32 %v4545_v58, %v2095_v3 }
 0x238   :  { %v2231_v5 = vmax.f32 %v2096_v9, 0.0  ;;  %v2191_v32 = vpop.f32.mrf.mxu3 }
 0x239   :  { %v2192_v7 = vadd.f32 %v4545_v58, %v2191_v32 }
 0x23a   :  { %2295 = vst.msk [vmem:[%s4949_s5 + $0xe0] sm:$0xff] %vm175_vm0, %v2231_v5 }
 0x23b   :  { %v2263_v53 = vmax.f32 %v2192_v7, 0.0 }
 0x23d   :  { %2327 = vst.msk [vmem:[%s4949_s5 + $0x1e0] sm:$0xff] %vm175_vm0, %v2263_v53 }
 0x23e   :  { %v2098_v37 = vpop.f32.mrf.mxu2 }
 0x23f   :  { %v2099_v24 = vadd.f32 %v4545_v58, %v2098_v37 }
 0x241   :  { %v2232_v23 = vmax.f32 %v2099_v24, 0.0  ;;  %v2194_v56 = vpop.f32.mrf.mxu3 }
 0x242   :  { %v2195_v61 = vadd.f32 %v4545_v58, %v2194_v56 }
 0x243   :  { %2296 = vst.msk [vmem:[%s4949_s5 + $0xe8] sm:$0xff] %vm175_vm0, %v2232_v23 }
 0x244   :  { %v2264_v41 = vmax.f32 %v2195_v61, 0.0 }
 0x246   :  { %2328 = vst.msk [vmem:[%s4949_s5 + $0x1e8] sm:$0xff] %vm175_vm0, %v2264_v41 }
 0x247   :  { %v2101_v39 = vpop.f32.mrf.mxu2 }
 0x248   :  { %v2102_v17 = vadd.f32 %v4545_v58, %v2101_v39 }
 0x24a   :  { %v2233_v28 = vmax.f32 %v2102_v17, 0.0  ;;  %v2197_v8 = vpop.f32.mrf.mxu3 }
 0x24b   :  { %v2198_v49 = vadd.f32 %v4545_v58, %v2197_v8 }
 0x24c   :  { %2297 = vst.msk [vmem:[%s4949_s5 + $0xf0] sm:$0xff] %vm175_vm0, %v2233_v28 }
 0x24d   :  { %v2265_v30 = vmax.f32 %v2198_v49, 0.0 }
 0x24f   :  { %2329 = vst.msk [vmem:[%s4949_s5 + $0x1f0] sm:$0xff] %vm175_vm0, %v2265_v30 }
 0x250   :  { %v2104_v27 = vpop.f32.mrf.mxu2 }
 0x251   :  { %v2105_v31 = vadd.f32 %v4545_v58, %v2104_v27 }
 0x253   :  { %v2234_v40 = vmax.f32 %v2105_v31, 0.0 }
 0x254   :  { %v2200_v2 = vpop.f32.mrf.mxu3 }
 0x255   :  { %2298 = vst.msk [vmem:[%s4949_s5 + $0xf8] sm:$0xff] %vm175_vm0, %v2234_v40  ;;  %v2201_v43 = vadd.f32 %v4545_v58, %v2200_v2 }
 0x257   :  { %v2266_v48 = vmax.f32 %v2201_v43, 0.0 }
 0x258   :  { %v2107_v63 = vpop.f32.mrf.mxu2 }
 0x259   :  { %2330 = vst.msk [vmem:[%s4949_s5 + $0x1f8] sm:$0xff] %vm175_vm0, %v2266_v48  ;;  %v2108_v6 = vadd.f32 %v4545_v58, %v2107_v63 }
 0x25b   :  { %v2235_v14 = vmax.f32 %v2108_v6, 0.0 }
 0x25d   :  { %2299 = vst.msk [vmem:[%s4949_s5 + $0x100] sm:$0xff] %vm175_vm0, %v2235_v14 }

</bundles_post_ra>
